<compile_context>
chip_gen: v7x
topology: tpu7x:2x2x1
jax: 0.10.0
libtpu: 0.0.40
codegen_flags: <defaults>
</compile_context>

<pallas_src>
import jax
import jax.numpy as jnp
from jax.experimental import pallas as pl
from jax.experimental.pallas import tpu as pltpu


def _round_up(x, m):
    return ((x + m - 1) // m) * m


_COMPILER_PARAMS = pltpu.CompilerParams(
    dimension_semantics=("parallel",),          # shard row-grid across TCs (v7x)
    vmem_limit_bytes=32 * 1024 * 1024,          # tiles are sized well under 32 MiB
)


# --------------------------- Pallas kernels ---------------------------------

def conv_relu_pool_kernel(p00_ref, p01_ref, p10_ref, p11_ref, w_ref, b_ref, o_ref):
    """Fused conv-as-matmul + bias + ReLU + 2x2 maxpool.

    p??: (TM, K) im2col patches for the four pixels of each 2x2 pool window.
    w:   (K, Cout), b: (1, Cout)  ->  o: (TM, Cout) pooled output rows.
    """
    w = w_ref[...]
    b = b_ref[...]

    def branch(p_ref):
        acc = jnp.dot(p_ref[...], w, preferred_element_type=jnp.float32) + b
        return jnp.maximum(acc, 0.0)                       # ReLU before pool (as in torch)

    pooled = jnp.maximum(jnp.maximum(branch(p00_ref), branch(p01_ref)),
                         jnp.maximum(branch(p10_ref), branch(p11_ref)))
    o_ref[...] = pooled.astype(o_ref.dtype)


def mlp_kernel(x_ref, w1_ref, b1_ref, w2_ref, b2_ref, o_ref):
    """Linear(3136,128) + ReLU + Dropout(identity, eval) + Linear(128,10) on a row tile."""
    h = jnp.dot(x_ref[...], w1_ref[...], preferred_element_type=jnp.float32) + b1_ref[...]
    h = jnp.maximum(h, 0.0)
    # TODO(synk): Dropout(0.3) is identity in eval mode; training-mode mask would need pltpu.prng_seed/prng_random_bits.
    o_ref[...] = (jnp.dot(h, w2_ref[...], preferred_element_type=jnp.float32)
                  + b2_ref[...]).astype(o_ref.dtype)


# --------------------------- wrappers ---------------------------------------

def _build_pool_patches(x_nhwc):
    """Four im2col matrices, one per 2x2-pool offset (py, px).

    x: (B, H, W, Cin), H/W even.  Each matrix: (B*Ho*Wo, 9*Cin), row (b, ho, wo)
    holds the 3x3xCin patch of the conv output pixel (2*ho+py, 2*wo+px).
    Columns are ordered (dy, dx, ci), matching w.reshape(9*Cin, Cout) for HWIO weights.
    """
    # TODO(synk): build these per M-tile inside the kernel (in-kernel reshape of the
    # padded input tile) to cut conv-input HBM traffic ~9x; kept as XLA glue here for
    # robust lowering at this scale.
    B, H, W, Cin = x_nhwc.shape
    Ho, Wo = H // 2, W // 2
    xp = jnp.pad(x_nhwc, ((0, 0), (1, 1), (1, 1), (0, 0)))
    mats = []
    for py in range(2):
        for px in range(2):
            taps = [xp[:, py + dy: py + dy + H: 2, px + dx: px + dx + W: 2, :]
                    for dy in range(3) for dx in range(3)]         # each (B, Ho, Wo, Cin)
            p = jnp.concatenate(taps, axis=-1).reshape(B * Ho * Wo, 9 * Cin)
            mats.append(p)
    return mats


def conv3x3_relu_pool(x_nhwc, w, b, *, tile_m=512):
    """3x3 'same' conv + ReLU + 2x2 maxpool, fused in one gridded Pallas kernel.

    x: (B, H, W, Cin), w: (3, 3, Cin, Cout) HWIO, b: (Cout,) -> (B, H//2, W//2, Cout).
    (Converting real PyTorch weights (Cout,Cin,kh,kw) requires transposing to HWIO.)
    """
    B, H, W, Cin = x_nhwc.shape
    Cout = w.shape[-1]
    Ho, Wo = H // 2, W // 2
    M = B * Ho * Wo
    K = 9 * Cin

    patches = _build_pool_patches(x_nhwc)

    tile_m = min(tile_m, _round_up(M, 128))       # review: 512-1024 at large batch
    Mp = _round_up(M, tile_m)
    if Mp != M:
        patches = [jnp.pad(p, ((0, Mp - M), (0, 0))) for p in patches]

    wmat = w.reshape(K, Cout)
    bmat = b.reshape(1, Cout)

    row_spec = pl.BlockSpec((tile_m, K), lambda i: (i, 0))
    out = pl.pallas_call(
        conv_relu_pool_kernel,
        out_shape=jax.ShapeDtypeStruct((Mp, Cout), x_nhwc.dtype),
        grid=(Mp // tile_m,),
        in_specs=[row_spec, row_spec, row_spec, row_spec,
                  pl.BlockSpec((K, Cout), lambda i: (0, 0)),   # weights resident
                  pl.BlockSpec((1, Cout), lambda i: (0, 0))],  # bias resident
        out_specs=pl.BlockSpec((tile_m, Cout), lambda i: (i, 0)),
        compiler_params=_COMPILER_PARAMS,
    )(*patches, wmat, bmat)

    return out[:M].reshape(B, Ho, Wo, Cout)


def mlp(x_flat, w1, b1, w2, b2, *, tile_b=256):
    """Row-tiled fused MLP head.  x: (B, 3136) NHWC-flatten order."""
    B, K = x_flat.shape
    H1 = w1.shape[1]
    N = w2.shape[1]

    tile_b = min(tile_b, _round_up(B, 8))         # pad tiny batches up to a sublane
    Bp = _round_up(B, tile_b)
    if Bp != B:
        x_flat = jnp.pad(x_flat, ((0, Bp - B), (0, 0)))

    out = pl.pallas_call(
        mlp_kernel,
        out_shape=jax.ShapeDtypeStruct((Bp, N), x_flat.dtype),
        grid=(Bp // tile_b,),
        in_specs=[pl.BlockSpec((tile_b, K), lambda i: (i, 0)),
                  pl.BlockSpec((K, H1), lambda i: (0, 0)),     # w_fc1 resident
                  pl.BlockSpec((1, H1), lambda i: (0, 0)),
                  pl.BlockSpec((H1, N), lambda i: (0, 0)),     # w_fc2 resident
                  pl.BlockSpec((1, N), lambda i: (0, 0))],
        out_specs=pl.BlockSpec((tile_b, N), lambda i: (i, 0)),
        compiler_params=_COMPILER_PARAMS,
    )(x_flat, w1, b1.reshape(1, -1), w2, b2.reshape(1, -1))

    return out[:B]


# --------------------------- parameters & forward ---------------------------

def init_params(key):
    ks = jax.random.split(key, 8)
    p = {}
    p["w_conv1"] = jax.random.normal(ks[0], (3, 3, 1, 32), jnp.float32) * 0.1   # HWIO
    p["b_conv1"] = jax.random.normal(ks[1], (32,), jnp.float32) * 0.01
    p["w_conv2"] = jax.random.normal(ks[2], (3, 3, 32, 64), jnp.float32) * 0.05  # HWIO
    p["b_conv2"] = jax.random.normal(ks[3], (64,), jnp.float32) * 0.01
    # fc1 stored as (in, out) with rows in PyTorch NCHW-flatten order (c, h, w).
    p["w_fc1"] = jax.random.normal(ks[4], (64 * 7 * 7, 128), jnp.float32) * 0.02
    p["b_fc1"] = jax.random.normal(ks[5], (128,), jnp.float32) * 0.01
    p["w_fc2"] = jax.random.normal(ks[6], (128, 10), jnp.float32) * 0.05
    p["b_fc2"] = jax.random.normal(ks[7], (10,), jnp.float32) * 0.01
    return p


def prepare_params(params):
    """One-time prep: permute fc1 rows from NCHW-flatten order to NHWC-flatten order so
    the forward pass can skip the per-call NHWC->NCHW activation transpose."""
    C, H, W = 64, 7, 7
    c = jnp.arange(C)
    h = jnp.arange(H)
    w = jnp.arange(W)
    # perm[j] = torch row index i for NHWC-flatten position j = h*W*C + w*C + c
    perm = (c[None, None, :] * (H * W) + h[:, None, None] * W + w[None, :, None]).reshape(-1)
    out = dict(params)
    out["w_fc1"] = params["w_fc1"][perm, :]
    return out


@jax.jit
def fashion_cnn_forward(x_nchw, params):
    # x: (B, 1, 28, 28) float32  ->  logits (B, 10)
    x = jnp.transpose(x_nchw, (0, 2, 3, 1))                              # NCHW -> NHWC
    x = conv3x3_relu_pool(x, params["w_conv1"], params["b_conv1"])       # (B,14,14,32)
    x = conv3x3_relu_pool(x, params["w_conv2"], params["b_conv2"])       # (B, 7, 7,64)
    x = x.reshape(x.shape[0], 7 * 7 * 64)   # NHWC flatten; fc1 rows were pre-permuted
    return mlp(x, params["w_fc1"], params["b_fc1"],
               params["w_fc2"], params["b_fc2"])                         # (B,10)


if __name__ == "__main__":
    key = jax.random.PRNGKey(0)
    k_in, k_param = jax.random.split(key)
    # The module's fc layer (64*7*7) implies a 28x28 single-channel input.
    x = jax.random.normal(k_in, (2, 1, 28, 28), jnp.float32)
    params = prepare_params(init_params(k_param))

    logits = fashion_cnn_forward(x, params)
    jax.block_until_ready(logits)
    assert logits.shape == (2, 10) and logits.dtype == jnp.float32
    print("KERNEL_OK")
</pallas_src>

<mosaic_0001>
module attributes {stable_mosaic.version = 11 : i64} {
  func.func @conv_relu_pool_kernel(%arg0: i32, %arg1: memref<512x9xf32, #tpu.memory_space<vmem>>, %arg2: memref<512x9xf32, #tpu.memory_space<vmem>>, %arg3: memref<512x9xf32, #tpu.memory_space<vmem>>, %arg4: memref<512x9xf32, #tpu.memory_space<vmem>>, %arg5: memref<9x32xf32, #tpu.memory_space<vmem>>, %arg6: memref<1x32xf32, #tpu.memory_space<vmem>>, %arg7: memref<512x32xf32, #tpu.memory_space<vmem>>) attributes {dimension_semantics = [#tpu.dimension_semantics<parallel>], iteration_bounds = array<i64: 1>, scalar_prefetch = 0 : i64, scratch_operands = 0 : i64, tpu.core_type = #tpu.core_type<tc>, window_params = [{transform_indices = @transform_0, window_bounds = array<i64: 512, 9>}, {transform_indices = @transform_1, window_bounds = array<i64: 512, 9>}, {transform_indices = @transform_2, window_bounds = array<i64: 512, 9>}, {transform_indices = @transform_3, window_bounds = array<i64: 512, 9>}, {pipeline_mode = #tpu.pipeline_mode<synchronous>, transform_indices = @transform_4, window_bounds = array<i64: 9, 32>}, {pipeline_mode = #tpu.pipeline_mode<synchronous>, transform_indices = @transform_5, window_bounds = array<i64: 1, 32>}, {transform_indices = @transform_6, window_bounds = array<i64: 512, 32>}]} {
    %c0 = arith.constant 0 : index
    %c0_0 = arith.constant 0 : index
    %0 = vector.load %arg5[%c0, %c0_0] : memref<9x32xf32, #tpu.memory_space<vmem>>, vector<9x32xf32>
    %c0_1 = arith.constant 0 : index
    %c0_2 = arith.constant 0 : index
    %1 = vector.load %arg6[%c0_1, %c0_2] : memref<1x32xf32, #tpu.memory_space<vmem>>, vector<1x32xf32>
    %c0_3 = arith.constant 0 : index
    %c0_4 = arith.constant 0 : index
    %2 = vector.load %arg1[%c0_3, %c0_4] : memref<512x9xf32, #tpu.memory_space<vmem>>, vector<512x9xf32>
    %cst = arith.constant dense<0.000000e+00> : vector<512x32xf32>
    %3 = tpu.matmul %2, %0, %cst {dimension_numbers = #tpu.dot_dimension_numbers<[1], [0], [0], [1], [0, 0, 1, 1], [], []>} : vector<512x9xf32>, vector<9x32xf32>, vector<512x32xf32> -> vector<512x32xf32>
    %4 = vector.broadcast %1 : vector<1x32xf32> to vector<512x32xf32>
    %5 = arith.addf %3, %4 : vector<512x32xf32>
    %cst_5 = arith.constant 0.000000e+00 : f32
    %6 = vector.broadcast %cst_5 : f32 to vector<512x32xf32>
    %7 = arith.maximumf %5, %6 : vector<512x32xf32>
    %c0_6 = arith.constant 0 : index
    %c0_7 = arith.constant 0 : index
    %8 = vector.load %arg2[%c0_6, %c0_7] : memref<512x9xf32, #tpu.memory_space<vmem>>, vector<512x9xf32>
    %cst_8 = arith.constant dense<0.000000e+00> : vector<512x32xf32>
    %9 = tpu.matmul %8, %0, %cst_8 {dimension_numbers = #tpu.dot_dimension_numbers<[1], [0], [0], [1], [0, 0, 1, 1], [], []>} : vector<512x9xf32>, vector<9x32xf32>, vector<512x32xf32> -> vector<512x32xf32>
    %10 = vector.broadcast %1 : vector<1x32xf32> to vector<512x32xf32>
    %11 = arith.addf %9, %10 : vector<512x32xf32>
    %cst_9 = arith.constant 0.000000e+00 : f32
    %12 = vector.broadcast %cst_9 : f32 to vector<512x32xf32>
    %13 = arith.maximumf %11, %12 : vector<512x32xf32>
    %14 = arith.maximumf %7, %13 : vector<512x32xf32>
    %c0_10 = arith.constant 0 : index
    %c0_11 = arith.constant 0 : index
    %15 = vector.load %arg3[%c0_10, %c0_11] : memref<512x9xf32, #tpu.memory_space<vmem>>, vector<512x9xf32>
    %cst_12 = arith.constant dense<0.000000e+00> : vector<512x32xf32>
    %16 = tpu.matmul %15, %0, %cst_12 {dimension_numbers = #tpu.dot_dimension_numbers<[1], [0], [0], [1], [0, 0, 1, 1], [], []>} : vector<512x9xf32>, vector<9x32xf32>, vector<512x32xf32> -> vector<512x32xf32>
    %17 = vector.broadcast %1 : vector<1x32xf32> to vector<512x32xf32>
    %18 = arith.addf %16, %17 : vector<512x32xf32>
    %cst_13 = arith.constant 0.000000e+00 : f32
    %19 = vector.broadcast %cst_13 : f32 to vector<512x32xf32>
    %20 = arith.maximumf %18, %19 : vector<512x32xf32>
    %c0_14 = arith.constant 0 : index
    %c0_15 = arith.constant 0 : index
    %21 = vector.load %arg4[%c0_14, %c0_15] : memref<512x9xf32, #tpu.memory_space<vmem>>, vector<512x9xf32>
    %cst_16 = arith.constant dense<0.000000e+00> : vector<512x32xf32>
    %22 = tpu.matmul %21, %0, %cst_16 {dimension_numbers = #tpu.dot_dimension_numbers<[1], [0], [0], [1], [0, 0, 1, 1], [], []>} : vector<512x9xf32>, vector<9x32xf32>, vector<512x32xf32> -> vector<512x32xf32>
    %23 = vector.broadcast %1 : vector<1x32xf32> to vector<512x32xf32>
    %24 = arith.addf %22, %23 : vector<512x32xf32>
    %cst_17 = arith.constant 0.000000e+00 : f32
    %25 = vector.broadcast %cst_17 : f32 to vector<512x32xf32>
    %26 = arith.maximumf %24, %25 : vector<512x32xf32>
    %27 = arith.maximumf %20, %26 : vector<512x32xf32>
    %28 = arith.maximumf %14, %27 : vector<512x32xf32>
    %c0_18 = arith.constant 0 : index
    %c0_19 = arith.constant 0 : index
    %29 = vector.load %arg7[%c0_18, %c0_19] : memref<512x32xf32, #tpu.memory_space<vmem>>, vector<512x32xf32>
    tpu.vector_store %arg7[%c0_18, %c0_19], %28 {strides = array<i32>} : memref<512x32xf32, #tpu.memory_space<vmem>>, vector<512x32xf32>,
    return
  }
  func.func @transform_0(%arg0: i32) -> (i32, i32) {
    %c0_i32 = arith.constant 0 : i32
    %c0_i32_0 = arith.constant 0 : i32
    return %arg0, %c0_i32 : i32, i32
  }
  func.func @transform_1(%arg0: i32) -> (i32, i32) {
    %c0_i32 = arith.constant 0 : i32
    %c0_i32_0 = arith.constant 0 : i32
    return %arg0, %c0_i32 : i32, i32
  }
  func.func @transform_2(%arg0: i32) -> (i32, i32) {
    %c0_i32 = arith.constant 0 : i32
    %c0_i32_0 = arith.constant 0 : i32
    return %arg0, %c0_i32 : i32, i32
  }
  func.func @transform_3(%arg0: i32) -> (i32, i32) {
    %c0_i32 = arith.constant 0 : i32
    %c0_i32_0 = arith.constant 0 : i32
    return %arg0, %c0_i32 : i32, i32
  }
  func.func @transform_4(%arg0: i32) -> (i32, i32) {
    %c0_i32 = arith.constant 0 : i32
    %c0_i32_0 = arith.constant 0 : i32
    %c0_i32_1 = arith.constant 0 : i32
    return %c0_i32, %c0_i32_0 : i32, i32
  }
  func.func @transform_5(%arg0: i32) -> (i32, i32) {
    %c0_i32 = arith.constant 0 : i32
    %c0_i32_0 = arith.constant 0 : i32
    %c0_i32_1 = arith.constant 0 : i32
    return %c0_i32, %c0_i32_0 : i32, i32
  }
  func.func @transform_6(%arg0: i32) -> (i32, i32) {
    %c0_i32 = arith.constant 0 : i32
    %c0_i32_0 = arith.constant 0 : i32
    return %arg0, %c0_i32 : i32, i32
  }
}

module attributes {stable_mosaic.version = 11 : i64} {
  func.func @conv_relu_pool_kernel(%arg0: i32, %arg1: memref<128x288xf32, #tpu.memory_space<vmem>>, %arg2: memref<128x288xf32, #tpu.memory_space<vmem>>, %arg3: memref<128x288xf32, #tpu.memory_space<vmem>>, %arg4: memref<128x288xf32, #tpu.memory_space<vmem>>, %arg5: memref<288x64xf32, #tpu.memory_space<vmem>>, %arg6: memref<1x64xf32, #tpu.memory_space<vmem>>, %arg7: memref<128x64xf32, #tpu.memory_space<vmem>>) attributes {dimension_semantics = [#tpu.dimension_semantics<parallel>], iteration_bounds = array<i64: 1>, scalar_prefetch = 0 : i64, scratch_operands = 0 : i64, tpu.core_type = #tpu.core_type<tc>, window_params = [{transform_indices = @transform_0, window_bounds = array<i64: 128, 288>}, {transform_indices = @transform_1, window_bounds = array<i64: 128, 288>}, {transform_indices = @transform_2, window_bounds = array<i64: 128, 288>}, {transform_indices = @transform_3, window_bounds = array<i64: 128, 288>}, {pipeline_mode = #tpu.pipeline_mode<synchronous>, transform_indices = @transform_4, window_bounds = array<i64: 288, 64>}, {pipeline_mode = #tpu.pipeline_mode<synchronous>, transform_indices = @transform_5, window_bounds = array<i64: 1, 64>}, {transform_indices = @transform_6, window_bounds = array<i64: 128, 64>}]} {
    %c0 = arith.constant 0 : index
    %c0_0 = arith.constant 0 : index
    %0 = vector.load %arg5[%c0, %c0_0] : memref<288x64xf32, #tpu.memory_space<vmem>>, vector<288x64xf32>
    %c0_1 = arith.constant 0 : index
    %c0_2 = arith.constant 0 : index
    %1 = vector.load %arg6[%c0_1, %c0_2] : memref<1x64xf32, #tpu.memory_space<vmem>>, vector<1x64xf32>
    %c0_3 = arith.constant 0 : index
    %c0_4 = arith.constant 0 : index
    %2 = vector.load %arg1[%c0_3, %c0_4] : memref<128x288xf32, #tpu.memory_space<vmem>>, vector<128x288xf32>
    %cst = arith.constant dense<0.000000e+00> : vector<128x64xf32>
    %3 = tpu.matmul %2, %0, %cst {dimension_numbers = #tpu.dot_dimension_numbers<[1], [0], [0], [1], [0, 0, 1, 1], [], []>} : vector<128x288xf32>, vector<288x64xf32>, vector<128x64xf32> -> vector<128x64xf32>
    %4 = vector.broadcast %1 : vector<1x64xf32> to vector<128x64xf32>
    %5 = arith.addf %3, %4 : vector<128x64xf32>
    %cst_5 = arith.constant 0.000000e+00 : f32
    %6 = vector.broadcast %cst_5 : f32 to vector<128x64xf32>
    %7 = arith.maximumf %5, %6 : vector<128x64xf32>
    %c0_6 = arith.constant 0 : index
    %c0_7 = arith.constant 0 : index
    %8 = vector.load %arg2[%c0_6, %c0_7] : memref<128x288xf32, #tpu.memory_space<vmem>>, vector<128x288xf32>
    %cst_8 = arith.constant dense<0.000000e+00> : vector<128x64xf32>
    %9 = tpu.matmul %8, %0, %cst_8 {dimension_numbers = #tpu.dot_dimension_numbers<[1], [0], [0], [1], [0, 0, 1, 1], [], []>} : vector<128x288xf32>, vector<288x64xf32>, vector<128x64xf32> -> vector<128x64xf32>
    %10 = vector.broadcast %1 : vector<1x64xf32> to vector<128x64xf32>
    %11 = arith.addf %9, %10 : vector<128x64xf32>
    %cst_9 = arith.constant 0.000000e+00 : f32
    %12 = vector.broadcast %cst_9 : f32 to vector<128x64xf32>
    %13 = arith.maximumf %11, %12 : vector<128x64xf32>
    %14 = arith.maximumf %7, %13 : vector<128x64xf32>
    %c0_10 = arith.constant 0 : index
    %c0_11 = arith.constant 0 : index
    %15 = vector.load %arg3[%c0_10, %c0_11] : memref<128x288xf32, #tpu.memory_space<vmem>>, vector<128x288xf32>
    %cst_12 = arith.constant dense<0.000000e+00> : vector<128x64xf32>
    %16 = tpu.matmul %15, %0, %cst_12 {dimension_numbers = #tpu.dot_dimension_numbers<[1], [0], [0], [1], [0, 0, 1, 1], [], []>} : vector<128x288xf32>, vector<288x64xf32>, vector<128x64xf32> -> vector<128x64xf32>
    %17 = vector.broadcast %1 : vector<1x64xf32> to vector<128x64xf32>
    %18 = arith.addf %16, %17 : vector<128x64xf32>
    %cst_13 = arith.constant 0.000000e+00 : f32
    %19 = vector.broadcast %cst_13 : f32 to vector<128x64xf32>
    %20 = arith.maximumf %18, %19 : vector<128x64xf32>
    %c0_14 = arith.constant 0 : index
    %c0_15 = arith.constant 0 : index
    %21 = vector.load %arg4[%c0_14, %c0_15] : memref<128x288xf32, #tpu.memory_space<vmem>>, vector<128x288xf32>
    %cst_16 = arith.constant dense<0.000000e+00> : vector<128x64xf32>
    %22 = tpu.matmul %21, %0, %cst_16 {dimension_numbers = #tpu.dot_dimension_numbers<[1], [0], [0], [1], [0, 0, 1, 1], [], []>} : vector<128x288xf32>, vector<288x64xf32>, vector<128x64xf32> -> vector<128x64xf32>
    %23 = vector.broadcast %1 : vector<1x64xf32> to vector<128x64xf32>
    %24 = arith.addf %22, %23 : vector<128x64xf32>
    %cst_17 = arith.constant 0.000000e+00 : f32
    %25 = vector.broadcast %cst_17 : f32 to vector<128x64xf32>
    %26 = arith.maximumf %24, %25 : vector<128x64xf32>
    %27 = arith.maximumf %20, %26 : vector<128x64xf32>
    %28 = arith.maximumf %14, %27 : vector<128x64xf32>
    %c0_18 = arith.constant 0 : index
    %c0_19 = arith.constant 0 : index
    %29 = vector.load %arg7[%c0_18, %c0_19] : memref<128x64xf32, #tpu.memory_space<vmem>>, vector<128x64xf32>
    tpu.vector_store %arg7[%c0_18, %c0_19], %28 {strides = array<i32>} : memref<128x64xf32, #tpu.memory_space<vmem>>, vector<128x64xf32>,
    return
  }
  func.func @transform_0(%arg0: i32) -> (i32, i32) {
    %c0_i32 = arith.constant 0 : i32
    %c0_i32_0 = arith.constant 0 : i32
    return %arg0, %c0_i32 : i32, i32
  }
  func.func @transform_1(%arg0: i32) -> (i32, i32) {
    %c0_i32 = arith.constant 0 : i32
    %c0_i32_0 = arith.constant 0 : i32
    return %arg0, %c0_i32 : i32, i32
  }
  func.func @transform_2(%arg0: i32) -> (i32, i32) {
    %c0_i32 = arith.constant 0 : i32
    %c0_i32_0 = arith.constant 0 : i32
    return %arg0, %c0_i32 : i32, i32
  }
  func.func @transform_3(%arg0: i32) -> (i32, i32) {
    %c0_i32 = arith.constant 0 : i32
    %c0_i32_0 = arith.constant 0 : i32
    return %arg0, %c0_i32 : i32, i32
  }
  func.func @transform_4(%arg0: i32) -> (i32, i32) {
    %c0_i32 = arith.constant 0 : i32
    %c0_i32_0 = arith.constant 0 : i32
    %c0_i32_1 = arith.constant 0 : i32
    return %c0_i32, %c0_i32_0 : i32, i32
  }
  func.func @transform_5(%arg0: i32) -> (i32, i32) {
    %c0_i32 = arith.constant 0 : i32
    %c0_i32_0 = arith.constant 0 : i32
    %c0_i32_1 = arith.constant 0 : i32
    return %c0_i32, %c0_i32_0 : i32, i32
  }
  func.func @transform_6(%arg0: i32) -> (i32, i32) {
    %c0_i32 = arith.constant 0 : i32
    %c0_i32_0 = arith.constant 0 : i32
    return %arg0, %c0_i32 : i32, i32
  }
}

module attributes {stable_mosaic.version = 11 : i64} {
  func.func @mlp_kernel(%arg0: i32, %arg1: memref<8x3136xf32, #tpu.memory_space<vmem>>, %arg2: memref<3136x128xf32, #tpu.memory_space<vmem>>, %arg3: memref<1x128xf32, #tpu.memory_space<vmem>>, %arg4: memref<128x10xf32, #tpu.memory_space<vmem>>, %arg5: memref<1x10xf32, #tpu.memory_space<vmem>>, %arg6: memref<8x10xf32, #tpu.memory_space<vmem>>) attributes {dimension_semantics = [#tpu.dimension_semantics<parallel>], iteration_bounds = array<i64: 1>, scalar_prefetch = 0 : i64, scratch_operands = 0 : i64, tpu.core_type = #tpu.core_type<tc>, window_params = [{transform_indices = @transform_0, window_bounds = array<i64: 8, 3136>}, {pipeline_mode = #tpu.pipeline_mode<synchronous>, transform_indices = @transform_1, window_bounds = array<i64: 3136, 128>}, {pipeline_mode = #tpu.pipeline_mode<synchronous>, transform_indices = @transform_2, window_bounds = array<i64: 1, 128>}, {pipeline_mode = #tpu.pipeline_mode<synchronous>, transform_indices = @transform_3, window_bounds = array<i64: 128, 10>}, {pipeline_mode = #tpu.pipeline_mode<synchronous>, transform_indices = @transform_4, window_bounds = array<i64: 1, 10>}, {transform_indices = @transform_5, window_bounds = array<i64: 8, 10>}]} {
    %c0 = arith.constant 0 : index
    %c0_0 = arith.constant 0 : index
    %0 = vector.load %arg1[%c0, %c0_0] : memref<8x3136xf32, #tpu.memory_space<vmem>>, vector<8x3136xf32>
    %c0_1 = arith.constant 0 : index
    %c0_2 = arith.constant 0 : index
    %1 = vector.load %arg2[%c0_1, %c0_2] : memref<3136x128xf32, #tpu.memory_space<vmem>>, vector<3136x128xf32>
    %cst = arith.constant dense<0.000000e+00> : vector<8x128xf32>
    %2 = tpu.matmul %0, %1, %cst {dimension_numbers = #tpu.dot_dimension_numbers<[1], [0], [0], [1], [0, 0, 1, 1], [], []>} : vector<8x3136xf32>, vector<3136x128xf32>, vector<8x128xf32> -> vector<8x128xf32>
    %c0_3 = arith.constant 0 : index
    %c0_4 = arith.constant 0 : index
    %3 = vector.load %arg3[%c0_3, %c0_4] : memref<1x128xf32, #tpu.memory_space<vmem>>, vector<1x128xf32>
    %4 = vector.broadcast %3 : vector<1x128xf32> to vector<8x128xf32>
    %5 = arith.addf %2, %4 : vector<8x128xf32>
    %cst_5 = arith.constant 0.000000e+00 : f32
    %6 = vector.broadcast %cst_5 : f32 to vector<8x128xf32>
    %7 = arith.maximumf %5, %6 : vector<8x128xf32>
    %c0_6 = arith.constant 0 : index
    %c0_7 = arith.constant 0 : index
    %8 = vector.load %arg4[%c0_6, %c0_7] : memref<128x10xf32, #tpu.memory_space<vmem>>, vector<128x10xf32>
    %cst_8 = arith.constant dense<0.000000e+00> : vector<8x10xf32>
    %9 = tpu.matmul %7, %8, %cst_8 {dimension_numbers = #tpu.dot_dimension_numbers<[1], [0], [0], [1], [0, 0, 1, 1], [], []>} : vector<8x128xf32>, vector<128x10xf32>, vector<8x10xf32> -> vector<8x10xf32>
    %c0_9 = arith.constant 0 : index
    %c0_10 = arith.constant 0 : index
    %10 = vector.load %arg5[%c0_9, %c0_10] : memref<1x10xf32, #tpu.memory_space<vmem>>, vector<1x10xf32>
    %11 = vector.broadcast %10 : vector<1x10xf32> to vector<8x10xf32>
    %12 = arith.addf %9, %11 : vector<8x10xf32>
    %c0_11 = arith.constant 0 : index
    %c0_12 = arith.constant 0 : index
    %13 = vector.load %arg6[%c0_11, %c0_12] : memref<8x10xf32, #tpu.memory_space<vmem>>, vector<8x10xf32>
    tpu.vector_store %arg6[%c0_11, %c0_12], %12 {strides = array<i32>} : memref<8x10xf32, #tpu.memory_space<vmem>>, vector<8x10xf32>,
    return
  }
  func.func @transform_0(%arg0: i32) -> (i32, i32) {
    %c0_i32 = arith.constant 0 : i32
    %c0_i32_0 = arith.constant 0 : i32
    return %arg0, %c0_i32 : i32, i32
  }
  func.func @transform_1(%arg0: i32) -> (i32, i32) {
    %c0_i32 = arith.constant 0 : i32
    %c0_i32_0 = arith.constant 0 : i32
    %c0_i32_1 = arith.constant 0 : i32
    return %c0_i32, %c0_i32_0 : i32, i32
  }
  func.func @transform_2(%arg0: i32) -> (i32, i32) {
    %c0_i32 = arith.constant 0 : i32
    %c0_i32_0 = arith.constant 0 : i32
    %c0_i32_1 = arith.constant 0 : i32
    return %c0_i32, %c0_i32_0 : i32, i32
  }
  func.func @transform_3(%arg0: i32) -> (i32, i32) {
    %c0_i32 = arith.constant 0 : i32
    %c0_i32_0 = arith.constant 0 : i32
    %c0_i32_1 = arith.constant 0 : i32
    return %c0_i32, %c0_i32_0 : i32, i32
  }
  func.func @transform_4(%arg0: i32) -> (i32, i32) {
    %c0_i32 = arith.constant 0 : i32
    %c0_i32_0 = arith.constant 0 : i32
    %c0_i32_1 = arith.constant 0 : i32
    return %c0_i32, %c0_i32_0 : i32, i32
  }
  func.func @transform_5(%arg0: i32) -> (i32, i32) {
    %c0_i32 = arith.constant 0 : i32
    %c0_i32_0 = arith.constant 0 : i32
    return %arg0, %c0_i32 : i32, i32
  }
}

</mosaic_0001>

<bundles_post_ra>
// kernel: fashion_cnn_forward.3
= control target key start
LH: loop header
LB: loop body
LE: loop exit
PB: predicated region body
PF: predicated region fallthrough
CT: control target
= control target key end

     0   :  { %vm289_vm0 = vcmask 1040384   ;;  %vm96_vm1 = vcmask 72704   ;;  %vm4070_vm2 = vmmov 1   ;;  %vm3049_vm4 = vcmask 261120   ;;  %s5875_s4 = inlined_call_operand.vmem [shape: f32[9,32], index: 4, kind: input, shape index: {}]   ;;  %s5876_s0 = inlined_call_operand.vmem [shape: f32[512,9], index: 0, kind: input, shape index: {}]   ;;  %s5877_s1 = inlined_call_operand.vmem [shape: f32[512,9], index: 1, kind: input, shape index: {}]   ;;  %s5878_s2 = inlined_call_operand.vmem [shape: f32[512,9], index: 2, kind: input, shape index: {}]   ;;  %s5879_s3 = inlined_call_operand.vmem [shape: f32[512,9], index: 3, kind: input, shape index: {}]   ;;  %s5880_s5 = inlined_call_operand.vmem [shape: f32[1,32], index: 5, kind: input, shape index: {}]   ;;  %s5881_s6 = inlined_call_operand.vmem [shape: f32[512,32], index: 6, kind: output, shape index: {}]  }
   0x1   :  { %v23_v0 = vld [vmem:[%s5875_s4] sm:$0xff]  ;;  %v24_v1 = vld [vmem:[%s5875_s4 + $0x8] sm:$0x1]  ;;  %vm4112_vm3 = vmpackc.low %vm289_vm0, %vm4070_vm2 }
   0x2   :  { %v4043_v3 = vpack.c.bf16 %v24_v1, %v23_v0  ;;  %v26_v4 = vld [vmem:[%s5876_s0] sm:$0xff]  ;;  %v27_v6 = vld [vmem:[%s5876_s0 + $0x8] sm:$0xff]  ;;  %v28_v8 = vld [vmem:[%s5876_s0 + $0x10] sm:$0xff] }
   0x3   :  { %v742_v5 = vld [vmem:[%s5877_s1] sm:$0xff]  ;;  %3647 = vmatprep.mubr.msk.f32.mxu0 %vm96_vm1, %v26_v4  ;;  %v743_v7 = vld [vmem:[%s5877_s1 + $0x8] sm:$0xff]  ;;  %v744_v9 = vld [vmem:[%s5877_s1 + $0x10] sm:$0xff] }
   0x4   :  { %3747 = vmatprep.mubr.msk.f32.mxu1 %vm96_vm1, %v742_v5  ;;  %4045 = vmatprep.subr.msk.bf16.mxu0 %vm4112_vm3, %v4043_v3  ;;  %v29_v10 = vld [vmem:[%s5876_s0 + $0x18] sm:$0xff]  ;;  %v30_v12 = vld [vmem:[%s5876_s0 + $0x20] sm:$0xff]  ;;  %v31_v14 = vld [vmem:[%s5876_s0 + $0x28] sm:$0xff] }
   0x5   :  { %4051 = vmatprep.subr.msk.bf16.mxu1 %vm4112_vm3, %v4043_v3  ;;  %4048 = vmatpush3.bf16.msk.msra.mxu0 %vm4112_vm3, %v4043_v3  ;;  %v745_v11 = vld [vmem:[%s5877_s1 + $0x18] sm:$0xff]  ;;  %v746_v13 = vld [vmem:[%s5877_s1 + $0x20] sm:$0xff]  ;;  %v747_v15 = vld [vmem:[%s5877_s1 + $0x28] sm:$0xff] }
   0x6   :  { %4054 = vmatpush3.bf16.msk.msra.mxu1 %vm4112_vm3, %v4043_v3  ;;  %4057 = vmatprep.subr.msk.bf16.mxu0 %vm4112_vm3, %v4043_v3  ;;  %v32_v16 = vld [vmem:[%s5876_s0 + $0x30] sm:$0xff]  ;;  %v33_v18 = vld [vmem:[%s5876_s0 + $0x38] sm:$0xff]  ;;  %v34_v20 = vld [vmem:[%s5876_s0 + $0x40] sm:$0xff] }
   0x7   :  { %4063 = vmatprep.subr.msk.bf16.mxu1 %vm4112_vm3, %v4043_v3  ;;  %v748_v17 = vld [vmem:[%s5877_s1 + $0x30] sm:$0xff]  ;;  %v749_v19 = vld [vmem:[%s5877_s1 + $0x38] sm:$0xff]  ;;  %v750_v21 = vld [vmem:[%s5877_s1 + $0x40] sm:$0xff] }
   0x8   :  { %3648 = vmatmul.mubr.msk.f32.vlgmr.msra.gmra.mrb[0].mxu0 %vm96_vm1, %v27_v6  ;;  %v35_v22 = vld [vmem:[%s5876_s0 + $0x48] sm:$0xff]  ;;  %v36_v24 = vld [vmem:[%s5876_s0 + $0x50] sm:$0xff]  ;;  %v37_v26 = vld [vmem:[%s5876_s0 + $0x58] sm:$0xff] }
   0x9   :  { %3748 = vmatmul.mubr.msk.f32.vlgmr.msra.gmra.mrb[0].mxu1 %vm96_vm1, %v743_v7  ;;  %4060 = vmatpush3.bf16.msk.msra.mxu0 %vm4112_vm3, %v4043_v3  ;;  %v751_v23 = vld [vmem:[%s5877_s1 + $0x48] sm:$0xff]  ;;  %v752_v25 = vld [vmem:[%s5877_s1 + $0x50] sm:$0xff]  ;;  %v753_v27 = vld [vmem:[%s5877_s1 + $0x58] sm:$0xff] }
   0xa   :  { %4066 = vmatpush3.bf16.msk.msra.mxu1 %vm4112_vm3, %v4043_v3  ;;  %3650 = vmatprep.mubr.msk.f32.mxu0 %vm96_vm1, %v28_v8  ;;  %v38_v28 = vld [vmem:[%s5876_s0 + $0x60] sm:$0xff]  ;;  %v39_v30 = vld [vmem:[%s5876_s0 + $0x68] sm:$0xff]  ;;  %v40_v32 = vld [vmem:[%s5876_s0 + $0x70] sm:$0xff] }
   0xb   :  { %3750 = vmatprep.mubr.msk.f32.mxu1 %vm96_vm1, %v744_v9  ;;  %v754_v29 = vld [vmem:[%s5877_s1 + $0x60] sm:$0xff]  ;;  %v755_v31 = vld [vmem:[%s5877_s1 + $0x68] sm:$0xff]  ;;  %v756_v33 = vld [vmem:[%s5877_s1 + $0x70] sm:$0xff] }
   0xc   :  { %3651 = vmatmul.mubr.msk.f32.gmra.mrb[2].mxu0 %vm96_vm1, %v29_v10  ;;  %v41_v34 = vld [vmem:[%s5876_s0 + $0x78] sm:$0xff]  ;;  %v42_v36 = vld [vmem:[%s5876_s0 + $0x80] sm:$0xff]  ;;  %v43_v38 = vld [vmem:[%s5876_s0 + $0x88] sm:$0xff] }
   0xd   :  { %3751 = vmatmul.mubr.msk.f32.gmra.mrb[2].mxu1 %vm96_vm1, %v745_v11  ;;  %3653 = vmatprep.mubr.msk.f32.mxu0 %vm96_vm1, %v30_v12  ;;  %v757_v35 = vld [vmem:[%s5877_s1 + $0x78] sm:$0xff]  ;;  %v758_v37 = vld [vmem:[%s5877_s1 + $0x80] sm:$0xff]  ;;  %v759_v39 = vld [vmem:[%s5877_s1 + $0x88] sm:$0xff] }
   0xe   :  { %3753 = vmatprep.mubr.msk.f32.mxu1 %vm96_vm1, %v746_v13  ;;  %v44_v40 = vld [vmem:[%s5876_s0 + $0x90] sm:$0xff]  ;;  %v45_v42 = vld [vmem:[%s5876_s0 + $0x98] sm:$0xff]  ;;  %v46_v44 = vld [vmem:[%s5876_s0 + $0xa0] sm:$0xff] }
   0xf   :  { %v760_v41 = vld [vmem:[%s5877_s1 + $0x90] sm:$0xff]  ;;  %v761_v43 = vld [vmem:[%s5877_s1 + $0x98] sm:$0xff]  ;;  %v762_v45 = vld [vmem:[%s5877_s1 + $0xa0] sm:$0xff] }
  0x10   :  { %3654 = vmatmul.mubr.msk.f32.gmra.mrb[4].mxu0 %vm96_vm1, %v31_v14  ;;  %v47_v46 = vld [vmem:[%s5876_s0 + $0xa8] sm:$0xff]  ;;  %v48_v48 = vld [vmem:[%s5876_s0 + $0xb0] sm:$0xff]  ;;  %v49_v50 = vld [vmem:[%s5876_s0 + $0xb8] sm:$0xff] }
  0x11   :  { %3754 = vmatmul.mubr.msk.f32.gmra.mrb[4].mxu1 %vm96_vm1, %v747_v15  ;;  %3656 = vmatprep.mubr.msk.f32.mxu0 %vm96_vm1, %v32_v16  ;;  %v763_v47 = vld [vmem:[%s5877_s1 + $0xa8] sm:$0xff]  ;;  %v764_v49 = vld [vmem:[%s5877_s1 + $0xb0] sm:$0xff]  ;;  %v765_v51 = vld [vmem:[%s5877_s1 + $0xb8] sm:$0xff] }
  0x12   :  { %3756 = vmatprep.mubr.msk.f32.mxu1 %vm96_vm1, %v748_v17  ;;  %v50_v52 = vld [vmem:[%s5876_s0 + $0xc0] sm:$0xff]  ;;  %v51_v54 = vld [vmem:[%s5876_s0 + $0xc8] sm:$0xff]  ;;  %v52_v56 = vld [vmem:[%s5876_s0 + $0xd0] sm:$0xff] }
  0x13   :  { %v766_v53 = vld [vmem:[%s5877_s1 + $0xc0] sm:$0xff]  ;;  %v767_v55 = vld [vmem:[%s5877_s1 + $0xc8] sm:$0xff]  ;;  %v768_v57 = vld [vmem:[%s5877_s1 + $0xd0] sm:$0xff] }
  0x14   :  { %3657 = vmatmul.mubr.msk.f32.gmra.mrb[6].mxu0 %vm96_vm1, %v33_v18  ;;  %v53_v58 = vld [vmem:[%s5876_s0 + $0xd8] sm:$0xff]  ;;  %v54_v60 = vld [vmem:[%s5876_s0 + $0xe0] sm:$0xff]  ;;  %v55_v62 = vld [vmem:[%s5876_s0 + $0xe8] sm:$0xff] }
  0x15   :  { %3757 = vmatmul.mubr.msk.f32.gmra.mrb[6].mxu1 %vm96_vm1, %v749_v19  ;;  %3659 = vmatprep.mubr.msk.f32.mxu0 %vm96_vm1, %v34_v20  ;;  %v769_v59 = vld [vmem:[%s5877_s1 + $0xd8] sm:$0xff]  ;;  %v770_v61 = vld [vmem:[%s5877_s1 + $0xe0] sm:$0xff]  ;;  %v771_v63 = vld [vmem:[%s5877_s1 + $0xe8] sm:$0xff] }
  0x16   :  { %3759 = vmatprep.mubr.msk.f32.mxu1 %vm96_vm1, %v750_v21  ;;  %v56_v0 = vld [vmem:[%s5876_s0 + $0xf0] sm:$0xff]  ;;  %v57_v2 = vld [vmem:[%s5876_s0 + $0xf8] sm:$0xff]  ;;  %v58_v4 = vld [vmem:[%s5876_s0 + $0x100] sm:$0xff] }
  0x17   :  { %v772_v1 = vld [vmem:[%s5877_s1 + $0xf0] sm:$0xff]  ;;  %v773_v3 = vld [vmem:[%s5877_s1 + $0xf8] sm:$0xff]  ;;  %v774_v5 = vld [vmem:[%s5877_s1 + $0x100] sm:$0xff] }
  0x18   :  { %3660 = vmatmul.mubr.msk.f32.gmra.mrb[8].mxu0 %vm96_vm1, %v35_v22  ;;  %v59_v6 = vld [vmem:[%s5876_s0 + $0x108] sm:$0xff]  ;;  %v60_v8 = vld [vmem:[%s5876_s0 + $0x110] sm:$0xff]  ;;  %v61_v10 = vld [vmem:[%s5876_s0 + $0x118] sm:$0xff] }
  0x19   :  { %3760 = vmatmul.mubr.msk.f32.gmra.mrb[8].mxu1 %vm96_vm1, %v751_v23  ;;  %3662 = vmatprep.mubr.msk.f32.mxu0 %vm96_vm1, %v36_v24  ;;  %v775_v7 = vld [vmem:[%s5877_s1 + $0x108] sm:$0xff]  ;;  %v776_v9 = vld [vmem:[%s5877_s1 + $0x110] sm:$0xff]  ;;  %v777_v11 = vld [vmem:[%s5877_s1 + $0x118] sm:$0xff] }
  0x1a   :  { %3762 = vmatprep.mubr.msk.f32.mxu1 %vm96_vm1, %v752_v25  ;;  %v62_v12 = vld [vmem:[%s5876_s0 + $0x120] sm:$0xff]  ;;  %v63_v14 = vld [vmem:[%s5876_s0 + $0x128] sm:$0xff]  ;;  %v64_v16 = vld [vmem:[%s5876_s0 + $0x130] sm:$0xff] }
  0x1b   :  { %v778_v13 = vld [vmem:[%s5877_s1 + $0x120] sm:$0xff]  ;;  %v779_v15 = vld [vmem:[%s5877_s1 + $0x128] sm:$0xff]  ;;  %v780_v17 = vld [vmem:[%s5877_s1 + $0x130] sm:$0xff] }
  0x1c   :  { %3663 = vmatmul.mubr.msk.f32.gmra.mrb[10].mxu0 %vm96_vm1, %v37_v26  ;;  %v65_v18 = vld [vmem:[%s5876_s0 + $0x138] sm:$0xff]  ;;  %v66_v20 = vld [vmem:[%s5876_s0 + $0x140] sm:$0xff]  ;;  %v67_v22 = vld [vmem:[%s5876_s0 + $0x148] sm:$0xff] }
  0x1d   :  { %3763 = vmatmul.mubr.msk.f32.gmra.mrb[10].mxu1 %vm96_vm1, %v753_v27  ;;  %3665 = vmatprep.mubr.msk.f32.mxu0 %vm96_vm1, %v38_v28  ;;  %v781_v19 = vld [vmem:[%s5877_s1 + $0x138] sm:$0xff]  ;;  %v782_v21 = vld [vmem:[%s5877_s1 + $0x140] sm:$0xff]  ;;  %v783_v23 = vld [vmem:[%s5877_s1 + $0x148] sm:$0xff] }
  0x1e   :  { %3765 = vmatprep.mubr.msk.f32.mxu1 %vm96_vm1, %v754_v29  ;;  %v68_v24 = vld [vmem:[%s5876_s0 + $0x150] sm:$0xff]  ;;  %v69_v26 = vld [vmem:[%s5876_s0 + $0x158] sm:$0xff]  ;;  %v70_v28 = vld [vmem:[%s5876_s0 + $0x160] sm:$0xff] }
  0x1f   :  { %v784_v25 = vld [vmem:[%s5877_s1 + $0x150] sm:$0xff]  ;;  %v785_v27 = vld [vmem:[%s5877_s1 + $0x158] sm:$0xff]  ;;  %v786_v29 = vld [vmem:[%s5877_s1 + $0x160] sm:$0xff] }
  0x20   :  { %3666 = vmatmul.mubr.msk.f32.gmra.mrb[12].mxu0 %vm96_vm1, %v39_v30  ;;  %v71_v30 = vld [vmem:[%s5876_s0 + $0x168] sm:$0xff] }
  0x21   :  { %3766 = vmatmul.mubr.msk.f32.gmra.mrb[12].mxu1 %vm96_vm1, %v755_v31  ;;  %3668 = vmatprep.mubr.msk.f32.mxu0 %vm96_vm1, %v40_v32  ;;  %v787_v31 = vld [vmem:[%s5877_s1 + $0x168] sm:$0xff]  ;;  %v72_v32 = vld [vmem:[%s5876_s0 + $0x170] sm:$0xff] }
  0x22   :  { %3768 = vmatprep.mubr.msk.f32.mxu1 %vm96_vm1, %v756_v33  ;;  %v788_v33 = vld [vmem:[%s5877_s1 + $0x170] sm:$0xff] }
  0x24   :  { %3669 = vmatmul.mubr.msk.f32.gmra.mrb[14].mxu0 %vm96_vm1, %v41_v34  ;;  %v73_v34 = vld [vmem:[%s5876_s0 + $0x178] sm:$0xff] }
  0x25   :  { %3769 = vmatmul.mubr.msk.f32.gmra.mrb[14].mxu1 %vm96_vm1, %v757_v35  ;;  %3671 = vmatprep.mubr.msk.f32.mxu0 %vm96_vm1, %v42_v36  ;;  %v789_v35 = vld [vmem:[%s5877_s1 + $0x178] sm:$0xff]  ;;  %v74_v36 = vld [vmem:[%s5876_s0 + $0x180] sm:$0xff] }
  0x26   :  { %3771 = vmatprep.mubr.msk.f32.mxu1 %vm96_vm1, %v758_v37  ;;  %v790_v37 = vld [vmem:[%s5877_s1 + $0x180] sm:$0xff] }
  0x28   :  { %3672 = vmatmul.mubr.msk.f32.gmra.mrb[16].mxu0 %vm96_vm1, %v43_v38  ;;  %v75_v38 = vld [vmem:[%s5876_s0 + $0x188] sm:$0xff] }
  0x29   :  { %3772 = vmatmul.mubr.msk.f32.gmra.mrb[16].mxu1 %vm96_vm1, %v759_v39  ;;  %3674 = vmatprep.mubr.msk.f32.mxu0 %vm96_vm1, %v44_v40  ;;  %v791_v39 = vld [vmem:[%s5877_s1 + $0x188] sm:$0xff]  ;;  %v76_v40 = vld [vmem:[%s5876_s0 + $0x190] sm:$0xff] }
  0x2a   :  { %3774 = vmatprep.mubr.msk.f32.mxu1 %vm96_vm1, %v760_v41  ;;  %v792_v41 = vld [vmem:[%s5877_s1 + $0x190] sm:$0xff] }
  0x2c   :  { %3675 = vmatmul.mubr.msk.f32.gmra.mrb[18].mxu0 %vm96_vm1, %v45_v42  ;;  %v77_v42 = vld [vmem:[%s5876_s0 + $0x198] sm:$0xff] }
  0x2d   :  { %3775 = vmatmul.mubr.msk.f32.gmra.mrb[18].mxu1 %vm96_vm1, %v761_v43  ;;  %3677 = vmatprep.mubr.msk.f32.mxu0 %vm96_vm1, %v46_v44  ;;  %v793_v43 = vld [vmem:[%s5877_s1 + $0x198] sm:$0xff]  ;;  %v78_v44 = vld [vmem:[%s5876_s0 + $0x1a0] sm:$0xff] }
  0x2e   :  { %3777 = vmatprep.mubr.msk.f32.mxu1 %vm96_vm1, %v762_v45  ;;  %v794_v45 = vld [vmem:[%s5877_s1 + $0x1a0] sm:$0xff] }
  0x30   :  { %3678 = vmatmul.mubr.msk.f32.gmra.mrb[20].mxu0 %vm96_vm1, %v47_v46  ;;  %v79_v46 = vld [vmem:[%s5876_s0 + $0x1a8] sm:$0xff] }
  0x31   :  { %3778 = vmatmul.mubr.msk.f32.gmra.mrb[20].mxu1 %vm96_vm1, %v763_v47  ;;  %3680 = vmatprep.mubr.msk.f32.mxu0 %vm96_vm1, %v48_v48  ;;  %v795_v47 = vld [vmem:[%s5877_s1 + $0x1a8] sm:$0xff]  ;;  %v80_v48 = vld [vmem:[%s5876_s0 + $0x1b0] sm:$0xff] }
  0x32   :  { %3780 = vmatprep.mubr.msk.f32.mxu1 %vm96_vm1, %v764_v49  ;;  %v796_v49 = vld [vmem:[%s5877_s1 + $0x1b0] sm:$0xff] }
  0x34   :  { %3681 = vmatmul.mubr.msk.f32.gmra.mrb[22].mxu0 %vm96_vm1, %v49_v50  ;;  %v81_v50 = vld [vmem:[%s5876_s0 + $0x1b8] sm:$0xff] }
  0x35   :  { %3781 = vmatmul.mubr.msk.f32.gmra.mrb[22].mxu1 %vm96_vm1, %v765_v51  ;;  %3683 = vmatprep.mubr.msk.f32.mxu0 %vm96_vm1, %v50_v52  ;;  %v797_v51 = vld [vmem:[%s5877_s1 + $0x1b8] sm:$0xff]  ;;  %v82_v52 = vld [vmem:[%s5876_s0 + $0x1c0] sm:$0xff] }
  0x36   :  { %3783 = vmatprep.mubr.msk.f32.mxu1 %vm96_vm1, %v766_v53  ;;  %v798_v53 = vld [vmem:[%s5877_s1 + $0x1c0] sm:$0xff] }
  0x38   :  { %3684 = vmatmul.mubr.msk.f32.gmra.mrb[24].mxu0 %vm96_vm1, %v51_v54  ;;  %v83_v54 = vld [vmem:[%s5876_s0 + $0x1c8] sm:$0xff] }
  0x39   :  { %3784 = vmatmul.mubr.msk.f32.gmra.mrb[24].mxu1 %vm96_vm1, %v767_v55  ;;  %3686 = vmatprep.mubr.msk.f32.mxu0 %vm96_vm1, %v52_v56  ;;  %v799_v55 = vld [vmem:[%s5877_s1 + $0x1c8] sm:$0xff]  ;;  %v84_v56 = vld [vmem:[%s5876_s0 + $0x1d0] sm:$0xff] }
  0x3a   :  { %3786 = vmatprep.mubr.msk.f32.mxu1 %vm96_vm1, %v768_v57  ;;  %v800_v57 = vld [vmem:[%s5877_s1 + $0x1d0] sm:$0xff] }
  0x3c   :  { %3687 = vmatmul.mubr.msk.f32.gmra.mrb[26].mxu0 %vm96_vm1, %v53_v58  ;;  %v85_v58 = vld [vmem:[%s5876_s0 + $0x1d8] sm:$0xff] }
  0x3d   :  { %3787 = vmatmul.mubr.msk.f32.gmra.mrb[26].mxu1 %vm96_vm1, %v769_v59  ;;  %3689 = vmatprep.mubr.msk.f32.mxu0 %vm96_vm1, %v54_v60  ;;  %v801_v59 = vld [vmem:[%s5877_s1 + $0x1d8] sm:$0xff]  ;;  %v86_v60 = vld [vmem:[%s5876_s0 + $0x1e0] sm:$0xff] }
  0x3e   :  { %3789 = vmatprep.mubr.msk.f32.mxu1 %vm96_vm1, %v770_v61  ;;  %v802_v61 = vld [vmem:[%s5877_s1 + $0x1e0] sm:$0xff] }
  0x40   :  { %3690 = vmatmul.mubr.msk.f32.gmra.mrb[28].mxu0 %vm96_vm1, %v55_v62  ;;  %v87_v62 = vld [vmem:[%s5876_s0 + $0x1e8] sm:$0xff] }
  0x41   :  { %3790 = vmatmul.mubr.msk.f32.gmra.mrb[28].mxu1 %vm96_vm1, %v771_v63  ;;  %3692 = vmatprep.mubr.msk.f32.mxu0 %vm96_vm1, %v56_v0  ;;  %v803_v63 = vld [vmem:[%s5877_s1 + $0x1e8] sm:$0xff]  ;;  %v88_v0 = vld [vmem:[%s5876_s0 + $0x1f0] sm:$0xff] }
  0x42   :  { %3792 = vmatprep.mubr.msk.f32.mxu1 %vm96_vm1, %v772_v1  ;;  %v804_v1 = vld [vmem:[%s5877_s1 + $0x1f0] sm:$0xff] }
  0x44   :  { %3693 = vmatmul.mubr.msk.f32.gmra.mrb[30].mxu0 %vm96_vm1, %v57_v2  ;;  %v89_v2 = vld [vmem:[%s5876_s0 + $0x1f8] sm:$0xff] }
  0x45   :  { %3793 = vmatmul.mubr.msk.f32.gmra.mrb[30].mxu1 %vm96_vm1, %v773_v3  ;;  %3695 = vmatprep.mubr.msk.f32.mxu0 %vm96_vm1, %v58_v4  ;;  %v805_v3 = vld [vmem:[%s5877_s1 + $0x1f8] sm:$0xff]  ;;  %v1511_v4 = vld [vmem:[%s5878_s2] sm:$0xff] }
  0x46   :  { %3795 = vmatprep.mubr.msk.f32.mxu1 %vm96_vm1, %v774_v5  ;;  %v2216_v5 = vld [vmem:[%s5879_s3] sm:$0xff] }
  0x48   :  { %3696 = vmatmul.mubr.msk.f32.gmra.mrb[32].mxu0 %vm96_vm1, %v59_v6  ;;  %v1512_v6 = vld [vmem:[%s5878_s2 + $0x8] sm:$0xff] }
  0x49   :  { %3796 = vmatmul.mubr.msk.f32.gmra.mrb[32].mxu1 %vm96_vm1, %v775_v7  ;;  %3698 = vmatprep.mubr.msk.f32.mxu0 %vm96_vm1, %v60_v8  ;;  %v2217_v7 = vld [vmem:[%s5879_s3 + $0x8] sm:$0xff]  ;;  %v1513_v8 = vld [vmem:[%s5878_s2 + $0x10] sm:$0xff] }
  0x4a   :  { %3798 = vmatprep.mubr.msk.f32.mxu1 %vm96_vm1, %v776_v9  ;;  %v2218_v9 = vld [vmem:[%s5879_s3 + $0x10] sm:$0xff] }
  0x4c   :  { %3699 = vmatmul.mubr.msk.f32.gmra.mrb[34].mxu0 %vm96_vm1, %v61_v10  ;;  %v1514_v10 = vld [vmem:[%s5878_s2 + $0x18] sm:$0xff] }
  0x4d   :  { %3799 = vmatmul.mubr.msk.f32.gmra.mrb[34].mxu1 %vm96_vm1, %v777_v11  ;;  %3701 = vmatprep.mubr.msk.f32.mxu0 %vm96_vm1, %v62_v12  ;;  %v2219_v11 = vld [vmem:[%s5879_s3 + $0x18] sm:$0xff]  ;;  %v1515_v12 = vld [vmem:[%s5878_s2 + $0x20] sm:$0xff] }
  0x4e   :  { %3801 = vmatprep.mubr.msk.f32.mxu1 %vm96_vm1, %v778_v13  ;;  %v2220_v13 = vld [vmem:[%s5879_s3 + $0x20] sm:$0xff] }
  0x50   :  { %3702 = vmatmul.mubr.msk.f32.gmra.mrb[36].mxu0 %vm96_vm1, %v63_v14  ;;  %v1516_v14 = vld [vmem:[%s5878_s2 + $0x28] sm:$0xff] }
  0x51   :  { %3802 = vmatmul.mubr.msk.f32.gmra.mrb[36].mxu1 %vm96_vm1, %v779_v15  ;;  %3704 = vmatprep.mubr.msk.f32.mxu0 %vm96_vm1, %v64_v16  ;;  %v2221_v15 = vld [vmem:[%s5879_s3 + $0x28] sm:$0xff]  ;;  %v1517_v16 = vld [vmem:[%s5878_s2 + $0x30] sm:$0xff] }
  0x52   :  { %3804 = vmatprep.mubr.msk.f32.mxu1 %vm96_vm1, %v780_v17  ;;  %v2222_v17 = vld [vmem:[%s5879_s3 + $0x30] sm:$0xff] }
  0x54   :  { %3705 = vmatmul.mubr.msk.f32.gmra.mrb[38].mxu0 %vm96_vm1, %v65_v18  ;;  %v1518_v18 = vld [vmem:[%s5878_s2 + $0x38] sm:$0xff] }
  0x55   :  { %3805 = vmatmul.mubr.msk.f32.gmra.mrb[38].mxu1 %vm96_vm1, %v781_v19  ;;  %3707 = vmatprep.mubr.msk.f32.mxu0 %vm96_vm1, %v66_v20  ;;  %v2223_v19 = vld [vmem:[%s5879_s3 + $0x38] sm:$0xff]  ;;  %v1519_v20 = vld [vmem:[%s5878_s2 + $0x40] sm:$0xff] }
  0x56   :  { %3807 = vmatprep.mubr.msk.f32.mxu1 %vm96_vm1, %v782_v21  ;;  %v2224_v21 = vld [vmem:[%s5879_s3 + $0x40] sm:$0xff] }
  0x58   :  { %3708 = vmatmul.mubr.msk.f32.gmra.mrb[40].mxu0 %vm96_vm1, %v67_v22  ;;  %v1520_v22 = vld [vmem:[%s5878_s2 + $0x48] sm:$0xff] }
  0x59   :  { %3808 = vmatmul.mubr.msk.f32.gmra.mrb[40].mxu1 %vm96_vm1, %v783_v23  ;;  %3710 = vmatprep.mubr.msk.f32.mxu0 %vm96_vm1, %v68_v24  ;;  %v2225_v23 = vld [vmem:[%s5879_s3 + $0x48] sm:$0xff]  ;;  %v1521_v24 = vld [vmem:[%s5878_s2 + $0x50] sm:$0xff] }
  0x5a   :  { %3810 = vmatprep.mubr.msk.f32.mxu1 %vm96_vm1, %v784_v25  ;;  %v2226_v25 = vld [vmem:[%s5879_s3 + $0x50] sm:$0xff] }
  0x5c   :  { %3711 = vmatmul.mubr.msk.f32.gmra.mrb[42].mxu0 %vm96_vm1, %v69_v26  ;;  %v1522_v26 = vld [vmem:[%s5878_s2 + $0x58] sm:$0xff] }
  0x5d   :  { %3811 = vmatmul.mubr.msk.f32.gmra.mrb[42].mxu1 %vm96_vm1, %v785_v27  ;;  %3713 = vmatprep.mubr.msk.f32.mxu0 %vm96_vm1, %v70_v28  ;;  %v2227_v27 = vld [vmem:[%s5879_s3 + $0x58] sm:$0xff]  ;;  %v1523_v28 = vld [vmem:[%s5878_s2 + $0x60] sm:$0xff] }
  0x5e   :  { %3813 = vmatprep.mubr.msk.f32.mxu1 %vm96_vm1, %v786_v29  ;;  %v2228_v29 = vld [vmem:[%s5879_s3 + $0x60] sm:$0xff] }
  0x60   :  { %3714 = vmatmul.mubr.msk.f32.gmra.mrb[44].mxu0 %vm96_vm1, %v71_v30  ;;  %v1524_v30 = vld [vmem:[%s5878_s2 + $0x68] sm:$0xff] }
  0x61   :  { %3814 = vmatmul.mubr.msk.f32.gmra.mrb[44].mxu1 %vm96_vm1, %v787_v31  ;;  %3716 = vmatprep.mubr.msk.f32.mxu0 %vm96_vm1, %v72_v32  ;;  %v2229_v31 = vld [vmem:[%s5879_s3 + $0x68] sm:$0xff]  ;;  %v1525_v32 = vld [vmem:[%s5878_s2 + $0x70] sm:$0xff] }
  0x62   :  { %3816 = vmatprep.mubr.msk.f32.mxu1 %vm96_vm1, %v788_v33  ;;  %v2230_v33 = vld [vmem:[%s5879_s3 + $0x70] sm:$0xff] }
  0x64   :  { %3717 = vmatmul.mubr.msk.f32.gmra.mrb[46].mxu0 %vm96_vm1, %v73_v34  ;;  %v1526_v34 = vld [vmem:[%s5878_s2 + $0x78] sm:$0xff] }
  0x65   :  { %3817 = vmatmul.mubr.msk.f32.gmra.mrb[46].mxu1 %vm96_vm1, %v789_v35  ;;  %3719 = vmatprep.mubr.msk.f32.mxu0 %vm96_vm1, %v74_v36  ;;  %v2231_v35 = vld [vmem:[%s5879_s3 + $0x78] sm:$0xff]  ;;  %v1527_v36 = vld [vmem:[%s5878_s2 + $0x80] sm:$0xff] }
  0x66   :  { %3819 = vmatprep.mubr.msk.f32.mxu1 %vm96_vm1, %v790_v37  ;;  %v2232_v37 = vld [vmem:[%s5879_s3 + $0x80] sm:$0xff] }
  0x68   :  { %3720 = vmatmul.mubr.msk.f32.gmra.mrb[48].mxu0 %vm96_vm1, %v75_v38  ;;  %v1528_v38 = vld [vmem:[%s5878_s2 + $0x88] sm:$0xff] }
  0x69   :  { %3820 = vmatmul.mubr.msk.f32.gmra.mrb[48].mxu1 %vm96_vm1, %v791_v39  ;;  %3722 = vmatprep.mubr.msk.f32.mxu0 %vm96_vm1, %v76_v40  ;;  %v2233_v39 = vld [vmem:[%s5879_s3 + $0x88] sm:$0xff]  ;;  %v1529_v40 = vld [vmem:[%s5878_s2 + $0x90] sm:$0xff] }
  0x6a   :  { %3822 = vmatprep.mubr.msk.f32.mxu1 %vm96_vm1, %v792_v41  ;;  %v2234_v41 = vld [vmem:[%s5879_s3 + $0x90] sm:$0xff] }
  0x6c   :  { %3723 = vmatmul.mubr.msk.f32.gmra.mrb[50].mxu0 %vm96_vm1, %v77_v42  ;;  %v1530_v42 = vld [vmem:[%s5878_s2 + $0x98] sm:$0xff] }
  0x6d   :  { %3823 = vmatmul.mubr.msk.f32.gmra.mrb[50].mxu1 %vm96_vm1, %v793_v43  ;;  %3725 = vmatprep.mubr.msk.f32.mxu0 %vm96_vm1, %v78_v44  ;;  %v2235_v43 = vld [vmem:[%s5879_s3 + $0x98] sm:$0xff]  ;;  %v1531_v44 = vld [vmem:[%s5878_s2 + $0xa0] sm:$0xff] }
  0x6e   :  { %3825 = vmatprep.mubr.msk.f32.mxu1 %vm96_vm1, %v794_v45  ;;  %v2236_v45 = vld [vmem:[%s5879_s3 + $0xa0] sm:$0xff] }
  0x70   :  { %3726 = vmatmul.mubr.msk.f32.gmra.mrb[52].mxu0 %vm96_vm1, %v79_v46  ;;  %v1532_v46 = vld [vmem:[%s5878_s2 + $0xa8] sm:$0xff] }
  0x71   :  { %3826 = vmatmul.mubr.msk.f32.gmra.mrb[52].mxu1 %vm96_vm1, %v795_v47  ;;  %3728 = vmatprep.mubr.msk.f32.mxu0 %vm96_vm1, %v80_v48  ;;  %v2237_v47 = vld [vmem:[%s5879_s3 + $0xa8] sm:$0xff]  ;;  %v1533_v48 = vld [vmem:[%s5878_s2 + $0xb0] sm:$0xff] }
  0x72   :  { %3828 = vmatprep.mubr.msk.f32.mxu1 %vm96_vm1, %v796_v49  ;;  %v2238_v49 = vld [vmem:[%s5879_s3 + $0xb0] sm:$0xff] }
  0x74   :  { %3729 = vmatmul.mubr.msk.f32.gmra.mrb[54].mxu0 %vm96_vm1, %v81_v50  ;;  %v1534_v50 = vld [vmem:[%s5878_s2 + $0xb8] sm:$0xff] }
  0x75   :  { %3829 = vmatmul.mubr.msk.f32.gmra.mrb[54].mxu1 %vm96_vm1, %v797_v51  ;;  %3731 = vmatprep.mubr.msk.f32.mxu0 %vm96_vm1, %v82_v52  ;;  %v2239_v51 = vld [vmem:[%s5879_s3 + $0xb8] sm:$0xff]  ;;  %v1535_v52 = vld [vmem:[%s5878_s2 + $0xc0] sm:$0xff] }
  0x76   :  { %3831 = vmatprep.mubr.msk.f32.mxu1 %vm96_vm1, %v798_v53  ;;  %v2240_v53 = vld [vmem:[%s5879_s3 + $0xc0] sm:$0xff] }
  0x78   :  { %3732 = vmatmul.mubr.msk.f32.gmra.mrb[56].mxu0 %vm96_vm1, %v83_v54  ;;  %v1536_v54 = vld [vmem:[%s5878_s2 + $0xc8] sm:$0xff] }
  0x79   :  { %3832 = vmatmul.mubr.msk.f32.gmra.mrb[56].mxu1 %vm96_vm1, %v799_v55  ;;  %3734 = vmatprep.mubr.msk.f32.mxu0 %vm96_vm1, %v84_v56  ;;  %v2241_v55 = vld [vmem:[%s5879_s3 + $0xc8] sm:$0xff]  ;;  %v1537_v56 = vld [vmem:[%s5878_s2 + $0xd0] sm:$0xff] }
  0x7a   :  { %3834 = vmatprep.mubr.msk.f32.mxu1 %vm96_vm1, %v800_v57  ;;  %v2242_v57 = vld [vmem:[%s5879_s3 + $0xd0] sm:$0xff] }
  0x7c   :  { %3735 = vmatmul.mubr.msk.f32.gmra.mrb[58].mxu0 %vm96_vm1, %v85_v58  ;;  %v1538_v58 = vld [vmem:[%s5878_s2 + $0xd8] sm:$0xff] }
  0x7d   :  { %3835 = vmatmul.mubr.msk.f32.gmra.mrb[58].mxu1 %vm96_vm1, %v801_v59  ;;  %3737 = vmatprep.mubr.msk.f32.mxu0 %vm96_vm1, %v86_v60  ;;  %v2243_v59 = vld [vmem:[%s5879_s3 + $0xd8] sm:$0xff]  ;;  %v1539_v60 = vld [vmem:[%s5878_s2 + $0xe0] sm:$0xff] }
  0x7e   :  { %3837 = vmatprep.mubr.msk.f32.mxu1 %vm96_vm1, %v802_v61  ;;  %v2244_v61 = vld [vmem:[%s5879_s3 + $0xe0] sm:$0xff] }
  0x80   :  { %3738 = vmatmul.mubr.msk.f32.gmra.mrb[60].mxu0 %vm96_vm1, %v87_v62  ;;  %v1540_v62 = vld [vmem:[%s5878_s2 + $0xe8] sm:$0xff] }
  0x81   :  { %3838 = vmatmul.mubr.msk.f32.gmra.mrb[60].mxu1 %vm96_vm1, %v803_v63  ;;  %3740 = vmatprep.mubr.msk.f32.mxu0 %vm96_vm1, %v88_v0  ;;  %v2245_v63 = vld [vmem:[%s5879_s3 + $0xe8] sm:$0xff]  ;;  %v1541_v0 = vld [vmem:[%s5878_s2 + $0xf0] sm:$0xff] }
  0x82   :  { %3840 = vmatprep.mubr.msk.f32.mxu1 %vm96_vm1, %v804_v1  ;;  %v2246_v1 = vld [vmem:[%s5879_s3 + $0xf0] sm:$0xff] }
  0x84   :  { %3741 = vmatmul.mubr.msk.f32.gmra.mrb[62].mxu0 %vm96_vm1, %v89_v2  ;;  %v1542_v2 = vld [vmem:[%s5878_s2 + $0xf8] sm:$0xff] }
  0x85   :  { %3841 = vmatmul.mubr.msk.f32.gmra.mrb[62].mxu1 %vm96_vm1, %v805_v3  ;;  %3847 = vmatprep.mubr.msk.f32.mxu0 %vm96_vm1, %v1511_v4  ;;  %v2247_v3 = vld [vmem:[%s5879_s3 + $0xf8] sm:$0xff]  ;;  %v1543_v4 = vld [vmem:[%s5878_s2 + $0x100] sm:$0xff] }
  0x86   :  { %3947 = vmatprep.mubr.msk.f32.mxu1 %vm96_vm1, %v2216_v5  ;;  %v2248_v5 = vld [vmem:[%s5879_s3 + $0x100] sm:$0xff] }
  0x88   :  { %3848 = vmatmul.mubr.msk.f32.vlgmr.msra.gmra.mrb[64].mxu0 %vm96_vm1, %v1512_v6  ;;  %v1544_v6 = vld [vmem:[%s5878_s2 + $0x108] sm:$0xff] }
  0x89   :  { %3948 = vmatmul.mubr.msk.f32.vlgmr.msra.gmra.mrb[64].mxu1 %vm96_vm1, %v2217_v7  ;;  %3850 = vmatprep.mubr.msk.f32.mxu0 %vm96_vm1, %v1513_v8  ;;  %v2249_v7 = vld [vmem:[%s5879_s3 + $0x108] sm:$0xff]  ;;  %v1545_v8 = vld [vmem:[%s5878_s2 + $0x110] sm:$0xff] }
  0x8a   :  { %3950 = vmatprep.mubr.msk.f32.mxu1 %vm96_vm1, %v2218_v9  ;;  %v2250_v9 = vld [vmem:[%s5879_s3 + $0x110] sm:$0xff] }
  0x8c   :  { %3851 = vmatmul.mubr.msk.f32.gmra.mrb[66].mxu0 %vm96_vm1, %v1514_v10  ;;  %v1546_v10 = vld [vmem:[%s5878_s2 + $0x118] sm:$0xff] }
  0x8d   :  { %3951 = vmatmul.mubr.msk.f32.gmra.mrb[66].mxu1 %vm96_vm1, %v2219_v11  ;;  %3853 = vmatprep.mubr.msk.f32.mxu0 %vm96_vm1, %v1515_v12  ;;  %v2251_v11 = vld [vmem:[%s5879_s3 + $0x118] sm:$0xff]  ;;  %v1547_v12 = vld [vmem:[%s5878_s2 + $0x120] sm:$0xff] }
  0x8e   :  { %3953 = vmatprep.mubr.msk.f32.mxu1 %vm96_vm1, %v2220_v13  ;;  %v2252_v13 = vld [vmem:[%s5879_s3 + $0x120] sm:$0xff] }
  0x90   :  { %3854 = vmatmul.mubr.msk.f32.gmra.mrb[68].mxu0 %vm96_vm1, %v1516_v14  ;;  %v1548_v14 = vld [vmem:[%s5878_s2 + $0x128] sm:$0xff] }
  0x91   :  { %3954 = vmatmul.mubr.msk.f32.gmra.mrb[68].mxu1 %vm96_vm1, %v2221_v15  ;;  %3856 = vmatprep.mubr.msk.f32.mxu0 %vm96_vm1, %v1517_v16  ;;  %v2253_v15 = vld [vmem:[%s5879_s3 + $0x128] sm:$0xff]  ;;  %v1549_v16 = vld [vmem:[%s5878_s2 + $0x130] sm:$0xff] }
  0x92   :  { %3956 = vmatprep.mubr.msk.f32.mxu1 %vm96_vm1, %v2222_v17  ;;  %v2254_v17 = vld [vmem:[%s5879_s3 + $0x130] sm:$0xff] }
  0x94   :  { %3857 = vmatmul.mubr.msk.f32.gmra.mrb[70].mxu0 %vm96_vm1, %v1518_v18  ;;  %v1550_v18 = vld [vmem:[%s5878_s2 + $0x138] sm:$0xff] }
  0x95   :  { %3957 = vmatmul.mubr.msk.f32.gmra.mrb[70].mxu1 %vm96_vm1, %v2223_v19  ;;  %3859 = vmatprep.mubr.msk.f32.mxu0 %vm96_vm1, %v1519_v20  ;;  %v2255_v19 = vld [vmem:[%s5879_s3 + $0x138] sm:$0xff]  ;;  %v1551_v20 = vld [vmem:[%s5878_s2 + $0x140] sm:$0xff] }
  0x96   :  { %3959 = vmatprep.mubr.msk.f32.mxu1 %vm96_vm1, %v2224_v21  ;;  %v2256_v21 = vld [vmem:[%s5879_s3 + $0x140] sm:$0xff] }
  0x98   :  { %3860 = vmatmul.mubr.msk.f32.gmra.mrb[72].mxu0 %vm96_vm1, %v1520_v22  ;;  %v1552_v22 = vld [vmem:[%s5878_s2 + $0x148] sm:$0xff] }
  0x99   :  { %3960 = vmatmul.mubr.msk.f32.gmra.mrb[72].mxu1 %vm96_vm1, %v2225_v23  ;;  %3862 = vmatprep.mubr.msk.f32.mxu0 %vm96_vm1, %v1521_v24  ;;  %v2257_v23 = vld [vmem:[%s5879_s3 + $0x148] sm:$0xff]  ;;  %v1553_v24 = vld [vmem:[%s5878_s2 + $0x150] sm:$0xff] }
  0x9a   :  { %3962 = vmatprep.mubr.msk.f32.mxu1 %vm96_vm1, %v2226_v25  ;;  %v2258_v25 = vld [vmem:[%s5879_s3 + $0x150] sm:$0xff] }
  0x9c   :  { %3863 = vmatmul.mubr.msk.f32.gmra.mrb[74].mxu0 %vm96_vm1, %v1522_v26  ;;  %v4989_v26 = vld [vmem:[%s5880_s5] ss:$0 sm:$0xff] }
  0x9d   :  { %3963 = vmatmul.mubr.msk.f32.gmra.mrb[74].mxu1 %vm96_vm1, %v2227_v27  ;;  %3865 = vmatprep.mubr.msk.f32.mxu0 %vm96_vm1, %v1523_v28  ;;  %v1554_v27 = vld [vmem:[%s5878_s2 + $0x158] sm:$0xff] }
  0x9e   :  { %3965 = vmatprep.mubr.msk.f32.mxu1 %vm96_vm1, %v2228_v29  ;;  %v2259_v28 = vld [vmem:[%s5879_s3 + $0x158] sm:$0xff]  ;;  %v1555_v29 = vld [vmem:[%s5878_s2 + $0x160] sm:$0xff] }
  0xa0   :  { %3866 = vmatmul.mubr.msk.f32.gmra.mrb[76].mxu0 %vm96_vm1, %v1524_v30  ;;  %v2260_v30 = vld [vmem:[%s5879_s3 + $0x160] sm:$0xff] }
  0xa1   :  { %3966 = vmatmul.mubr.msk.f32.gmra.mrb[76].mxu1 %vm96_vm1, %v2229_v31  ;;  %3868 = vmatprep.mubr.msk.f32.mxu0 %vm96_vm1, %v1525_v32 }
  0xa2   :  { %3968 = vmatprep.mubr.msk.f32.mxu1 %vm96_vm1, %v2230_v33 }
  0xa4   :  { %3869 = vmatmul.mubr.msk.f32.gmra.mrb[78].mxu0 %vm96_vm1, %v1526_v34 }
  0xa5   :  { %3969 = vmatmul.mubr.msk.f32.gmra.mrb[78].mxu1 %vm96_vm1, %v2231_v35  ;;  %3871 = vmatprep.mubr.msk.f32.mxu0 %vm96_vm1, %v1527_v36 }
  0xa6   :  { %3971 = vmatprep.mubr.msk.f32.mxu1 %vm96_vm1, %v2232_v37 }
  0xa8   :  { %3872 = vmatmul.mubr.msk.f32.gmra.mrb[80].mxu0 %vm96_vm1, %v1528_v38 }
  0xa9   :  { %3972 = vmatmul.mubr.msk.f32.gmra.mrb[80].mxu1 %vm96_vm1, %v2233_v39  ;;  %3874 = vmatprep.mubr.msk.f32.mxu0 %vm96_vm1, %v1529_v40  ;;  %v1556_v39 = vld [vmem:[%s5878_s2 + $0x168] sm:$0xff] }
  0xaa   :  { %3974 = vmatprep.mubr.msk.f32.mxu1 %vm96_vm1, %v2234_v41  ;;  %v2261_v40 = vld [vmem:[%s5879_s3 + $0x168] sm:$0xff] }
  0xac   :  { %3875 = vmatmul.mubr.msk.f32.gmra.mrb[82].mxu0 %vm96_vm1, %v1530_v42 }
  0xad   :  { %3975 = vmatmul.mubr.msk.f32.gmra.mrb[82].mxu1 %vm96_vm1, %v2235_v43  ;;  %3877 = vmatprep.mubr.msk.f32.mxu0 %vm96_vm1, %v1531_v44  ;;  %v1557_v43 = vld [vmem:[%s5878_s2 + $0x170] sm:$0xff] }
  0xae   :  { %3977 = vmatprep.mubr.msk.f32.mxu1 %vm96_vm1, %v2236_v45  ;;  %v2262_v44 = vld [vmem:[%s5879_s3 + $0x170] sm:$0xff] }
  0xb0   :  { %3878 = vmatmul.mubr.msk.f32.gmra.mrb[84].mxu0 %vm96_vm1, %v1532_v46 }
  0xb1   :  { %3978 = vmatmul.mubr.msk.f32.gmra.mrb[84].mxu1 %vm96_vm1, %v2237_v47  ;;  %3880 = vmatprep.mubr.msk.f32.mxu0 %vm96_vm1, %v1533_v48 }
  0xb2   :  { %3980 = vmatprep.mubr.msk.f32.mxu1 %vm96_vm1, %v2238_v49 }
  0xb4   :  { %3881 = vmatmul.mubr.msk.f32.gmra.mrb[86].mxu0 %vm96_vm1, %v1534_v50 }
  0xb5   :  { %3981 = vmatmul.mubr.msk.f32.gmra.mrb[86].mxu1 %vm96_vm1, %v2239_v51  ;;  %3883 = vmatprep.mubr.msk.f32.mxu0 %vm96_vm1, %v1535_v52 }
  0xb6   :  { %3983 = vmatprep.mubr.msk.f32.mxu1 %vm96_vm1, %v2240_v53 }
  0xb8   :  { %3884 = vmatmul.mubr.msk.f32.gmra.mrb[88].mxu0 %vm96_vm1, %v1536_v54 }
  0xb9   :  { %3984 = vmatmul.mubr.msk.f32.gmra.mrb[88].mxu1 %vm96_vm1, %v2241_v55  ;;  %3886 = vmatprep.mubr.msk.f32.mxu0 %vm96_vm1, %v1537_v56 }
  0xba   :  { %3986 = vmatprep.mubr.msk.f32.mxu1 %vm96_vm1, %v2242_v57  ;;  %v1558_v57 = vld [vmem:[%s5878_s2 + $0x178] sm:$0xff] }
  0xbc   :  { %3887 = vmatmul.mubr.msk.f32.gmra.mrb[90].mxu0 %vm96_vm1, %v1538_v58  ;;  %v2263_v58 = vld [vmem:[%s5879_s3 + $0x178] sm:$0xff] }
  0xbd   :  { %3987 = vmatmul.mubr.msk.f32.gmra.mrb[90].mxu1 %vm96_vm1, %v2243_v59  ;;  %3889 = vmatprep.mubr.msk.f32.mxu0 %vm96_vm1, %v1539_v60 }
  0xbe   :  { %3989 = vmatprep.mubr.msk.f32.mxu1 %vm96_vm1, %v2244_v61  ;;  %v1559_v61 = vld [vmem:[%s5878_s2 + $0x180] sm:$0xff] }
  0xc0   :  { %3890 = vmatmul.mubr.msk.f32.gmra.mrb[92].mxu0 %vm96_vm1, %v1540_v62  ;;  %v2264_v62 = vld [vmem:[%s5879_s3 + $0x180] sm:$0xff] }
  0xc1   :  { %3990 = vmatmul.mubr.msk.f32.gmra.mrb[92].mxu1 %vm96_vm1, %v2245_v63  ;;  %3892 = vmatprep.mubr.msk.f32.mxu0 %vm96_vm1, %v1541_v0 }
  0xc2   :  { %3992 = vmatprep.mubr.msk.f32.mxu1 %vm96_vm1, %v2246_v1 }
  0xc4   :  { %3893 = vmatmul.mubr.msk.f32.gmra.mrb[94].mxu0 %vm96_vm1, %v1542_v2 }
  0xc5   :  { %3993 = vmatmul.mubr.msk.f32.gmra.mrb[94].mxu1 %vm96_vm1, %v2247_v3  ;;  %3895 = vmatprep.mubr.msk.f32.mxu0 %vm96_vm1, %v1543_v4 }
  0xc6   :  { %3995 = vmatprep.mubr.msk.f32.mxu1 %vm96_vm1, %v2248_v5 }
  0xc8   :  { %3896 = vmatmul.mubr.msk.f32.gmra.mrb[96].mxu0 %vm96_vm1, %v1544_v6 }
  0xc9   :  { %3996 = vmatmul.mubr.msk.f32.gmra.mrb[96].mxu1 %vm96_vm1, %v2249_v7  ;;  %3898 = vmatprep.mubr.msk.f32.mxu0 %vm96_vm1, %v1545_v8 }
  0xca   :  { %3998 = vmatprep.mubr.msk.f32.mxu1 %vm96_vm1, %v2250_v9 }
  0xcc   :  { %3899 = vmatmul.mubr.msk.f32.gmra.mrb[98].mxu0 %vm96_vm1, %v1546_v10 }
  0xcd   :  { %3999 = vmatmul.mubr.msk.f32.gmra.mrb[98].mxu1 %vm96_vm1, %v2251_v11  ;;  %3901 = vmatprep.mubr.msk.f32.mxu0 %vm96_vm1, %v1547_v12  ;;  %v1560_v11 = vld [vmem:[%s5878_s2 + $0x188] sm:$0xff] }
  0xce   :  { %4001 = vmatprep.mubr.msk.f32.mxu1 %vm96_vm1, %v2252_v13  ;;  %v2265_v12 = vld [vmem:[%s5879_s3 + $0x188] sm:$0xff] }
  0xd0   :  { %3902 = vmatmul.mubr.msk.f32.gmra.mrb[100].mxu0 %vm96_vm1, %v1548_v14 }
  0xd1   :  { %4002 = vmatmul.mubr.msk.f32.gmra.mrb[100].mxu1 %vm96_vm1, %v2253_v15  ;;  %3904 = vmatprep.mubr.msk.f32.mxu0 %vm96_vm1, %v1549_v16  ;;  %v1561_v15 = vld [vmem:[%s5878_s2 + $0x190] sm:$0xff] }
  0xd2   :  { %4004 = vmatprep.mubr.msk.f32.mxu1 %vm96_vm1, %v2254_v17  ;;  %v2266_v16 = vld [vmem:[%s5879_s3 + $0x190] sm:$0xff] }
  0xd4   :  { %3905 = vmatmul.mubr.msk.f32.gmra.mrb[102].mxu0 %vm96_vm1, %v1550_v18 }
  0xd5   :  { %4005 = vmatmul.mubr.msk.f32.gmra.mrb[102].mxu1 %vm96_vm1, %v2255_v19  ;;  %3907 = vmatprep.mubr.msk.f32.mxu0 %vm96_vm1, %v1551_v20 }
  0xd6   :  { %4007 = vmatprep.mubr.msk.f32.mxu1 %vm96_vm1, %v2256_v21 }
  0xd8   :  { %3908 = vmatmul.mubr.msk.f32.gmra.mrb[104].mxu0 %vm96_vm1, %v1552_v22 }
  0xd9   :  { %4008 = vmatmul.mubr.msk.f32.gmra.mrb[104].mxu1 %vm96_vm1, %v2257_v23  ;;  %3910 = vmatprep.mubr.msk.f32.mxu0 %vm96_vm1, %v1553_v24 }
  0xda   :  { %4010 = vmatprep.mubr.msk.f32.mxu1 %vm96_vm1, %v2258_v25 }
  0xdb   :  { %v3649_v31 = vpop.f32.mrb[0].mxu0 }
  0xdc   :  { %v3749_v32 = vpop.f32.mrb[0].mxu1  ;;  %v365_v33 = vadd.f32 %v3649_v31, %v4989_v26  ;;  %v359_v35 = vpop.f32.mrb[1].mxu0  ;;  %3911 = vmatmul.mubr.msk.f32.gmra.mrb[106].mxu0 %vm96_vm1, %v1554_v27  ;;  %v2267_v31 = vld [vmem:[%s5879_s3 + $0x198] sm:$0xff] }
  0xdd   :  { %v1070_v34 = vadd.f32 %v3749_v32, %v4989_v26  ;;  %v1064_v36 = vpop.f32.mrb[1].mxu1  ;;  %4011 = vmatmul.mubr.msk.f32.gmra.mrb[106].mxu1 %vm96_vm1, %v2259_v28  ;;  %v360_v37 = vadd.f32 %v4989_v26, %v359_v35  ;;  %3913 = vmatprep.mubr.msk.f32.mxu0 %vm96_vm1, %v1555_v29  ;;  %v2268_v35 = vld [vmem:[%s5879_s3 + $0x1a0] sm:$0xff] }
  0xde   :  { %v1065_v38 = vadd.f32 %v4989_v26, %v1064_v36  ;;  %4013 = vmatprep.mubr.msk.f32.mxu1 %vm96_vm1, %v2260_v30  ;;  %v679_v41 = vmax.f32 %v365_v33, 0.0  ;;  %v1562_v30 = vld [vmem:[%s5878_s2 + $0x198] sm:$0xff] }
  0xdf   :  { %v1384_v42 = vmax.f32 %v1070_v34, 0.0  ;;  %v678_v45 = vmax.f32 %v360_v37, 0.0  ;;  %v3652_v47 = vpop.f32.mrb[2].mxu0  ;;  %v1563_v34 = vld [vmem:[%s5878_s2 + $0x1a0] sm:$0xff] }
  0xe0   :  { %v1383_v46 = vmax.f32 %v1065_v38, 0.0  ;;  %v3752_v48 = vpop.f32.mrb[2].mxu1  ;;  %v375_v50 = vadd.f32 %v3652_v47, %v4989_v26  ;;  %v369_v52 = vpop.f32.mrb[3].mxu0  ;;  %3914 = vmatmul.mubr.msk.f32.gmra.mrb[108].mxu0 %vm96_vm1, %v1556_v39 }
  0xe1   :  { %v5025_v49 = vmax.f32 %v679_v41, %v1384_v42  ;;  %v1080_v51 = vadd.f32 %v3752_v48, %v4989_v26  ;;  %v1074_v53 = vpop.f32.mrb[3].mxu1  ;;  %4014 = vmatmul.mubr.msk.f32.gmra.mrb[108].mxu1 %vm96_vm1, %v2261_v40  ;;  %v370_v55 = vadd.f32 %v4989_v26, %v369_v52  ;;  %3916 = vmatprep.mubr.msk.f32.mxu0 %vm96_vm1, %v1557_v43  ;;  %v1564_v48 = vld [vmem:[%s5878_s2 + $0x1a8] sm:$0xff] }
  0xe2   :  { %v5031_v54 = vmax.f32 %v678_v45, %v1383_v46  ;;  %v1075_v56 = vadd.f32 %v4989_v26, %v1074_v53  ;;  %4016 = vmatprep.mubr.msk.f32.mxu1 %vm96_vm1, %v2262_v44  ;;  %v681_v59 = vmax.f32 %v375_v50, 0.0  ;;  %v2269_v50 = vld [vmem:[%s5879_s3 + $0x1a8] sm:$0xff]  ;;  %v1565_v53 = vld [vmem:[%s5878_s2 + $0x1b0] sm:$0xff] }
  0xe3   :  { %v1386_v60 = vmax.f32 %v1080_v51, 0.0  ;;  %v680_v63 = vmax.f32 %v370_v55, 0.0  ;;  %v3655_v1 = vpop.f32.mrb[4].mxu0  ;;  %v2270_v55 = vld [vmem:[%s5879_s3 + $0x1b0] sm:$0xff] }
  0xe4   :  { %v1385_v0 = vmax.f32 %v1075_v56, 0.0  ;;  %v3755_v2 = vpop.f32.mrb[4].mxu1  ;;  %v385_v4 = vadd.f32 %v3655_v1, %v4989_v26  ;;  %v379_v6 = vpop.f32.mrb[5].mxu0  ;;  %3917 = vmatmul.mubr.msk.f32.gmra.mrb[110].mxu0 %vm96_vm1, %v1558_v57 }
  0xe5   :  { %v5049_v3 = vmax.f32 %v681_v59, %v1386_v60  ;;  %v1090_v5 = vadd.f32 %v3755_v2, %v4989_v26  ;;  %v1084_v7 = vpop.f32.mrb[5].mxu1  ;;  %4017 = vmatmul.mubr.msk.f32.gmra.mrb[110].mxu1 %vm96_vm1, %v2263_v58  ;;  %v380_v9 = vadd.f32 %v4989_v26, %v379_v6  ;;  %3919 = vmatprep.mubr.msk.f32.mxu0 %vm96_vm1, %v1559_v61  ;;  %v2271_v6 = vld [vmem:[%s5879_s3 + $0x1b8] sm:$0xff] }
  0xe6   :  { %v5055_v8 = vmax.f32 %v680_v63, %v1385_v0  ;;  %v1085_v10 = vadd.f32 %v4989_v26, %v1084_v7  ;;  %4019 = vmatprep.mubr.msk.f32.mxu1 %vm96_vm1, %v2264_v62  ;;  %v683_v13 = vmax.f32 %v385_v4, 0.0 }
  0xe7   :  { %v1388_v14 = vmax.f32 %v1090_v5, 0.0  ;;  %v682_v17 = vmax.f32 %v380_v9, 0.0  ;;  %v3658_v19 = vpop.f32.mrb[6].mxu0  ;;  %v1566_v5 = vld [vmem:[%s5878_s2 + $0x1b8] sm:$0xff] }
  0xe8   :  { %v1387_v18 = vmax.f32 %v1085_v10, 0.0  ;;  %v3758_v20 = vpop.f32.mrb[6].mxu1  ;;  %v395_v22 = vadd.f32 %v3658_v19, %v4989_v26  ;;  %v389_v24 = vpop.f32.mrb[7].mxu0  ;;  %3920 = vmatmul.mubr.msk.f32.gmra.mrb[112].mxu0 %vm96_vm1, %v1560_v11  ;;  %v1567_v10 = vld [vmem:[%s5878_s2 + $0x1c0] sm:$0xff] }
  0xe9   :  { %v5073_v21 = vmax.f32 %v683_v13, %v1388_v14  ;;  %v1100_v23 = vadd.f32 %v3758_v20, %v4989_v26  ;;  %v1094_v25 = vpop.f32.mrb[7].mxu1  ;;  %4020 = vmatmul.mubr.msk.f32.gmra.mrb[112].mxu1 %vm96_vm1, %v2265_v12  ;;  %v390_v28 = vadd.f32 %v4989_v26, %v389_v24  ;;  %3922 = vmatprep.mubr.msk.f32.mxu0 %vm96_vm1, %v1561_v15  ;;  %v2272_v11 = vld [vmem:[%s5879_s3 + $0x1c0] sm:$0xff] }
  0xea   :  { %v5079_v27 = vmax.f32 %v682_v17, %v1387_v18  ;;  %v1095_v29 = vadd.f32 %v4989_v26, %v1094_v25  ;;  %4022 = vmatprep.mubr.msk.f32.mxu1 %vm96_vm1, %v2266_v16  ;;  %v685_v32 = vmax.f32 %v395_v22, 0.0  ;;  %v1568_v25 = vld [vmem:[%s5878_s2 + $0x1c8] sm:$0xff] }
  0xeb   :  { %v1390_v33 = vmax.f32 %v1100_v23, 0.0  ;;  %v684_v36 = vmax.f32 %v390_v28, 0.0  ;;  %v3661_v38 = vpop.f32.mrb[8].mxu0  ;;  %v2273_v28 = vld [vmem:[%s5879_s3 + $0x1c8] sm:$0xff] }
  0xec   :  { %v1389_v37 = vmax.f32 %v1095_v29, 0.0  ;;  %v3761_v39 = vpop.f32.mrb[8].mxu1  ;;  %v405_v41 = vadd.f32 %v3661_v38, %v4989_v26  ;;  %v399_v43 = vpop.f32.mrb[9].mxu0  ;;  %3923 = vmatmul.mubr.msk.f32.gmra.mrb[114].mxu0 %vm96_vm1, %v1562_v30 }
  0xed   :  { %v5097_v40 = vmax.f32 %v685_v32, %v1390_v33  ;;  %v1110_v42 = vadd.f32 %v3761_v39, %v4989_v26  ;;  %v1104_v44 = vpop.f32.mrb[9].mxu1  ;;  %4023 = vmatmul.mubr.msk.f32.gmra.mrb[114].mxu1 %vm96_vm1, %v2267_v31  ;;  %v400_v46 = vadd.f32 %v4989_v26, %v399_v43  ;;  %3925 = vmatprep.mubr.msk.f32.mxu0 %vm96_vm1, %v1563_v34  ;;  %v1569_v31 = vld [vmem:[%s5878_s2 + $0x1d0] sm:$0xff] }
  0xee   :  { %v5103_v45 = vmax.f32 %v684_v36, %v1389_v37  ;;  %v1105_v47 = vadd.f32 %v4989_v26, %v1104_v44  ;;  %4025 = vmatprep.mubr.msk.f32.mxu1 %vm96_vm1, %v2268_v35  ;;  %v687_v51 = vmax.f32 %v405_v41, 0.0  ;;  %v2274_v32 = vld [vmem:[%s5879_s3 + $0x1d0] sm:$0xff] }
  0xef   :  { %v1392_v52 = vmax.f32 %v1110_v42, 0.0  ;;  %v686_v56 = vmax.f32 %v400_v46, 0.0  ;;  %v3664_v58 = vpop.f32.mrb[10].mxu0 }
  0xf0   :  { %v1391_v57 = vmax.f32 %v1105_v47, 0.0  ;;  %v3764_v59 = vpop.f32.mrb[10].mxu1  ;;  %v415_v61 = vadd.f32 %v3664_v58, %v4989_v26  ;;  %v409_v63 = vpop.f32.mrb[11].mxu0  ;;  %3926 = vmatmul.mubr.msk.f32.gmra.mrb[116].mxu0 %vm96_vm1, %v1564_v48  ;;  %v1570_v47 = vld [vmem:[%s5878_s2 + $0x1d8] sm:$0xff] }
  0xf1   :  { %v5121_v60 = vmax.f32 %v687_v51, %v1392_v52  ;;  %v1120_v62 = vadd.f32 %v3764_v59, %v4989_v26  ;;  %v1114_v0 = vpop.f32.mrb[11].mxu1  ;;  %4026 = vmatmul.mubr.msk.f32.gmra.mrb[116].mxu1 %vm96_vm1, %v2269_v50  ;;  %v410_v2 = vadd.f32 %v4989_v26, %v409_v63  ;;  %3928 = vmatprep.mubr.msk.f32.mxu0 %vm96_vm1, %v1565_v53  ;;  %v2275_v48 = vld [vmem:[%s5879_s3 + $0x1d8] sm:$0xff]  ;;  %v1571_v52 = vld [vmem:[%s5878_s2 + $0x1e0] sm:$0xff] }
  0xf2   :  { %v5127_v1 = vmax.f32 %v686_v56, %v1391_v57  ;;  %v1115_v4 = vadd.f32 %v4989_v26, %v1114_v0  ;;  %4028 = vmatprep.mubr.msk.f32.mxu1 %vm96_vm1, %v2270_v55  ;;  %v689_v7 = vmax.f32 %v415_v61, 0.0  ;;  %v2276_v53 = vld [vmem:[%s5879_s3 + $0x1e0] sm:$0xff] }
  0xf3   :  { %v1394_v9 = vmax.f32 %v1120_v62, 0.0  ;;  %v688_v12 = vmax.f32 %v410_v2, 0.0  ;;  %v3667_v14 = vpop.f32.mrb[12].mxu0 }
  0xf4   :  { %v1393_v13 = vmax.f32 %v1115_v4, 0.0  ;;  %v3767_v15 = vpop.f32.mrb[12].mxu1  ;;  %v425_v17 = vadd.f32 %v3667_v14, %v4989_v26  ;;  %v419_v19 = vpop.f32.mrb[13].mxu0  ;;  %3929 = vmatmul.mubr.msk.f32.gmra.mrb[118].mxu0 %vm96_vm1, %v1566_v5 }
  0xf5   :  { %v5145_v16 = vmax.f32 %v689_v7, %v1394_v9  ;;  %v1130_v18 = vadd.f32 %v3767_v15, %v4989_v26  ;;  %v1124_v20 = vpop.f32.mrb[13].mxu1  ;;  %4029 = vmatmul.mubr.msk.f32.gmra.mrb[118].mxu1 %vm96_vm1, %v2271_v6  ;;  %v420_v23 = vadd.f32 %v4989_v26, %v419_v19  ;;  %3931 = vmatprep.mubr.msk.f32.mxu0 %vm96_vm1, %v1567_v10  ;;  %v1572_v6 = vld [vmem:[%s5878_s2 + $0x1e8] sm:$0xff] }
  0xf6   :  { %v5151_v22 = vmax.f32 %v688_v12, %v1393_v13  ;;  %v1125_v24 = vadd.f32 %v4989_v26, %v1124_v20  ;;  %4031 = vmatprep.mubr.msk.f32.mxu1 %vm96_vm1, %v2272_v11  ;;  %v691_v29 = vmax.f32 %v425_v17, 0.0  ;;  %v2277_v7 = vld [vmem:[%s5879_s3 + $0x1e8] sm:$0xff]  ;;  %v1573_v11 = vld [vmem:[%s5878_s2 + $0x1f0] sm:$0xff] }
  0xf7   :  { %v1396_v30 = vmax.f32 %v1130_v18, 0.0  ;;  %v690_v33 = vmax.f32 %v420_v23, 0.0  ;;  %v3670_v35 = vpop.f32.mrb[14].mxu0  ;;  %v2278_v12 = vld [vmem:[%s5879_s3 + $0x1f0] sm:$0xff] }
  0xf8   :  { %v1395_v34 = vmax.f32 %v1125_v24, 0.0  ;;  %v3770_v36 = vpop.f32.mrb[14].mxu1  ;;  %v435_v38 = vadd.f32 %v3670_v35, %v4989_v26  ;;  %v429_v41 = vpop.f32.mrb[15].mxu0  ;;  %3932 = vmatmul.mubr.msk.f32.gmra.mrb[120].mxu0 %vm96_vm1, %v1568_v25 }
  0xf9   :  { %v5169_v37 = vmax.f32 %v691_v29, %v1396_v30  ;;  %v1140_v39 = vadd.f32 %v3770_v36, %v4989_v26  ;;  %v1134_v42 = vpop.f32.mrb[15].mxu1  ;;  %4032 = vmatmul.mubr.msk.f32.gmra.mrb[120].mxu1 %vm96_vm1, %v2273_v28  ;;  %v430_v44 = vadd.f32 %v4989_v26, %v429_v41  ;;  %3934 = vmatprep.mubr.msk.f32.mxu0 %vm96_vm1, %v1569_v31  ;;  %v1574_v30 = vld [vmem:[%s5878_s2 + $0x1f8] sm:$0xff] }
  0xfa   :  { %v5175_v43 = vmax.f32 %v690_v33, %v1395_v34  ;;  %v1135_v46 = vadd.f32 %v4989_v26, %v1134_v42  ;;  %4034 = vmatprep.mubr.msk.f32.mxu1 %vm96_vm1, %v2274_v32  ;;  %v693_v50 = vmax.f32 %v435_v38, 0.0  ;;  %v2279_v31 = vld [vmem:[%s5879_s3 + $0x1f8] sm:$0xff] }
  0xfb   :  { %v1398_v51 = vmax.f32 %v1140_v39, 0.0  ;;  %v692_v55 = vmax.f32 %v430_v44, 0.0  ;;  %v3673_v57 = vpop.f32.mrb[16].mxu0 }
  0xfc   :  { %v1397_v56 = vmax.f32 %v1135_v46, 0.0  ;;  %v3773_v58 = vpop.f32.mrb[16].mxu1  ;;  %v445_v61 = vadd.f32 %v3673_v57, %v4989_v26  ;;  %v439_v63 = vpop.f32.mrb[17].mxu0  ;;  %3935 = vmatmul.mubr.msk.f32.gmra.mrb[122].mxu0 %vm96_vm1, %v1570_v47 }
  0xfd   :  { %v5193_v59 = vmax.f32 %v693_v50, %v1398_v51  ;;  %v1150_v62 = vadd.f32 %v3773_v58, %v4989_v26  ;;  %v1144_v0 = vpop.f32.mrb[17].mxu1  ;;  %4035 = vmatmul.mubr.msk.f32.gmra.mrb[122].mxu1 %vm96_vm1, %v2275_v48  ;;  %v440_v4 = vadd.f32 %v4989_v26, %v439_v63  ;;  %3937 = vmatprep.mubr.msk.f32.mxu0 %vm96_vm1, %v1571_v52 }
  0xfe   :  { %v5199_v2 = vmax.f32 %v692_v55, %v1397_v56  ;;  %v1145_v5 = vadd.f32 %v4989_v26, %v1144_v0  ;;  %4037 = vmatprep.mubr.msk.f32.mxu1 %vm96_vm1, %v2276_v53  ;;  %v695_v9 = vmax.f32 %v445_v61, 0.0 }
  0xff   :  { %v1400_v10 = vmax.f32 %v1150_v62, 0.0  ;;  %v694_v13 = vmax.f32 %v440_v4, 0.0  ;;  %v3676_v15 = vpop.f32.mrb[18].mxu0 }
 0x100   :  { %v1399_v14 = vmax.f32 %v1145_v5, 0.0  ;;  %v3776_v17 = vpop.f32.mrb[18].mxu1  ;;  %v455_v19 = vadd.f32 %v3676_v15, %v4989_v26  ;;  %v449_v23 = vpop.f32.mrb[19].mxu0  ;;  %3938 = vmatmul.mubr.msk.f32.gmra.mrb[124].mxu0 %vm96_vm1, %v1572_v6 }
 0x101   :  { %v5217_v18 = vmax.f32 %v695_v9, %v1400_v10  ;;  %v1160_v20 = vadd.f32 %v3776_v17, %v4989_v26  ;;  %v1154_v24 = vpop.f32.mrb[19].mxu1  ;;  %4038 = vmatmul.mubr.msk.f32.gmra.mrb[124].mxu1 %vm96_vm1, %v2277_v7  ;;  %v450_v28 = vadd.f32 %v4989_v26, %v449_v23  ;;  %3940 = vmatprep.mubr.msk.f32.mxu0 %vm96_vm1, %v1573_v11 }
 0x102   :  { %v5223_v25 = vmax.f32 %v694_v13, %v1399_v14  ;;  %v1155_v29 = vadd.f32 %v4989_v26, %v1154_v24  ;;  %4040 = vmatprep.mubr.msk.f32.mxu1 %vm96_vm1, %v2278_v12  ;;  %v697_v32 = vmax.f32 %v455_v19, 0.0 }
 0x103   :  { %v1402_v33 = vmax.f32 %v1160_v20, 0.0  ;;  %v696_v34 = vmax.f32 %v450_v28, 0.0  ;;  %v3679_v36 = vpop.f32.mrb[20].mxu0 }
 0x104   :  { %v1401_v35 = vmax.f32 %v1155_v29, 0.0  ;;  %v3779_v38 = vpop.f32.mrb[20].mxu1  ;;  %v465_v41 = vadd.f32 %v3679_v36, %v4989_v26  ;;  %v459_v44 = vpop.f32.mrb[21].mxu0  ;;  %3941 = vmatmul.mubr.msk.f32.gmra.mrb[126].mxu0 %vm96_vm1, %v1574_v30 }
 0x105   :  { %v5235_v39 = vmax.f32 %v697_v32, %v1402_v33  ;;  %v1170_v42 = vadd.f32 %v3779_v38, %v4989_v26  ;;  %v1164_v46 = vpop.f32.mrb[21].mxu1  ;;  %4041 = vmatmul.mubr.msk.f32.gmra.mrb[126].mxu1 %vm96_vm1, %v2279_v31  ;;  %v460_v48 = vadd.f32 %v4989_v26, %v459_v44 }
 0x106   :  { %v5241_v47 = vmax.f32 %v696_v34, %v1401_v35  ;;  %v1165_v50 = vadd.f32 %v4989_v26, %v1164_v46  ;;  %v699_v51 = vmax.f32 %v465_v41, 0.0 }
 0x107   :  { %v1404_v52 = vmax.f32 %v1170_v42, 0.0  ;;  %v698_v53 = vmax.f32 %v460_v48, 0.0  ;;  %v3682_v56 = vpop.f32.mrb[22].mxu0 }
 0x108   :  { %v1403_v55 = vmax.f32 %v1165_v50, 0.0  ;;  %v3782_v57 = vpop.f32.mrb[22].mxu1  ;;  %v475_v61 = vadd.f32 %v3682_v56, %v4989_v26  ;;  %v469_v63 = vpop.f32.mrb[23].mxu0 }
 0x109   :  { %v5245_v58 = vmax.f32 %v699_v51, %v1404_v52  ;;  %v1180_v62 = vadd.f32 %v3782_v57, %v4989_v26  ;;  %v1174_v0 = vpop.f32.mrb[23].mxu1  ;;  %v470_v5 = vadd.f32 %v4989_v26, %v469_v63 }
 0x10a   :  { %v5249_v4 = vmax.f32 %v698_v53, %v1403_v55  ;;  %v1175_v6 = vadd.f32 %v4989_v26, %v1174_v0  ;;  %v701_v7 = vmax.f32 %v475_v61, 0.0 }
 0x10b   :  { %v1406_v9 = vmax.f32 %v1180_v62, 0.0  ;;  %v700_v10 = vmax.f32 %v470_v5, 0.0  ;;  %v3685_v12 = vpop.f32.mrb[24].mxu0 }
 0x10c   :  { %v1405_v11 = vmax.f32 %v1175_v6, 0.0  ;;  %v3785_v13 = vpop.f32.mrb[24].mxu1  ;;  %v485_v15 = vadd.f32 %v3685_v12, %v4989_v26  ;;  %v479_v19 = vpop.f32.mrb[25].mxu0 }
 0x10d   :  { %v5253_v14 = vmax.f32 %v701_v7, %v1406_v9  ;;  %v1190_v17 = vadd.f32 %v3785_v13, %v4989_v26  ;;  %v1184_v20 = vpop.f32.mrb[25].mxu1  ;;  %v480_v24 = vadd.f32 %v4989_v26, %v479_v19 }
 0x10e   :  { %v5257_v23 = vmax.f32 %v700_v10, %v1405_v11  ;;  %v1185_v28 = vadd.f32 %v4989_v26, %v1184_v20  ;;  %v703_v29 = vmax.f32 %v485_v15, 0.0 }
 0x10f   :  { %v1408_v30 = vmax.f32 %v1190_v17, 0.0  ;;  %v702_v31 = vmax.f32 %v480_v24, 0.0  ;;  %v3688_v33 = vpop.f32.mrb[26].mxu0 }
 0x110   :  { %v1407_v32 = vmax.f32 %v1185_v28, 0.0  ;;  %v3788_v34 = vpop.f32.mrb[26].mxu1  ;;  %v495_v36 = vadd.f32 %v3688_v33, %v4989_v26  ;;  %v489_v41 = vpop.f32.mrb[27].mxu0 }
 0x111   :  { %v5261_v35 = vmax.f32 %v703_v29, %v1408_v30  ;;  %v1200_v38 = vadd.f32 %v3788_v34, %v4989_v26  ;;  %v1194_v42 = vpop.f32.mrb[27].mxu1  ;;  %v490_v46 = vadd.f32 %v4989_v26, %v489_v41 }
 0x112   :  { %v5265_v44 = vmax.f32 %v702_v31, %v1407_v32  ;;  %v1195_v48 = vadd.f32 %v4989_v26, %v1194_v42  ;;  %v705_v50 = vmax.f32 %v495_v36, 0.0 }
 0x113   :  { %v1410_v51 = vmax.f32 %v1200_v38, 0.0  ;;  %v704_v52 = vmax.f32 %v490_v46, 0.0  ;;  %v3691_v55 = vpop.f32.mrb[28].mxu0 }
 0x114   :  { %v1409_v53 = vmax.f32 %v1195_v48, 0.0  ;;  %v3791_v56 = vpop.f32.mrb[28].mxu1  ;;  %v505_v61 = vadd.f32 %v3691_v55, %v4989_v26  ;;  %v499_v63 = vpop.f32.mrb[29].mxu0 }
 0x115   :  { %v5269_v57 = vmax.f32 %v705_v50, %v1410_v51  ;;  %v1210_v62 = vadd.f32 %v3791_v56, %v4989_v26  ;;  %v1204_v0 = vpop.f32.mrb[29].mxu1  ;;  %v500_v6 = vadd.f32 %v4989_v26, %v499_v63 }
 0x116   :  { %v5273_v5 = vmax.f32 %v704_v52, %v1409_v53  ;;  %v1205_v7 = vadd.f32 %v4989_v26, %v1204_v0  ;;  %v707_v9 = vmax.f32 %v505_v61, 0.0 }
 0x117   :  { %v1412_v10 = vmax.f32 %v1210_v62, 0.0  ;;  %v706_v11 = vmax.f32 %v500_v6, 0.0  ;;  %v3694_v13 = vpop.f32.mrb[30].mxu0 }
 0x118   :  { %v1411_v12 = vmax.f32 %v1205_v7, 0.0  ;;  %v3794_v15 = vpop.f32.mrb[30].mxu1  ;;  %v515_v19 = vadd.f32 %v3694_v13, %v4989_v26  ;;  %v509_v24 = vpop.f32.mrb[31].mxu0 }
 0x119   :  { %v5277_v17 = vmax.f32 %v707_v9, %v1412_v10  ;;  %v1220_v20 = vadd.f32 %v3794_v15, %v4989_v26  ;;  %v1214_v28 = vpop.f32.mrb[31].mxu1  ;;  %v510_v30 = vadd.f32 %v4989_v26, %v509_v24 }
 0x11a   :  { %v5281_v29 = vmax.f32 %v706_v11, %v1411_v12  ;;  %v1215_v31 = vadd.f32 %v4989_v26, %v1214_v28  ;;  %v709_v32 = vmax.f32 %v515_v19, 0.0 }
 0x11b   :  { %v1414_v33 = vmax.f32 %v1220_v20, 0.0  ;;  %v708_v34 = vmax.f32 %v510_v30, 0.0  ;;  %v3697_v38 = vpop.f32.mrb[32].mxu0 }
 0x11c   :  { %v1413_v36 = vmax.f32 %v1215_v31, 0.0  ;;  %v3797_v41 = vpop.f32.mrb[32].mxu1  ;;  %v525_v46 = vadd.f32 %v3697_v38, %v4989_v26  ;;  %v519_v50 = vpop.f32.mrb[33].mxu0 }
 0x11d   :  { %v5285_v42 = vmax.f32 %v709_v32, %v1414_v33  ;;  %v1230_v48 = vadd.f32 %v3797_v41, %v4989_v26  ;;  %v1224_v51 = vpop.f32.mrb[33].mxu1  ;;  %v520_v53 = vadd.f32 %v4989_v26, %v519_v50 }
 0x11e   :  { %v5289_v52 = vmax.f32 %v708_v34, %v1413_v36  ;;  %v1225_v55 = vadd.f32 %v4989_v26, %v1224_v51  ;;  %v711_v56 = vmax.f32 %v525_v46, 0.0 }
 0x11f   :  { %v1416_v61 = vmax.f32 %v1230_v48, 0.0  ;;  %v710_v62 = vmax.f32 %v520_v53, 0.0  ;;  %v3700_v0 = vpop.f32.mrb[34].mxu0 }
 0x120   :  { %v1415_v63 = vmax.f32 %v1225_v55, 0.0  ;;  %v3800_v6 = vpop.f32.mrb[34].mxu1  ;;  %v535_v9 = vadd.f32 %v3700_v0, %v4989_v26  ;;  %v529_v11 = vpop.f32.mrb[35].mxu0 }
 0x121   :  { %v5293_v7 = vmax.f32 %v711_v56, %v1416_v61  ;;  %v1240_v10 = vadd.f32 %v3800_v6, %v4989_v26  ;;  %v1234_v12 = vpop.f32.mrb[35].mxu1  ;;  %v530_v15 = vadd.f32 %v4989_v26, %v529_v11 }
 0x122   :  { %v5297_v13 = vmax.f32 %v710_v62, %v1415_v63  ;;  %v1235_v19 = vadd.f32 %v4989_v26, %v1234_v12  ;;  %v713_v20 = vmax.f32 %v535_v9, 0.0 }
 0x123   :  { %v1418_v24 = vmax.f32 %v1240_v10, 0.0  ;;  %v712_v28 = vmax.f32 %v530_v15, 0.0  ;;  %v3703_v31 = vpop.f32.mrb[36].mxu0 }
 0x124   :  { %v1417_v30 = vmax.f32 %v1235_v19, 0.0  ;;  %v3803_v32 = vpop.f32.mrb[36].mxu1  ;;  %v545_v34 = vadd.f32 %v3703_v31, %v4989_v26  ;;  %v539_v38 = vpop.f32.mrb[37].mxu0 }
 0x125   :  { %v5301_v33 = vmax.f32 %v713_v20, %v1418_v24  ;;  %v1250_v36 = vadd.f32 %v3803_v32, %v4989_v26  ;;  %v1244_v41 = vpop.f32.mrb[37].mxu1  ;;  %v540_v48 = vadd.f32 %v4989_v26, %v539_v38 }
 0x126   :  { %v5305_v46 = vmax.f32 %v712_v28, %v1417_v30  ;;  %v1245_v50 = vadd.f32 %v4989_v26, %v1244_v41  ;;  %v715_v51 = vmax.f32 %v545_v34, 0.0 }
 0x127   :  { %v1420_v53 = vmax.f32 %v1250_v36, 0.0  ;;  %v714_v55 = vmax.f32 %v540_v48, 0.0  ;;  %v3706_v61 = vpop.f32.mrb[38].mxu0 }
 0x128   :  { %v1419_v56 = vmax.f32 %v1245_v50, 0.0  ;;  %v3806_v62 = vpop.f32.mrb[38].mxu1  ;;  %v555_v0 = vadd.f32 %v3706_v61, %v4989_v26  ;;  %v549_v9 = vpop.f32.mrb[39].mxu0 }
 0x129   :  { %v5309_v63 = vmax.f32 %v715_v51, %v1420_v53  ;;  %v1260_v6 = vadd.f32 %v3806_v62, %v4989_v26  ;;  %v1254_v10 = vpop.f32.mrb[39].mxu1  ;;  %v550_v12 = vadd.f32 %v4989_v26, %v549_v9 }
 0x12a   :  { %v5313_v11 = vmax.f32 %v714_v55, %v1419_v56  ;;  %v1255_v15 = vadd.f32 %v4989_v26, %v1254_v10  ;;  %v717_v19 = vmax.f32 %v555_v0, 0.0 }
 0x12b   :  { %v1422_v20 = vmax.f32 %v1260_v6, 0.0  ;;  %v716_v24 = vmax.f32 %v550_v12, 0.0  ;;  %v3709_v30 = vpop.f32.mrb[40].mxu0 }
 0x12c   :  { %v1421_v28 = vmax.f32 %v1255_v15, 0.0  ;;  %v3809_v31 = vpop.f32.mrb[40].mxu1  ;;  %v565_v34 = vadd.f32 %v3709_v30, %v4989_v26  ;;  %v559_v38 = vpop.f32.mrb[41].mxu0 }
 0x12d   :  { %v5317_v32 = vmax.f32 %v717_v19, %v1422_v20  ;;  %v1270_v36 = vadd.f32 %v3809_v31, %v4989_v26  ;;  %v1264_v41 = vpop.f32.mrb[41].mxu1  ;;  %v560_v50 = vadd.f32 %v4989_v26, %v559_v38 }
 0x12e   :  { %v5321_v48 = vmax.f32 %v716_v24, %v1421_v28  ;;  %v1265_v51 = vadd.f32 %v4989_v26, %v1264_v41  ;;  %v719_v53 = vmax.f32 %v565_v34, 0.0 }
 0x12f   :  { %v1424_v55 = vmax.f32 %v1270_v36, 0.0  ;;  %v718_v56 = vmax.f32 %v560_v50, 0.0  ;;  %v3712_v62 = vpop.f32.mrb[42].mxu0 }
 0x130   :  { %v1423_v61 = vmax.f32 %v1265_v51, 0.0  ;;  %v3812_v0 = vpop.f32.mrb[42].mxu1  ;;  %v575_v9 = vadd.f32 %v3712_v62, %v4989_v26  ;;  %v569_v12 = vpop.f32.mrb[43].mxu0 }
 0x131   :  { %v5325_v6 = vmax.f32 %v719_v53, %v1424_v55  ;;  %v1280_v10 = vadd.f32 %v3812_v0, %v4989_v26  ;;  %v1274_v15 = vpop.f32.mrb[43].mxu1  ;;  %v570_v20 = vadd.f32 %v4989_v26, %v569_v12 }
 0x132   :  { %v5329_v19 = vmax.f32 %v718_v56, %v1423_v61  ;;  %v1275_v24 = vadd.f32 %v4989_v26, %v1274_v15  ;;  %v721_v28 = vmax.f32 %v575_v9, 0.0 }
 0x133   :  { %v1426_v30 = vmax.f32 %v1280_v10, 0.0  ;;  %v720_v31 = vmax.f32 %v570_v20, 0.0  ;;  %v3715_v36 = vpop.f32.mrb[44].mxu0 }
 0x134   :  { %v1425_v34 = vmax.f32 %v1275_v24, 0.0  ;;  %v3815_v38 = vpop.f32.mrb[44].mxu1  ;;  %v585_v50 = vadd.f32 %v3715_v36, %v4989_v26  ;;  %v579_v53 = vpop.f32.mrb[45].mxu0 }
 0x135   :  { %v5333_v41 = vmax.f32 %v721_v28, %v1426_v30  ;;  %v1290_v51 = vadd.f32 %v3815_v38, %v4989_v26  ;;  %v1284_v55 = vpop.f32.mrb[45].mxu1  ;;  %v580_v61 = vadd.f32 %v4989_v26, %v579_v53 }
 0x136   :  { %v5337_v56 = vmax.f32 %v720_v31, %v1425_v34  ;;  %v1285_v62 = vadd.f32 %v4989_v26, %v1284_v55  ;;  %v723_v0 = vmax.f32 %v585_v50, 0.0 }
 0x137   :  { %v1428_v9 = vmax.f32 %v1290_v51, 0.0  ;;  %v722_v10 = vmax.f32 %v580_v61, 0.0  ;;  %v3718_v15 = vpop.f32.mrb[46].mxu0 }
 0x138   :  { %5884 = vst [vmem:[#allocation2_spill] sm:$0xff] %v5337_v56  ;;  %v1427_v12 = vmax.f32 %v1285_v62, 0.0  ;;  %v3818_v20 = vpop.f32.mrb[46].mxu1  ;;  %v595_v28 = vadd.f32 %v3718_v15, %v4989_v26  ;;  %v589_v36 = vpop.f32.mrb[47].mxu0 }
 0x139   :  { %v5341_v24 = vmax.f32 %v723_v0, %v1428_v9  ;;  %v1300_v30 = vadd.f32 %v3818_v20, %v4989_v26  ;;  %v1294_v38 = vpop.f32.mrb[47].mxu1  ;;  %v590_v34 = vadd.f32 %v4989_v26, %v589_v36 }
 0x13a   :  { %v5345_v31 = vmax.f32 %v722_v10, %v1427_v12  ;;  %v1295_v53 = vadd.f32 %v4989_v26, %v1294_v38  ;;  %v725_v50 = vmax.f32 %v595_v28, 0.0 }
 0x13b   :  { %5885 = vst [vmem:[#allocation3_spill] sm:$0xff] %v5341_v24  ;;  %v1430_v51 = vmax.f32 %v1300_v30, 0.0  ;;  %v724_v55 = vmax.f32 %v590_v34, 0.0  ;;  %v3721_v62 = vpop.f32.mrb[48].mxu0 }
 0x13c   :  { %5886 = vst [vmem:[#allocation4_spill] sm:$0xff] %v5345_v31  ;;  %v1429_v61 = vmax.f32 %v1295_v53, 0.0  ;;  %v3821_v56 = vpop.f32.mrb[48].mxu1  ;;  %v605_v9 = vadd.f32 %v3721_v62, %v4989_v26  ;;  %v599_v20 = vpop.f32.mrb[49].mxu0 }
 0x13d   :  { %v5349_v0 = vmax.f32 %v725_v50, %v1430_v51  ;;  %v1310_v15 = vadd.f32 %v3821_v56, %v4989_v26  ;;  %v1304_v24 = vpop.f32.mrb[49].mxu1  ;;  %v600_v12 = vadd.f32 %v4989_v26, %v599_v20 }
 0x13e   :  { %v5353_v10 = vmax.f32 %v724_v55, %v1429_v61  ;;  %v1305_v36 = vadd.f32 %v4989_v26, %v1304_v24  ;;  %v727_v28 = vmax.f32 %v605_v9, 0.0 }
 0x13f   :  { %5887 = vst [vmem:[#allocation5_spill] sm:$0xff] %v5349_v0  ;;  %v1432_v30 = vmax.f32 %v1310_v15, 0.0  ;;  %v726_v38 = vmax.f32 %v600_v12, 0.0  ;;  %v3724_v53 = vpop.f32.mrb[50].mxu0 }
 0x140   :  { %5888 = vst [vmem:[#allocation6_spill] sm:$0xff] %v5353_v10  ;;  %v1431_v34 = vmax.f32 %v1305_v36, 0.0  ;;  %v3824_v31 = vpop.f32.mrb[50].mxu1  ;;  %v615_v51 = vadd.f32 %v3724_v53, %v4989_v26  ;;  %v609_v62 = vpop.f32.mrb[51].mxu0 }
 0x141   :  { %v5357_v50 = vmax.f32 %v727_v28, %v1432_v30  ;;  %v1320_v56 = vadd.f32 %v3824_v31, %v4989_v26  ;;  %v1314_v0 = vpop.f32.mrb[51].mxu1  ;;  %v610_v61 = vadd.f32 %v4989_v26, %v609_v62 }
 0x142   :  { %v5361_v55 = vmax.f32 %v726_v38, %v1431_v34  ;;  %v1315_v24 = vadd.f32 %v4989_v26, %v1314_v0  ;;  %v729_v9 = vmax.f32 %v615_v51, 0.0 }
 0x143   :  { %5889 = vst [vmem:[#allocation7_spill] sm:$0xff] %v5357_v50  ;;  %v1434_v15 = vmax.f32 %v1320_v56, 0.0  ;;  %v728_v20 = vmax.f32 %v610_v61, 0.0  ;;  %v3727_v36 = vpop.f32.mrb[52].mxu0 }
 0x144   :  { %5890 = vst [vmem:[#allocation8_spill] sm:$0xff] %v5361_v55  ;;  %v1433_v12 = vmax.f32 %v1315_v24, 0.0  ;;  %v3827_v10 = vpop.f32.mrb[52].mxu1  ;;  %v625_v30 = vadd.f32 %v3727_v36, %v4989_v26  ;;  %v619_v53 = vpop.f32.mrb[53].mxu0 }
 0x145   :  { %v5365_v28 = vmax.f32 %v729_v9, %v1434_v15  ;;  %v1330_v31 = vadd.f32 %v3827_v10, %v4989_v26  ;;  %v1324_v50 = vpop.f32.mrb[53].mxu1  ;;  %v620_v34 = vadd.f32 %v4989_v26, %v619_v53 }
 0x146   :  { %v5369_v38 = vmax.f32 %v728_v20, %v1433_v12  ;;  %v1325_v0 = vadd.f32 %v4989_v26, %v1324_v50  ;;  %v731_v51 = vmax.f32 %v625_v30, 0.0 }
 0x147   :  { %5891 = vst [vmem:[#allocation9_spill] sm:$0xff] %v5365_v28  ;;  %v1436_v56 = vmax.f32 %v1330_v31, 0.0  ;;  %v730_v62 = vmax.f32 %v620_v34, 0.0  ;;  %v3730_v24 = vpop.f32.mrb[54].mxu0 }
 0x148   :  { %5892 = vst [vmem:[#allocation10_spill] sm:$0xff] %v5369_v38  ;;  %v1435_v61 = vmax.f32 %v1325_v0, 0.0  ;;  %v3830_v55 = vpop.f32.mrb[54].mxu1  ;;  %v635_v15 = vadd.f32 %v3730_v24, %v4989_v26  ;;  %v629_v36 = vpop.f32.mrb[55].mxu0 }
 0x149   :  { %v5373_v9 = vmax.f32 %v731_v51, %v1436_v56  ;;  %v1340_v10 = vadd.f32 %v3830_v55, %v4989_v26  ;;  %v1334_v28 = vpop.f32.mrb[55].mxu1  ;;  %v630_v12 = vadd.f32 %v4989_v26, %v629_v36 }
 0x14a   :  { %v5377_v20 = vmax.f32 %v730_v62, %v1435_v61  ;;  %v1335_v50 = vadd.f32 %v4989_v26, %v1334_v28  ;;  %v733_v30 = vmax.f32 %v635_v15, 0.0 }
 0x14b   :  { %5893 = vst [vmem:[#allocation11_spill] sm:$0xff] %v5373_v9  ;;  %v1438_v31 = vmax.f32 %v1340_v10, 0.0  ;;  %v732_v53 = vmax.f32 %v630_v12, 0.0  ;;  %v3733_v0 = vpop.f32.mrb[56].mxu0 }
 0x14c   :  { %5894 = vst [vmem:[#allocation12_spill] sm:$0xff] %v5377_v20  ;;  %v1437_v34 = vmax.f32 %v1335_v50, 0.0  ;;  %v3833_v38 = vpop.f32.mrb[56].mxu1  ;;  %v645_v56 = vadd.f32 %v3733_v0, %v4989_v26  ;;  %v639_v24 = vpop.f32.mrb[57].mxu0 }
 0x14d   :  { %v5381_v51 = vmax.f32 %v733_v30, %v1438_v31  ;;  %v1350_v55 = vadd.f32 %v3833_v38, %v4989_v26  ;;  %v1344_v9 = vpop.f32.mrb[57].mxu1  ;;  %v640_v61 = vadd.f32 %v4989_v26, %v639_v24 }
 0x14e   :  { %v5385_v62 = vmax.f32 %v732_v53, %v1437_v34  ;;  %v1345_v28 = vadd.f32 %v4989_v26, %v1344_v9  ;;  %v735_v15 = vmax.f32 %v645_v56, 0.0 }
 0x14f   :  { %5895 = vst [vmem:[#allocation13_spill] sm:$0xff] %v5381_v51  ;;  %v1440_v10 = vmax.f32 %v1350_v55, 0.0  ;;  %v734_v36 = vmax.f32 %v640_v61, 0.0  ;;  %v3736_v50 = vpop.f32.mrb[58].mxu0 }
 0x150   :  { %5896 = vst [vmem:[#allocation14_spill] sm:$0xff] %v5385_v62  ;;  %v1439_v12 = vmax.f32 %v1345_v28, 0.0  ;;  %v3836_v20 = vpop.f32.mrb[58].mxu1  ;;  %v655_v31 = vadd.f32 %v3736_v50, %v4989_v26  ;;  %v649_v0 = vpop.f32.mrb[59].mxu0 }
 0x151   :  { %v5389_v30 = vmax.f32 %v735_v15, %v1440_v10  ;;  %v1360_v38 = vadd.f32 %v3836_v20, %v4989_v26  ;;  %v1354_v51 = vpop.f32.mrb[59].mxu1  ;;  %v650_v34 = vadd.f32 %v4989_v26, %v649_v0 }
 0x152   :  { %v5393_v53 = vmax.f32 %v734_v36, %v1439_v12  ;;  %v1355_v9 = vadd.f32 %v4989_v26, %v1354_v51  ;;  %v737_v56 = vmax.f32 %v655_v31, 0.0  ;;  %v5406_v51 = vld [vmem:[%s5880_s5] ss:$0 sm:$0xff] }
 0x153   :  { %5897 = vst [vmem:[#allocation15_spill] sm:$0xff] %v5389_v30  ;;  %v1442_v55 = vmax.f32 %v1360_v38, 0.0  ;;  %v736_v24 = vmax.f32 %v650_v34, 0.0  ;;  %v3739_v28 = vpop.f32.mrb[60].mxu0 }
 0x154   :  { %5898 = vst [vmem:[#allocation16_spill] sm:$0xff] %v5393_v53  ;;  %v1441_v61 = vmax.f32 %v1355_v9, 0.0  ;;  %v3839_v62 = vpop.f32.mrb[60].mxu1  ;;  %v665_v10 = vadd.f32 %v3739_v28, %v4989_v26  ;;  %v659_v50 = vpop.f32.mrb[61].mxu0 }
 0x155   :  { %v5397_v15 = vmax.f32 %v737_v56, %v1442_v55  ;;  %v1370_v20 = vadd.f32 %v3839_v62, %v4989_v26  ;;  %v1364_v30 = vpop.f32.mrb[61].mxu1  ;;  %v660_v12 = vadd.f32 %v5406_v51, %v659_v50 }
 0x156   :  { %v5401_v36 = vmax.f32 %v736_v24, %v1441_v61  ;;  %v1365_v31 = vadd.f32 %v5406_v51, %v1364_v30  ;;  %v739_v38 = vmax.f32 %v665_v10, 0.0 }
 0x157   :  { %5899 = vst [vmem:[#allocation17_spill] sm:$0xff] %v5397_v15  ;;  %v1444_v0 = vmax.f32 %v1370_v20, 0.0  ;;  %v738_v34 = vmax.f32 %v660_v12, 0.0  ;;  %v3742_v56 = vpop.f32.mrb[62].mxu0 }
 0x158   :  { %5900 = vst [vmem:[#allocation18_spill] sm:$0xff] %v5401_v36  ;;  %v1443_v9 = vmax.f32 %v1365_v31, 0.0  ;;  %v3842_v55 = vpop.f32.mrb[62].mxu1  ;;  %v675_v62 = vadd.f32 %v5406_v51, %v3742_v56  ;;  %v669_v61 = vpop.f32.mrb[63].mxu0 }
 0x159   :  { %v5410_v26 = vmax.f32 %v739_v38, %v1444_v0  ;;  %v1380_v24 = vadd.f32 %v5406_v51, %v3842_v55  ;;  %v1374_v28 = vpop.f32.mrb[63].mxu1  ;;  %v670_v50 = vadd.f32 %v5406_v51, %v669_v61 }
 0x15a   :  { %v5414_v36 = vmax.f32 %v738_v34, %v1443_v9  ;;  %v1375_v30 = vadd.f32 %v5406_v51, %v1374_v28  ;;  %v741_v10 = vmax.f32 %v675_v62, 0.0 }
 0x15b   :  { %5901 = vst [vmem:[#allocation19_spill] sm:$0xff] %v5410_v26  ;;  %v1446_v20 = vmax.f32 %v1380_v24, 0.0  ;;  %v740_v12 = vmax.f32 %v670_v50, 0.0  ;;  %v3849_v15 = vpop.f32.mrb[64].mxu0 }
 0x15c   :  { %5902 = vst [vmem:[#allocation20_spill] sm:$0xff] %v5414_v36  ;;  %v1445_v31 = vmax.f32 %v1375_v30, 0.0  ;;  %v3949_v53 = vpop.f32.mrb[64].mxu1  ;;  %v1839_v0 = vadd.f32 %v5406_v51, %v3849_v15  ;;  %v1833_v55 = vpop.f32.mrb[65].mxu0 }
 0x15d   :  { %v5418_v38 = vmax.f32 %v741_v10, %v1446_v20  ;;  %v2544_v56 = vadd.f32 %v5406_v51, %v3949_v53  ;;  %v2538_v26 = vpop.f32.mrb[65].mxu1  ;;  %v1834_v9 = vadd.f32 %v5406_v51, %v1833_v55 }
 0x15e   :  { %v5422_v34 = vmax.f32 %v740_v12, %v1445_v31  ;;  %v2539_v61 = vadd.f32 %v5406_v51, %v2538_v26  ;;  %v2153_v62 = vmax.f32 %v1839_v0, 0.0 }
 0x15f   :  { %5903 = vst [vmem:[#allocation21_spill] sm:$0xff] %v5418_v38  ;;  %v2858_v24 = vmax.f32 %v2544_v56, 0.0  ;;  %v2152_v28 = vmax.f32 %v1834_v9, 0.0  ;;  %v3852_v30 = vpop.f32.mrb[66].mxu0 }
 0x160   :  { %v2857_v50 = vmax.f32 %v2539_v61, 0.0  ;;  %v3952_v36 = vpop.f32.mrb[66].mxu1  ;;  %v1849_v20 = vadd.f32 %v5406_v51, %v3852_v30  ;;  %v1843_v53 = vpop.f32.mrb[67].mxu0 }
 0x161   :  { %v2922_v10 = vmax.f32 %v2153_v62, %v2858_v24  ;;  %v2554_v15 = vadd.f32 %v5406_v51, %v3952_v36  ;;  %v2548_v38 = vpop.f32.mrb[67].mxu1  ;;  %v1844_v31 = vadd.f32 %v5406_v51, %v1843_v53 }
 0x162   :  { %v2921_v12 = vmax.f32 %v2152_v28, %v2857_v50  ;;  %v2549_v55 = vadd.f32 %v5406_v51, %v2548_v38  ;;  %v2155_v0 = vmax.f32 %v1849_v20, 0.0 }
 0x163   :  { %v2986_v26 = vmax.f32 %v5025_v49, %v2922_v10  ;;  %v2860_v56 = vmax.f32 %v2554_v15, 0.0  ;;  %v2154_v61 = vmax.f32 %v1844_v31, 0.0  ;;  %v3855_v24 = vpop.f32.mrb[68].mxu0 }
 0x164   :  { %v2985_v9 = vmax.f32 %v5031_v54, %v2921_v12  ;;  %v2859_v62 = vmax.f32 %v2549_v55, 0.0  ;;  %v3955_v30 = vpop.f32.mrb[68].mxu1  ;;  %v1859_v28 = vadd.f32 %v5406_v51, %v3855_v24  ;;  %v1853_v50 = vpop.f32.mrb[69].mxu0 }
 0x165   :  { %3051 = vst.msk [vmem:[%s5881_s6 + $0x8] sm:$0xff] %vm3049_vm4, %v2986_v26  ;;  %v2924_v36 = vmax.f32 %v2155_v0, %v2860_v56  ;;  %v2564_v38 = vadd.f32 %v5406_v51, %v3955_v30  ;;  %v2558_v49 = vpop.f32.mrb[69].mxu1  ;;  %v1854_v10 = vadd.f32 %v5406_v51, %v1853_v50 }
 0x166   :  { %3050 = vst.msk [vmem:[%s5881_s6] sm:$0xff] %vm3049_vm4, %v2985_v9  ;;  %v2923_v54 = vmax.f32 %v2154_v61, %v2859_v62  ;;  %v2559_v20 = vadd.f32 %v5406_v51, %v2558_v49  ;;  %v2157_v53 = vmax.f32 %v1859_v28, 0.0 }
 0x167   :  { %v2988_v15 = vmax.f32 %v5049_v3, %v2924_v36  ;;  %v2862_v12 = vmax.f32 %v2564_v38, 0.0  ;;  %v2156_v55 = vmax.f32 %v1854_v10, 0.0  ;;  %v3858_v0 = vpop.f32.mrb[70].mxu0 }
 0x168   :  { %v2987_v31 = vmax.f32 %v5055_v8, %v2923_v54  ;;  %v2861_v26 = vmax.f32 %v2559_v20, 0.0  ;;  %v3958_v56 = vpop.f32.mrb[70].mxu1  ;;  %v1869_v61 = vadd.f32 %v5406_v51, %v3858_v0  ;;  %v1863_v24 = vpop.f32.mrb[71].mxu0 }
 0x169   :  { %3053 = vst.msk [vmem:[%s5881_s6 + $0x18] sm:$0xff] %vm3049_vm4, %v2988_v15  ;;  %v2926_v9 = vmax.f32 %v2157_v53, %v2862_v12  ;;  %v2574_v62 = vadd.f32 %v5406_v51, %v3958_v56  ;;  %v2568_v3 = vpop.f32.mrb[71].mxu1  ;;  %v1864_v30 = vadd.f32 %v5406_v51, %v1863_v24 }
 0x16a   :  { %3052 = vst.msk [vmem:[%s5881_s6 + $0x10] sm:$0xff] %vm3049_vm4, %v2987_v31  ;;  %v2925_v8 = vmax.f32 %v2156_v55, %v2861_v26  ;;  %v2569_v36 = vadd.f32 %v5406_v51, %v2568_v3  ;;  %v2159_v38 = vmax.f32 %v1869_v61, 0.0 }
 0x16b   :  { %v2990_v28 = vmax.f32 %v5073_v21, %v2926_v9  ;;  %v2864_v50 = vmax.f32 %v2574_v62, 0.0  ;;  %v2158_v54 = vmax.f32 %v1864_v30, 0.0  ;;  %v3861_v20 = vpop.f32.mrb[72].mxu0 }
 0x16c   :  { %v2989_v49 = vmax.f32 %v5079_v27, %v2925_v8  ;;  %v2863_v10 = vmax.f32 %v2569_v36, 0.0  ;;  %v3961_v15 = vpop.f32.mrb[72].mxu1  ;;  %v1879_v12 = vadd.f32 %v5406_v51, %v3861_v20  ;;  %v1873_v55 = vpop.f32.mrb[73].mxu0 }
 0x16d   :  { %3055 = vst.msk [vmem:[%s5881_s6 + $0x28] sm:$0xff] %vm3049_vm4, %v2990_v28  ;;  %v2928_v53 = vmax.f32 %v2159_v38, %v2864_v50  ;;  %v2584_v31 = vadd.f32 %v5406_v51, %v3961_v15  ;;  %v2578_v21 = vpop.f32.mrb[73].mxu1  ;;  %v1874_v26 = vadd.f32 %v5406_v51, %v1873_v55 }
 0x16e   :  { %3054 = vst.msk [vmem:[%s5881_s6 + $0x20] sm:$0xff] %vm3049_vm4, %v2989_v49  ;;  %v2927_v27 = vmax.f32 %v2158_v54, %v2863_v10  ;;  %v2579_v0 = vadd.f32 %v5406_v51, %v2578_v21  ;;  %v2161_v9 = vmax.f32 %v1879_v12, 0.0 }
 0x16f   :  { %v2992_v56 = vmax.f32 %v5097_v40, %v2928_v53  ;;  %v2866_v61 = vmax.f32 %v2584_v31, 0.0  ;;  %v2160_v24 = vmax.f32 %v1874_v26, 0.0  ;;  %v3864_v8 = vpop.f32.mrb[74].mxu0 }
 0x170   :  { %v2991_v62 = vmax.f32 %v5103_v45, %v2927_v27  ;;  %v2865_v3 = vmax.f32 %v2579_v0, 0.0  ;;  %v3964_v30 = vpop.f32.mrb[74].mxu1  ;;  %v1889_v28 = vadd.f32 %v5406_v51, %v3864_v8  ;;  %v1883_v50 = vpop.f32.mrb[75].mxu0 }
 0x171   :  { %3057 = vst.msk [vmem:[%s5881_s6 + $0x38] sm:$0xff] %vm3049_vm4, %v2992_v56  ;;  %v2930_v36 = vmax.f32 %v2161_v9, %v2866_v61  ;;  %v2594_v38 = vadd.f32 %v5406_v51, %v3964_v30  ;;  %v2588_v40 = vpop.f32.mrb[75].mxu1  ;;  %v1884_v49 = vadd.f32 %v5406_v51, %v1883_v50 }
 0x172   :  { %3056 = vst.msk [vmem:[%s5881_s6 + $0x30] sm:$0xff] %vm3049_vm4, %v2991_v62  ;;  %v2929_v45 = vmax.f32 %v2160_v24, %v2865_v3  ;;  %v2589_v54 = vadd.f32 %v5406_v51, %v2588_v40  ;;  %v2163_v20 = vmax.f32 %v1889_v28, 0.0 }
 0x173   :  { %v2994_v10 = vmax.f32 %v5121_v60, %v2930_v36  ;;  %v2868_v15 = vmax.f32 %v2594_v38, 0.0  ;;  %v2162_v12 = vmax.f32 %v1884_v49, 0.0  ;;  %v3867_v55 = vpop.f32.mrb[76].mxu0 }
 0x174   :  { %v2993_v53 = vmax.f32 %v5127_v1, %v2929_v45  ;;  %v2867_v31 = vmax.f32 %v2589_v54, 0.0  ;;  %v3967_v21 = vpop.f32.mrb[76].mxu1  ;;  %v1899_v26 = vadd.f32 %v5406_v51, %v3867_v55  ;;  %v1893_v56 = vpop.f32.mrb[77].mxu0 }
 0x175   :  { %3059 = vst.msk [vmem:[%s5881_s6 + $0x48] sm:$0xff] %vm3049_vm4, %v2994_v10  ;;  %v2932_v27 = vmax.f32 %v2163_v20, %v2868_v15  ;;  %v2604_v0 = vadd.f32 %v5406_v51, %v3967_v21  ;;  %v2598_v60 = vpop.f32.mrb[77].mxu1  ;;  %v1894_v9 = vadd.f32 %v5406_v51, %v1893_v56 }
 0x176   :  { %3058 = vst.msk [vmem:[%s5881_s6 + $0x40] sm:$0xff] %vm3049_vm4, %v2993_v53  ;;  %v2931_v1 = vmax.f32 %v2162_v12, %v2867_v31  ;;  %v2599_v61 = vadd.f32 %v5406_v51, %v2598_v60  ;;  %v2165_v24 = vmax.f32 %v1899_v26, 0.0 }
 0x177   :  { %v2996_v62 = vmax.f32 %v5145_v16, %v2932_v27  ;;  %v2870_v3 = vmax.f32 %v2604_v0, 0.0  ;;  %v2164_v30 = vmax.f32 %v1894_v9, 0.0  ;;  %v3870_v28 = vpop.f32.mrb[78].mxu0 }
 0x178   :  { %v2995_v8 = vmax.f32 %v5151_v22, %v2931_v1  ;;  %v2869_v36 = vmax.f32 %v2599_v61, 0.0  ;;  %v3970_v38 = vpop.f32.mrb[78].mxu1  ;;  %v1909_v40 = vadd.f32 %v5406_v51, %v3870_v28  ;;  %v1903_v49 = vpop.f32.mrb[79].mxu0 }
 0x179   :  { %3061 = vst.msk [vmem:[%s5881_s6 + $0x58] sm:$0xff] %vm3049_vm4, %v2996_v62  ;;  %v2934_v50 = vmax.f32 %v2165_v24, %v2870_v3  ;;  %v2614_v45 = vadd.f32 %v5406_v51, %v3970_v38  ;;  %v2608_v16 = vpop.f32.mrb[79].mxu1  ;;  %v1904_v54 = vadd.f32 %v5406_v51, %v1903_v49 }
 0x17a   :  { %3060 = vst.msk [vmem:[%s5881_s6 + $0x50] sm:$0xff] %vm3049_vm4, %v2995_v8  ;;  %v2933_v22 = vmax.f32 %v2164_v30, %v2869_v36  ;;  %v2609_v10 = vadd.f32 %v5406_v51, %v2608_v16  ;;  %v2167_v15 = vmax.f32 %v1909_v40, 0.0 }
 0x17b   :  { %v2998_v20 = vmax.f32 %v5169_v37, %v2934_v50  ;;  %v2872_v53 = vmax.f32 %v2614_v45, 0.0  ;;  %v2166_v31 = vmax.f32 %v1904_v54, 0.0  ;;  %v3873_v21 = vpop.f32.mrb[80].mxu0 }
 0x17c   :  { %v2997_v12 = vmax.f32 %v5175_v43, %v2933_v22  ;;  %v2871_v55 = vmax.f32 %v2609_v10, 0.0  ;;  %v3973_v27 = vpop.f32.mrb[80].mxu1  ;;  %v1919_v0 = vadd.f32 %v5406_v51, %v3873_v21  ;;  %v1913_v60 = vpop.f32.mrb[81].mxu0 }
 0x17d   :  { %3063 = vst.msk [vmem:[%s5881_s6 + $0x68] sm:$0xff] %vm3049_vm4, %v2998_v20  ;;  %v2936_v26 = vmax.f32 %v2167_v15, %v2872_v53  ;;  %v2624_v56 = vadd.f32 %v5406_v51, %v3973_v27  ;;  %v2618_v37 = vpop.f32.mrb[81].mxu1  ;;  %v1914_v1 = vadd.f32 %v5406_v51, %v1913_v60 }
 0x17e   :  { %3062 = vst.msk [vmem:[%s5881_s6 + $0x60] sm:$0xff] %vm3049_vm4, %v2997_v12  ;;  %v2935_v43 = vmax.f32 %v2166_v31, %v2871_v55  ;;  %v2619_v9 = vadd.f32 %v5406_v51, %v2618_v37  ;;  %v2169_v62 = vmax.f32 %v1919_v0, 0.0 }
 0x17f   :  { %v3000_v61 = vmax.f32 %v5193_v59, %v2936_v26  ;;  %v2874_v24 = vmax.f32 %v2624_v56, 0.0  ;;  %v2168_v8 = vmax.f32 %v1914_v1, 0.0  ;;  %v3876_v36 = vpop.f32.mrb[82].mxu0 }
 0x180   :  { %v2999_v3 = vmax.f32 %v5199_v2, %v2935_v43  ;;  %v2873_v30 = vmax.f32 %v2619_v9, 0.0  ;;  %v3976_v28 = vpop.f32.mrb[82].mxu1  ;;  %v1929_v50 = vadd.f32 %v5406_v51, %v3876_v36  ;;  %v1923_v45 = vpop.f32.mrb[83].mxu0 }
 0x181   :  { %3065 = vst.msk [vmem:[%s5881_s6 + $0x78] sm:$0xff] %vm3049_vm4, %v3000_v61  ;;  %v2938_v38 = vmax.f32 %v2169_v62, %v2874_v24  ;;  %v2634_v40 = vadd.f32 %v5406_v51, %v3976_v28  ;;  %v2628_v59 = vpop.f32.mrb[83].mxu1  ;;  %v1924_v49 = vadd.f32 %v5406_v51, %v1923_v45 }
 0x182   :  { %3064 = vst.msk [vmem:[%s5881_s6 + $0x70] sm:$0xff] %vm3049_vm4, %v2999_v3  ;;  %v2937_v2 = vmax.f32 %v2168_v8, %v2873_v30  ;;  %v2629_v16 = vadd.f32 %v5406_v51, %v2628_v59  ;;  %v2171_v54 = vmax.f32 %v1929_v50, 0.0 }
 0x183   :  { %v3002_v22 = vmax.f32 %v5217_v18, %v2938_v38  ;;  %v2876_v10 = vmax.f32 %v2634_v40, 0.0  ;;  %v2170_v15 = vmax.f32 %v1924_v49, 0.0  ;;  %v3879_v12 = vpop.f32.mrb[84].mxu0 }
 0x184   :  { %v3001_v20 = vmax.f32 %v5223_v25, %v2937_v2  ;;  %v2875_v53 = vmax.f32 %v2629_v16, 0.0  ;;  %v3979_v31 = vpop.f32.mrb[84].mxu1  ;;  %v1939_v21 = vadd.f32 %v5406_v51, %v3879_v12  ;;  %v1933_v26 = vpop.f32.mrb[85].mxu0 }
 0x185   :  { %3067 = vst.msk [vmem:[%s5881_s6 + $0x88] sm:$0xff] %vm3049_vm4, %v3002_v22  ;;  %v2940_v55 = vmax.f32 %v2171_v54, %v2876_v10  ;;  %v2644_v27 = vadd.f32 %v5406_v51, %v3979_v31  ;;  %v2638_v18 = vpop.f32.mrb[85].mxu1  ;;  %v1934_v0 = vadd.f32 %v5406_v51, %v1933_v26 }
 0x186   :  { %3066 = vst.msk [vmem:[%s5881_s6 + $0x80] sm:$0xff] %vm3049_vm4, %v3001_v20  ;;  %v2939_v25 = vmax.f32 %v2170_v15, %v2875_v53  ;;  %v2639_v56 = vadd.f32 %v5406_v51, %v2638_v18  ;;  %v2173_v37 = vmax.f32 %v1939_v21, 0.0 }
 0x187   :  { %v3004_v60 = vmax.f32 %v5235_v39, %v2940_v55  ;;  %v2878_v43 = vmax.f32 %v2644_v27, 0.0  ;;  %v2172_v9 = vmax.f32 %v1934_v0, 0.0  ;;  %v3882_v62 = vpop.f32.mrb[86].mxu0 }
 0x188   :  { %v3003_v1 = vmax.f32 %v5241_v47, %v2939_v25  ;;  %v2877_v61 = vmax.f32 %v2639_v56, 0.0  ;;  %v3982_v24 = vpop.f32.mrb[86].mxu1  ;;  %v1949_v8 = vadd.f32 %v5406_v51, %v3882_v62  ;;  %v1943_v36 = vpop.f32.mrb[87].mxu0 }
 0x189   :  { %3069 = vst.msk [vmem:[%s5881_s6 + $0x98] sm:$0xff] %vm3049_vm4, %v3004_v60  ;;  %v2942_v3 = vmax.f32 %v2173_v37, %v2878_v43  ;;  %v2654_v30 = vadd.f32 %v5406_v51, %v3982_v24  ;;  %v2648_v39 = vpop.f32.mrb[87].mxu1  ;;  %v1944_v28 = vadd.f32 %v5406_v51, %v1943_v36 }
 0x18a   :  { %3068 = vst.msk [vmem:[%s5881_s6 + $0x90] sm:$0xff] %vm3049_vm4, %v3003_v1  ;;  %v2941_v47 = vmax.f32 %v2172_v9, %v2877_v61  ;;  %v2649_v38 = vadd.f32 %v5406_v51, %v2648_v39  ;;  %v2175_v40 = vmax.f32 %v1949_v8, 0.0 }
 0x18b   :  { %v3006_v50 = vmax.f32 %v5245_v58, %v2942_v3  ;;  %v2880_v45 = vmax.f32 %v2654_v30, 0.0  ;;  %v2174_v2 = vmax.f32 %v1944_v28, 0.0  ;;  %v3885_v16 = vpop.f32.mrb[88].mxu0 }
 0x18c   :  { %v3005_v59 = vmax.f32 %v5249_v4, %v2941_v47  ;;  %v2879_v49 = vmax.f32 %v2649_v38, 0.0  ;;  %v3985_v22 = vpop.f32.mrb[88].mxu1  ;;  %v1959_v10 = vadd.f32 %v5406_v51, %v3885_v16  ;;  %v1953_v15 = vpop.f32.mrb[89].mxu0 }
 0x18d   :  { %3071 = vst.msk [vmem:[%s5881_s6 + $0xa8] sm:$0xff] %vm3049_vm4, %v3006_v50  ;;  %v2944_v54 = vmax.f32 %v2175_v40, %v2880_v45  ;;  %v2664_v20 = vadd.f32 %v5406_v51, %v3985_v22  ;;  %v2658_v58 = vpop.f32.mrb[89].mxu1  ;;  %v1954_v53 = vadd.f32 %v5406_v51, %v1953_v15 }
 0x18e   :  { %3070 = vst.msk [vmem:[%s5881_s6 + $0xa0] sm:$0xff] %vm3049_vm4, %v3005_v59  ;;  %v2943_v4 = vmax.f32 %v2174_v2, %v2879_v49  ;;  %v2659_v12 = vadd.f32 %v5406_v51, %v2658_v58  ;;  %v2177_v55 = vmax.f32 %v1959_v10, 0.0 }
 0x18f   :  { %v3008_v31 = vmax.f32 %v5253_v14, %v2944_v54  ;;  %v2882_v21 = vmax.f32 %v2664_v20, 0.0  ;;  %v2176_v26 = vmax.f32 %v1954_v53, 0.0  ;;  %v3888_v25 = vpop.f32.mrb[90].mxu0 }
 0x190   :  { %v3007_v27 = vmax.f32 %v5257_v23, %v2943_v4  ;;  %v2881_v18 = vmax.f32 %v2659_v12, 0.0  ;;  %v3988_v0 = vpop.f32.mrb[90].mxu1  ;;  %v1969_v60 = vadd.f32 %v5406_v51, %v3888_v25  ;;  %v1963_v43 = vpop.f32.mrb[91].mxu0 }
 0x191   :  { %3073 = vst.msk [vmem:[%s5881_s6 + $0xb8] sm:$0xff] %vm3049_vm4, %v3008_v31  ;;  %v2946_v56 = vmax.f32 %v2177_v55, %v2882_v21  ;;  %v2674_v37 = vadd.f32 %v5406_v51, %v3988_v0  ;;  %v2668_v14 = vpop.f32.mrb[91].mxu1  ;;  %v1964_v1 = vadd.f32 %v5406_v51, %v1963_v43 }
 0x192   :  { %3072 = vst.msk [vmem:[%s5881_s6 + $0xb0] sm:$0xff] %vm3049_vm4, %v3007_v27  ;;  %v2945_v23 = vmax.f32 %v2176_v26, %v2881_v18  ;;  %v2669_v9 = vadd.f32 %v5406_v51, %v2668_v14  ;;  %v2179_v62 = vmax.f32 %v1969_v60, 0.0 }
 0x193   :  { %v3010_v61 = vmax.f32 %v5261_v35, %v2946_v56  ;;  %v2884_v24 = vmax.f32 %v2674_v37, 0.0  ;;  %v2178_v8 = vmax.f32 %v1964_v1, 0.0  ;;  %v3891_v36 = vpop.f32.mrb[92].mxu0 }
 0x194   :  { %v3009_v3 = vmax.f32 %v5265_v44, %v2945_v23  ;;  %v2883_v30 = vmax.f32 %v2669_v9, 0.0  ;;  %v3991_v39 = vpop.f32.mrb[92].mxu1  ;;  %v1979_v28 = vadd.f32 %v5406_v51, %v3891_v36  ;;  %v1973_v50 = vpop.f32.mrb[93].mxu0 }
 0x195   :  { %3075 = vst.msk [vmem:[%s5881_s6 + $0xc8] sm:$0xff] %vm3049_vm4, %v3010_v61  ;;  %v2948_v47 = vmax.f32 %v2179_v62, %v2884_v24  ;;  %v2684_v38 = vadd.f32 %v5406_v51, %v3991_v39  ;;  %v2678_v35 = vpop.f32.mrb[93].mxu1  ;;  %v1974_v40 = vadd.f32 %v5406_v51, %v1973_v50 }
 0x196   :  { %3074 = vst.msk [vmem:[%s5881_s6 + $0xc0] sm:$0xff] %vm3049_vm4, %v3009_v3  ;;  %v2947_v44 = vmax.f32 %v2178_v8, %v2883_v30  ;;  %v2679_v45 = vadd.f32 %v5406_v51, %v2678_v35  ;;  %v2181_v2 = vmax.f32 %v1979_v28, 0.0 }
 0x197   :  { %v3012_v59 = vmax.f32 %v5269_v57, %v2948_v47  ;;  %v2886_v49 = vmax.f32 %v2684_v38, 0.0  ;;  %v2180_v22 = vmax.f32 %v1974_v40, 0.0  ;;  %v3894_v10 = vpop.f32.mrb[94].mxu0 }
 0x198   :  { %v3011_v16 = vmax.f32 %v5273_v5, %v2947_v44  ;;  %v2885_v54 = vmax.f32 %v2679_v45, 0.0  ;;  %v3994_v20 = vpop.f32.mrb[94].mxu1  ;;  %v1989_v58 = vadd.f32 %v5406_v51, %v3894_v10  ;;  %v1983_v53 = vpop.f32.mrb[95].mxu0 }
 0x199   :  { %3077 = vst.msk [vmem:[%s5881_s6 + $0xd8] sm:$0xff] %vm3049_vm4, %v3012_v59  ;;  %v2950_v15 = vmax.f32 %v2181_v2, %v2886_v49  ;;  %v2694_v4 = vadd.f32 %v5406_v51, %v3994_v20  ;;  %v2688_v57 = vpop.f32.mrb[95].mxu1  ;;  %v1984_v12 = vadd.f32 %v5406_v51, %v1983_v53 }
 0x19a   :  { %3076 = vst.msk [vmem:[%s5881_s6 + $0xd0] sm:$0xff] %vm3049_vm4, %v3011_v16  ;;  %v2949_v5 = vmax.f32 %v2180_v22, %v2885_v54  ;;  %v2689_v31 = vadd.f32 %v5406_v51, %v2688_v57  ;;  %v2183_v21 = vmax.f32 %v1989_v58, 0.0 }
 0x19b   :  { %v3014_v55 = vmax.f32 %v5277_v17, %v2950_v15  ;;  %v2888_v27 = vmax.f32 %v2694_v4, 0.0  ;;  %v2182_v18 = vmax.f32 %v1984_v12, 0.0  ;;  %v3897_v0 = vpop.f32.mrb[96].mxu0 }
 0x19c   :  { %v3013_v26 = vmax.f32 %v5281_v29, %v2949_v5  ;;  %v2887_v25 = vmax.f32 %v2689_v31, 0.0  ;;  %v3997_v56 = vpop.f32.mrb[96].mxu1  ;;  %v1999_v37 = vadd.f32 %v5406_v51, %v3897_v0  ;;  %v1993_v14 = vpop.f32.mrb[97].mxu0 }
 0x19d   :  { %3079 = vst.msk [vmem:[%s5881_s6 + $0xe8] sm:$0xff] %vm3049_vm4, %v3014_v55  ;;  %v2952_v60 = vmax.f32 %v2183_v21, %v2888_v27  ;;  %v2704_v43 = vadd.f32 %v5406_v51, %v3997_v56  ;;  %v2698_v17 = vpop.f32.mrb[97].mxu1  ;;  %v1994_v23 = vadd.f32 %v5406_v51, %v1993_v14 }
 0x19e   :  { %3078 = vst.msk [vmem:[%s5881_s6 + $0xe0] sm:$0xff] %vm3049_vm4, %v3013_v26  ;;  %v2951_v29 = vmax.f32 %v2182_v18, %v2887_v25  ;;  %v2699_v1 = vadd.f32 %v5406_v51, %v2698_v17  ;;  %v2185_v61 = vmax.f32 %v1999_v37, 0.0 }
 0x19f   :  { %v3016_v9 = vmax.f32 %v5285_v42, %v2952_v60  ;;  %v2890_v62 = vmax.f32 %v2704_v43, 0.0  ;;  %v2184_v3 = vmax.f32 %v1994_v23, 0.0  ;;  %v3900_v30 = vpop.f32.mrb[98].mxu0 }
 0x1a0   :  { %v3015_v24 = vmax.f32 %v5289_v52, %v2951_v29  ;;  %v2889_v8 = vmax.f32 %v2699_v1, 0.0  ;;  %v4000_v36 = vpop.f32.mrb[98].mxu1  ;;  %v2009_v47 = vadd.f32 %v5406_v51, %v3900_v30  ;;  %v2003_v38 = vpop.f32.mrb[99].mxu0 }
 0x1a1   :  { %3081 = vst.msk [vmem:[%s5881_s6 + $0xf8] sm:$0xff] %vm3049_vm4, %v3016_v9  ;;  %v2954_v39 = vmax.f32 %v2185_v61, %v2890_v62  ;;  %v2714_v28 = vadd.f32 %v5406_v51, %v4000_v36  ;;  %v2708_v42 = vpop.f32.mrb[99].mxu1  ;;  %v2004_v50 = vadd.f32 %v5406_v51, %v2003_v38 }
 0x1a2   :  { %3080 = vst.msk [vmem:[%s5881_s6 + $0xf0] sm:$0xff] %vm3049_vm4, %v3015_v24  ;;  %v2953_v52 = vmax.f32 %v2184_v3, %v2889_v8  ;;  %v2709_v35 = vadd.f32 %v5406_v51, %v2708_v42  ;;  %v2187_v40 = vmax.f32 %v2009_v47, 0.0 }
 0x1a3   :  { %v3018_v44 = vmax.f32 %v5293_v7, %v2954_v39  ;;  %v2892_v45 = vmax.f32 %v2714_v28, 0.0  ;;  %v2186_v2 = vmax.f32 %v2004_v50, 0.0  ;;  %v3903_v16 = vpop.f32.mrb[100].mxu0 }
 0x1a4   :  { %v3017_v59 = vmax.f32 %v5297_v13, %v2953_v52  ;;  %v2891_v49 = vmax.f32 %v2709_v35, 0.0  ;;  %v4003_v22 = vpop.f32.mrb[100].mxu1  ;;  %v2019_v10 = vadd.f32 %v5406_v51, %v3903_v16  ;;  %v2013_v15 = vpop.f32.mrb[101].mxu0 }
 0x1a5   :  { %3083 = vst.msk [vmem:[%s5881_s6 + $0x108] sm:$0xff] %vm3049_vm4, %v3018_v44  ;;  %v2956_v54 = vmax.f32 %v2187_v40, %v2892_v45  ;;  %v2724_v20 = vadd.f32 %v5406_v51, %v4003_v22  ;;  %v2718_v7 = vpop.f32.mrb[101].mxu1  ;;  %v2014_v58 = vadd.f32 %v5406_v51, %v2013_v15 }
 0x1a6   :  { %3082 = vst.msk [vmem:[%s5881_s6 + $0x100] sm:$0xff] %vm3049_vm4, %v3017_v59  ;;  %v2955_v13 = vmax.f32 %v2186_v2, %v2891_v49  ;;  %v2719_v4 = vadd.f32 %v5406_v51, %v2718_v7  ;;  %v2189_v57 = vmax.f32 %v2019_v10, 0.0 }
 0x1a7   :  { %v3020_v53 = vmax.f32 %v5301_v33, %v2956_v54  ;;  %v2894_v5 = vmax.f32 %v2724_v20, 0.0  ;;  %v2188_v31 = vmax.f32 %v2014_v58, 0.0  ;;  %v3906_v21 = vpop.f32.mrb[102].mxu0 }
 0x1a8   :  { %v3019_v12 = vmax.f32 %v5305_v46, %v2955_v13  ;;  %v2893_v55 = vmax.f32 %v2719_v4, 0.0  ;;  %v4006_v27 = vpop.f32.mrb[102].mxu1  ;;  %v2029_v18 = vadd.f32 %v5406_v51, %v3906_v21  ;;  %v2023_v0 = vpop.f32.mrb[103].mxu0  ;;  %v5904_v21 = vld [vmem:[#allocation2_spill] sm:$0xff] }
 0x1a9   :  { %3085 = vst.msk [vmem:[%s5881_s6 + $0x118] sm:$0xff] %vm3049_vm4, %v3020_v53  ;;  %v2958_v26 = vmax.f32 %v2189_v57, %v2894_v5  ;;  %v2734_v25 = vadd.f32 %v5406_v51, %v4006_v27  ;;  %v2728_v33 = vpop.f32.mrb[103].mxu1  ;;  %v2024_v56 = vadd.f32 %v5406_v51, %v2023_v0 }
 0x1aa   :  { %3084 = vst.msk [vmem:[%s5881_s6 + $0x110] sm:$0xff] %vm3049_vm4, %v3019_v12  ;;  %v2957_v46 = vmax.f32 %v2188_v31, %v2893_v55  ;;  %v2729_v60 = vadd.f32 %v5406_v51, %v2728_v33  ;;  %v2191_v43 = vmax.f32 %v2029_v18, 0.0 }
 0x1ab   :  { %v3022_v37 = vmax.f32 %v5309_v63, %v2958_v26  ;;  %v2896_v14 = vmax.f32 %v2734_v25, 0.0  ;;  %v2190_v29 = vmax.f32 %v2024_v56, 0.0  ;;  %v3909_v1 = vpop.f32.mrb[104].mxu0 }
 0x1ac   :  { %v3021_v17 = vmax.f32 %v5313_v11, %v2957_v46  ;;  %v2895_v23 = vmax.f32 %v2729_v60, 0.0  ;;  %v4009_v9 = vpop.f32.mrb[104].mxu1  ;;  %v2039_v62 = vadd.f32 %v5406_v51, %v3909_v1  ;;  %v2033_v3 = vpop.f32.mrb[105].mxu0 }
 0x1ad   :  { %3087 = vst.msk [vmem:[%s5881_s6 + $0x128] sm:$0xff] %vm3049_vm4, %v3022_v37  ;;  %v2960_v61 = vmax.f32 %v2191_v43, %v2896_v14  ;;  %v2744_v24 = vadd.f32 %v5406_v51, %v4009_v9  ;;  %v2738_v63 = vpop.f32.mrb[105].mxu1  ;;  %v2034_v8 = vadd.f32 %v5406_v51, %v2033_v3  ;;  %v5906_v9 = vld [vmem:[#allocation4_spill] sm:$0xff] }
 0x1ae   :  { %3086 = vst.msk [vmem:[%s5881_s6 + $0x120] sm:$0xff] %vm3049_vm4, %v3021_v17  ;;  %v2959_v11 = vmax.f32 %v2190_v29, %v2895_v23  ;;  %v2739_v30 = vadd.f32 %v5406_v51, %v2738_v63  ;;  %v2193_v39 = vmax.f32 %v2039_v62, 0.0  ;;  %v5905_v17 = vld [vmem:[#allocation3_spill] sm:$0xff] }
 0x1af   :  { %v3024_v36 = vmax.f32 %v5317_v32, %v2960_v61  ;;  %v2898_v47 = vmax.f32 %v2744_v24, 0.0  ;;  %v2192_v38 = vmax.f32 %v2034_v8, 0.0  ;;  %v3912_v52 = vpop.f32.mrb[106].mxu0 }
 0x1b0   :  { %v3023_v28 = vmax.f32 %v5321_v48, %v2959_v11  ;;  %v2897_v42 = vmax.f32 %v2739_v30, 0.0  ;;  %v4012_v50 = vpop.f32.mrb[106].mxu1  ;;  %v2049_v44 = vadd.f32 %v5406_v51, %v3912_v52  ;;  %v2043_v45 = vpop.f32.mrb[107].mxu0 }
 0x1b1   :  { %3089 = vst.msk [vmem:[%s5881_s6 + $0x138] sm:$0xff] %vm3049_vm4, %v3024_v36  ;;  %v2962_v35 = vmax.f32 %v2193_v39, %v2898_v47  ;;  %v2754_v40 = vadd.f32 %v5406_v51, %v4012_v50  ;;  %v2748_v32 = vpop.f32.mrb[107].mxu1  ;;  %v2044_v59 = vadd.f32 %v5406_v51, %v2043_v45 }
 0x1b2   :  { %3088 = vst.msk [vmem:[%s5881_s6 + $0x130] sm:$0xff] %vm3049_vm4, %v3023_v28  ;;  %v2961_v48 = vmax.f32 %v2192_v38, %v2897_v42  ;;  %v2749_v2 = vadd.f32 %v5406_v51, %v2748_v32  ;;  %v2195_v16 = vmax.f32 %v2049_v44, 0.0  ;;  %v5907_v42 = vld [vmem:[#allocation5_spill] sm:$0xff]  ;;  %v5908_v44 = vld [vmem:[#allocation6_spill] sm:$0xff] }
 0x1b3   :  { %v3026_v49 = vmax.f32 %v5325_v6, %v2962_v35  ;;  %v2900_v22 = vmax.f32 %v2754_v40, 0.0  ;;  %v2194_v10 = vmax.f32 %v2044_v59, 0.0  ;;  %v3915_v15 = vpop.f32.mrb[108].mxu0 }
 0x1b4   :  { %v3025_v54 = vmax.f32 %v5329_v19, %v2961_v48  ;;  %v2899_v20 = vmax.f32 %v2749_v2, 0.0  ;;  %v4015_v7 = vpop.f32.mrb[108].mxu1  ;;  %v2059_v58 = vadd.f32 %v5406_v51, %v3915_v15  ;;  %v2053_v53 = vpop.f32.mrb[109].mxu0 }
 0x1b5   :  { %3091 = vst.msk [vmem:[%s5881_s6 + $0x148] sm:$0xff] %vm3049_vm4, %v3026_v49  ;;  %v2964_v13 = vmax.f32 %v2195_v16, %v2900_v22  ;;  %v2764_v4 = vadd.f32 %v5406_v51, %v4015_v7  ;;  %v2758_v6 = vpop.f32.mrb[109].mxu1  ;;  %v2054_v57 = vadd.f32 %v5406_v51, %v2053_v53  ;;  %v5909_v7 = vld [vmem:[#allocation7_spill] sm:$0xff]  ;;  %v5910_v53 = vld [vmem:[#allocation8_spill] sm:$0xff] }
 0x1b6   :  { %3090 = vst.msk [vmem:[%s5881_s6 + $0x140] sm:$0xff] %vm3049_vm4, %v3025_v54  ;;  %v2963_v19 = vmax.f32 %v2194_v10, %v2899_v20  ;;  %v2759_v5 = vadd.f32 %v5406_v51, %v2758_v6  ;;  %v2197_v31 = vmax.f32 %v2059_v58, 0.0 }
 0x1b7   :  { %v3028_v12 = vmax.f32 %v5333_v41, %v2964_v13  ;;  %v2902_v55 = vmax.f32 %v2764_v4, 0.0  ;;  %v2196_v26 = vmax.f32 %v2054_v57, 0.0  ;;  %v3918_v25 = vpop.f32.mrb[110].mxu0 }
 0x1b8   :  { %v3027_v27 = vmax.f32 %v5904_v21, %v2963_v19  ;;  %v2901_v18 = vmax.f32 %v2759_v5, 0.0  ;;  %v4018_v0 = vpop.f32.mrb[110].mxu1  ;;  %v2069_v46 = vadd.f32 %v5406_v51, %v3918_v25  ;;  %v2063_v60 = vpop.f32.mrb[111].mxu0 }
 0x1b9   :  { %3093 = vst.msk [vmem:[%s5881_s6 + $0x158] sm:$0xff] %vm3049_vm4, %v3028_v12  ;;  %v2966_v33 = vmax.f32 %v2197_v31, %v2902_v55  ;;  %v2774_v56 = vadd.f32 %v5406_v51, %v4018_v0  ;;  %v2768_v41 = vpop.f32.mrb[111].mxu1  ;;  %v2064_v43 = vadd.f32 %v5406_v51, %v2063_v60 }
 0x1ba   :  { %3092 = vst.msk [vmem:[%s5881_s6 + $0x150] sm:$0xff] %vm3049_vm4, %v3027_v27  ;;  %v2965_v37 = vmax.f32 %v2196_v26, %v2901_v18  ;;  %v2769_v14 = vadd.f32 %v5406_v51, %v2768_v41  ;;  %v2199_v23 = vmax.f32 %v2069_v46, 0.0  ;;  %v5912_v41 = vld [vmem:[#allocation10_spill] sm:$0xff] }
 0x1bb   :  { %v3030_v29 = vmax.f32 %v5905_v17, %v2966_v33  ;;  %v2904_v1 = vmax.f32 %v2774_v56, 0.0  ;;  %v2198_v62 = vmax.f32 %v2064_v43, 0.0  ;;  %v3921_v3 = vpop.f32.mrb[112].mxu0  ;;  %v5911_v33 = vld [vmem:[#allocation9_spill] sm:$0xff] }
 0x1bc   :  { %v3029_v61 = vmax.f32 %v5906_v9, %v2965_v37  ;;  %v2903_v24 = vmax.f32 %v2769_v14, 0.0  ;;  %v4021_v63 = vpop.f32.mrb[112].mxu1  ;;  %v2079_v8 = vadd.f32 %v5406_v51, %v3921_v3  ;;  %v2073_v36 = vpop.f32.mrb[113].mxu0  ;;  %v5795_v3 = vld [vmem:[%s5880_s5] ss:$0 sm:$0xff] }
 0x1bd   :  { %3095 = vst.msk [vmem:[%s5881_s6 + $0x168] sm:$0xff] %vm3049_vm4, %v3030_v29  ;;  %v2968_v11 = vmax.f32 %v2199_v23, %v2904_v1  ;;  %v2784_v30 = vadd.f32 %v5406_v51, %v4021_v63  ;;  %v2778_v39 = vpop.f32.mrb[113].mxu1  ;;  %v2074_v28 = vadd.f32 %v5406_v51, %v2073_v36 }
 0x1be   :  { %3094 = vst.msk [vmem:[%s5881_s6 + $0x160] sm:$0xff] %vm3049_vm4, %v3029_v61  ;;  %v2967_v47 = vmax.f32 %v2198_v62, %v2903_v24  ;;  %v2779_v38 = vadd.f32 %v5406_v51, %v2778_v39  ;;  %v2201_v50 = vmax.f32 %v2079_v8, 0.0  ;;  %v5913_v8 = vld [vmem:[#allocation11_spill] sm:$0xff]  ;;  %v5914_v39 = vld [vmem:[#allocation12_spill] sm:$0xff] }
 0x1bf   :  { %v3032_v52 = vmax.f32 %v5907_v42, %v2968_v11  ;;  %v2906_v35 = vmax.f32 %v2784_v30, 0.0  ;;  %v2200_v45 = vmax.f32 %v2074_v28, 0.0  ;;  %v3924_v48 = vpop.f32.mrb[114].mxu0 }
 0x1c0   :  { %v3031_v40 = vmax.f32 %v5908_v44, %v2967_v47  ;;  %v2905_v32 = vmax.f32 %v2779_v38, 0.0  ;;  %v4024_v59 = vpop.f32.mrb[114].mxu1  ;;  %v2089_v49 = vadd.f32 %v5406_v51, %v3924_v48  ;;  %v2083_v22 = vpop.f32.mrb[115].mxu0 }
 0x1c1   :  { %3097 = vst.msk [vmem:[%s5881_s6 + $0x178] sm:$0xff] %vm3049_vm4, %v3032_v52  ;;  %v2970_v2 = vmax.f32 %v2201_v50, %v2906_v35  ;;  %v2794_v16 = vadd.f32 %v5406_v51, %v4024_v59  ;;  %v2788_v54 = vpop.f32.mrb[115].mxu1  ;;  %v2084_v20 = vadd.f32 %v5406_v51, %v2083_v22 }
 0x1c2   :  { %3096 = vst.msk [vmem:[%s5881_s6 + $0x170] sm:$0xff] %vm3049_vm4, %v3031_v40  ;;  %v2969_v10 = vmax.f32 %v2200_v45, %v2905_v32  ;;  %v2789_v15 = vadd.f32 %v5406_v51, %v2788_v54  ;;  %v2203_v58 = vmax.f32 %v2089_v49, 0.0  ;;  %v5916_v54 = vld [vmem:[#allocation14_spill] sm:$0xff] }
 0x1c3   :  { %v3034_v13 = vmax.f32 %v5909_v7, %v2970_v2  ;;  %v2908_v4 = vmax.f32 %v2794_v16, 0.0  ;;  %v2202_v19 = vmax.f32 %v2084_v20, 0.0  ;;  %v3927_v5 = vpop.f32.mrb[116].mxu0  ;;  %v5915_v2 = vld [vmem:[#allocation13_spill] sm:$0xff] }
 0x1c4   :  { %v3033_v6 = vmax.f32 %v5910_v53, %v2969_v10  ;;  %v2907_v57 = vmax.f32 %v2789_v15, 0.0  ;;  %v4027_v12 = vpop.f32.mrb[116].mxu1  ;;  %v2099_v55 = vadd.f32 %v5406_v51, %v3927_v5  ;;  %v2093_v27 = vpop.f32.mrb[117].mxu0 }
 0x1c5   :  { %3099 = vst.msk [vmem:[%s5881_s6 + $0x188] sm:$0xff] %vm3049_vm4, %v3034_v13  ;;  %v2972_v31 = vmax.f32 %v2203_v58, %v2908_v4  ;;  %v2804_v21 = vadd.f32 %v5406_v51, %v4027_v12  ;;  %v2798_v26 = vpop.f32.mrb[117].mxu1  ;;  %v2094_v25 = vadd.f32 %v5406_v51, %v2093_v27 }
 0x1c6   :  { %3098 = vst.msk [vmem:[%s5881_s6 + $0x180] sm:$0xff] %vm3049_vm4, %v3033_v6  ;;  %v2971_v18 = vmax.f32 %v2202_v19, %v2907_v57  ;;  %v2799_v0 = vadd.f32 %v5406_v51, %v2798_v26  ;;  %v2205_v56 = vmax.f32 %v2099_v55, 0.0  ;;  %v5918_v26 = vld [vmem:[#allocation16_spill] sm:$0xff] }
 0x1c7   :  { %v3036_v46 = vmax.f32 %v5911_v33, %v2972_v31  ;;  %v2910_v60 = vmax.f32 %v2804_v21, 0.0  ;;  %v2204_v43 = vmax.f32 %v2094_v25, 0.0  ;;  %v3930_v17 = vpop.f32.mrb[118].mxu0  ;;  %v5917_v31 = vld [vmem:[#allocation15_spill] sm:$0xff] }
 0x1c8   :  { %v3035_v37 = vmax.f32 %v5912_v41, %v2971_v18  ;;  %v2909_v14 = vmax.f32 %v2799_v0, 0.0  ;;  %v4030_v29 = vpop.f32.mrb[118].mxu1  ;;  %v2109_v1 = vadd.f32 %v5406_v51, %v3930_v17  ;;  %v2103_v61 = vpop.f32.mrb[119].mxu0 }
 0x1c9   :  { %3101 = vst.msk [vmem:[%s5881_s6 + $0x198] sm:$0xff] %vm3049_vm4, %v3036_v46  ;;  %v2974_v23 = vmax.f32 %v2205_v56, %v2910_v60  ;;  %v2814_v9 = vadd.f32 %v5406_v51, %v4030_v29  ;;  %v2808_v62 = vpop.f32.mrb[119].mxu1  ;;  %v2104_v63 = vadd.f32 %v5795_v3, %v2103_v61 }
 0x1ca   :  { %3100 = vst.msk [vmem:[%s5881_s6 + $0x190] sm:$0xff] %vm3049_vm4, %v3035_v37  ;;  %v2973_v24 = vmax.f32 %v2204_v43, %v2909_v14  ;;  %v2809_v11 = vadd.f32 %v5795_v3, %v2808_v62  ;;  %v2207_v51 = vmax.f32 %v2109_v1, 0.0  ;;  %v5920_v62 = vld [vmem:[#allocation18_spill] sm:$0xff] }
 0x1cb   :  { %v3038_v30 = vmax.f32 %v5913_v8, %v2974_v23  ;;  %v2912_v36 = vmax.f32 %v2814_v9, 0.0  ;;  %v2206_v28 = vmax.f32 %v2104_v63, 0.0  ;;  %v3933_v42 = vpop.f32.mrb[120].mxu0  ;;  %v5919_v23 = vld [vmem:[#allocation17_spill] sm:$0xff] }
 0x1cc   :  { %v3037_v47 = vmax.f32 %v5914_v39, %v2973_v24  ;;  %v2911_v38 = vmax.f32 %v2809_v11, 0.0  ;;  %v4033_v52 = vpop.f32.mrb[120].mxu1  ;;  %v2119_v35 = vadd.f32 %v5795_v3, %v3933_v42  ;;  %v2113_v40 = vpop.f32.mrb[121].mxu0 }
 0x1cd   :  { %3103 = vst.msk [vmem:[%s5881_s6 + $0x1a8] sm:$0xff] %vm3049_vm4, %v3038_v30  ;;  %v2976_v50 = vmax.f32 %v2207_v51, %v2912_v36  ;;  %v2824_v44 = vadd.f32 %v5795_v3, %v4033_v52  ;;  %v2818_v45 = vpop.f32.mrb[121].mxu1  ;;  %v2114_v48 = vadd.f32 %v5795_v3, %v2113_v40 }
 0x1ce   :  { %3102 = vst.msk [vmem:[%s5881_s6 + $0x1a0] sm:$0xff] %vm3049_vm4, %v3037_v47  ;;  %v2975_v32 = vmax.f32 %v2206_v28, %v2911_v38  ;;  %v2819_v59 = vadd.f32 %v5795_v3, %v2818_v45  ;;  %v2209_v16 = vmax.f32 %v2119_v35, 0.0  ;;  %v5922_v45 = vld [vmem:[#allocation20_spill] sm:$0xff] }
 0x1cf   :  { %v3040_v49 = vmax.f32 %v5915_v2, %v2976_v50  ;;  %v2914_v22 = vmax.f32 %v2824_v44, 0.0  ;;  %v2208_v20 = vmax.f32 %v2114_v48, 0.0  ;;  %v3936_v7 = vpop.f32.mrb[122].mxu0  ;;  %v5921_v50 = vld [vmem:[#allocation19_spill] sm:$0xff] }
 0x1d0   :  { %v3039_v10 = vmax.f32 %v5916_v54, %v2975_v32  ;;  %v2913_v15 = vmax.f32 %v2819_v59, 0.0  ;;  %v4036_v13 = vpop.f32.mrb[122].mxu1  ;;  %v2129_v4 = vadd.f32 %v5795_v3, %v3936_v7  ;;  %v2123_v6 = vpop.f32.mrb[123].mxu0 }
 0x1d1   :  { %3105 = vst.msk [vmem:[%s5881_s6 + $0x1b8] sm:$0xff] %vm3049_vm4, %v3040_v49  ;;  %v2978_v58 = vmax.f32 %v2209_v16, %v2914_v22  ;;  %v2834_v53 = vadd.f32 %v5795_v3, %v4036_v13  ;;  %v2828_v19 = vpop.f32.mrb[123].mxu1  ;;  %v2124_v5 = vadd.f32 %v5795_v3, %v2123_v6  ;;  %v5923_v49 = vld [vmem:[#allocation21_spill] sm:$0xff] }
 0x1d2   :  { %3104 = vst.msk [vmem:[%s5881_s6 + $0x1b0] sm:$0xff] %vm3049_vm4, %v3039_v10  ;;  %v2977_v57 = vmax.f32 %v2208_v20, %v2913_v15  ;;  %v2829_v12 = vadd.f32 %v5795_v3, %v2828_v19  ;;  %v2211_v21 = vmax.f32 %v2129_v4, 0.0 }
 0x1d3   :  { %v3042_v55 = vmax.f32 %v5917_v31, %v2978_v58  ;;  %v2916_v27 = vmax.f32 %v2834_v53, 0.0  ;;  %v2210_v25 = vmax.f32 %v2124_v5, 0.0  ;;  %v3939_v33 = vpop.f32.mrb[124].mxu0 }
 0x1d4   :  { %v3041_v18 = vmax.f32 %v5918_v26, %v2977_v57  ;;  %v2915_v0 = vmax.f32 %v2829_v12, 0.0  ;;  %v4039_v46 = vpop.f32.mrb[124].mxu1  ;;  %v2139_v60 = vadd.f32 %v5795_v3, %v3939_v33  ;;  %v2133_v37 = vpop.f32.mrb[125].mxu0 }
 0x1d5   :  { %3107 = vst.msk [vmem:[%s5881_s6 + $0x1c8] sm:$0xff] %vm3049_vm4, %v3042_v55  ;;  %v2980_v56 = vmax.f32 %v2211_v21, %v2916_v27  ;;  %v2844_v41 = vadd.f32 %v5795_v3, %v4039_v46  ;;  %v2838_v43 = vpop.f32.mrb[125].mxu1  ;;  %v2134_v17 = vadd.f32 %v5795_v3, %v2133_v37 }
 0x1d6   :  { %3106 = vst.msk [vmem:[%s5881_s6 + $0x1c0] sm:$0xff] %vm3049_vm4, %v3041_v18  ;;  %v2979_v14 = vmax.f32 %v2210_v25, %v2915_v0  ;;  %v2839_v29 = vadd.f32 %v5795_v3, %v2838_v43  ;;  %v2213_v9 = vmax.f32 %v2139_v60, 0.0 }
 0x1d7   :  { %v3044_v1 = vmax.f32 %v5919_v23, %v2980_v56  ;;  %v2918_v61 = vmax.f32 %v2844_v41, 0.0  ;;  %v2212_v63 = vmax.f32 %v2134_v17, 0.0  ;;  %v3942_v8 = vpop.f32.mrb[126].mxu0 }
 0x1d8   :  { %v3043_v24 = vmax.f32 %v5920_v62, %v2979_v14  ;;  %v2917_v11 = vmax.f32 %v2839_v29, 0.0  ;;  %v4042_v30 = vpop.f32.mrb[126].mxu1  ;;  %v2149_v36 = vadd.f32 %v5795_v3, %v3942_v8  ;;  %v2143_v47 = vpop.f32.mrb[127].mxu0 }
 0x1d9   :  { %3109 = vst.msk [vmem:[%s5881_s6 + $0x1d8] sm:$0xff] %vm3049_vm4, %v3044_v1  ;;  %v2982_v51 = vmax.f32 %v2213_v9, %v2918_v61  ;;  %v2854_v39 = vadd.f32 %v5795_v3, %v4042_v30  ;;  %v2848_v28 = vpop.f32.mrb[127].mxu1  ;;  %v2144_v42 = vadd.f32 %v5795_v3, %v2143_v47 }
 0x1da   :  { %3108 = vst.msk [vmem:[%s5881_s6 + $0x1d0] sm:$0xff] %vm3049_vm4, %v3043_v24  ;;  %v2981_v38 = vmax.f32 %v2212_v63, %v2917_v11  ;;  %v2849_v52 = vadd.f32 %v5795_v3, %v2848_v28  ;;  %v2215_v44 = vmax.f32 %v2149_v36, 0.0 }
 0x1db   :  { %v3046_v35 = vmax.f32 %v5921_v50, %v2982_v51  ;;  %v2920_v40 = vmax.f32 %v2854_v39, 0.0  ;;  %v2214_v48 = vmax.f32 %v2144_v42, 0.0 }
 0x1dc   :  { %v3045_v32 = vmax.f32 %v5922_v45, %v2981_v38  ;;  %v2919_v59 = vmax.f32 %v2849_v52, 0.0 }
 0x1dd   :  { %3111 = vst.msk [vmem:[%s5881_s6 + $0x1e8] sm:$0xff] %vm3049_vm4, %v3046_v35  ;;  %v2984_v2 = vmax.f32 %v2215_v44, %v2920_v40 }
 0x1de   :  { %3110 = vst.msk [vmem:[%s5881_s6 + $0x1e0] sm:$0xff] %vm3049_vm4, %v3045_v32  ;;  %v2983_v3 = vmax.f32 %v2214_v48, %v2919_v59 }
 0x1df   :  { %v3048_v16 = vmax.f32 %v5923_v49, %v2984_v2 }
 0x1e0   :  { %v3047_v22 = vmax.f32 %v5422_v34, %v2983_v3 }
 0x1e1   :  { %3113 = vst.msk [vmem:[%s5881_s6 + $0x1f8] sm:$0xff] %vm3049_vm4, %v3048_v16 }
 0x1e2   :  { %3112 = vst.msk [vmem:[%s5881_s6 + $0x1f0] sm:$0xff] %vm3049_vm4, %v3047_v22 }

// kernel: fashion_cnn_forward.4
= control target key start
LH: loop header
LB: loop body
LE: loop exit
PB: predicated region body
PF: predicated region fallthrough
CT: control target
= control target key end

     0   :  { %vm114_vm0 = vcmask 261120   ;;  %vm1723_vm1 = vcmask 523264   ;;  %s3795_s4 = inlined_call_operand.vmem [shape: f32[288,64], index: 4, kind: input, shape index: {}]   ;;  %s3796_s0 = inlined_call_operand.vmem [shape: f32[128,288], index: 0, kind: input, shape index: {}]   ;;  %s3797_s1 = inlined_call_operand.vmem [shape: f32[128,288], index: 1, kind: input, shape index: {}]   ;;  %s3798_s2 = inlined_call_operand.vmem [shape: f32[128,288], index: 2, kind: input, shape index: {}]   ;;  %s3799_s3 = inlined_call_operand.vmem [shape: f32[128,288], index: 3, kind: input, shape index: {}]   ;;  %s3800_s5 = inlined_call_operand.vmem [shape: f32[1,64], index: 5, kind: input, shape index: {}]   ;;  %s3801_s6 = inlined_call_operand.vmem [shape: f32[128,64], index: 6, kind: output, shape index: {}]  }
   0x1   :  { %v39_v0 = vld [vmem:[%s3795_s4 + $0x80] sm:$0xff]  ;;  %v40_v1 = vld [vmem:[%s3795_s4 + $0x88] sm:$0xff]  ;;  %v41_v9 = vld [vmem:[%s3795_s4 + $0x90] sm:$0xff] }
   0x2   :  { %v55_v2 = vld [vmem:[%s3795_s4 + $0x100] sm:$0xff]  ;;  %v2557_v3 = vpack.c.bf16 %v40_v1, %v39_v0  ;;  %v56_v4 = vld [vmem:[%s3795_s4 + $0x108] sm:$0xff]  ;;  %v42_v10 = vld [vmem:[%s3795_s4 + $0x98] sm:$0xff] }
   0x3   :  { %v23_v5 = vld [vmem:[%s3795_s4] sm:$0xff]  ;;  %v24_v6 = vld [vmem:[%s3795_s4 + $0x8] sm:$0xff]  ;;  %v2568_v7 = vpack.c.bf16 %v56_v4, %v55_v2  ;;  %v57_v11 = vld [vmem:[%s3795_s4 + $0x110] sm:$0xff]  ;;  %v2582_v12 = vpack.c.bf16 %v42_v10, %v41_v9 }
   0x4   :  { %v2570_v8 = vpack.c.bf16 %v24_v6, %v23_v5  ;;  %2338 = vmatprep.subr.bf16.mxu0 %v2557_v3  ;;  %v58_v13 = vld [vmem:[%s3795_s4 + $0x118] sm:$0xff]  ;;  %v25_v14 = vld [vmem:[%s3795_s4 + $0x10] sm:$0xff]  ;;  %v43_v19 = vld [vmem:[%s3795_s4 + $0xa0] sm:$0xff] }
   0x5   :  { %v26_v15 = vld [vmem:[%s3795_s4 + $0x18] sm:$0xff]  ;;  %2370 = vmatprep.subr.bf16.mxu1 %v2568_v7  ;;  %v2595_v16 = vpack.c.bf16 %v58_v13, %v57_v11  ;;  %v62_v18 = vld [vmem:[%s3796_s0 + $0x10] sm:$0xff]  ;;  %v44_v20 = vld [vmem:[%s3795_s4 + $0xa8] sm:$0xff] }
   0x6   :  { %2340 = vmatpush3.bf16.msra.mxu0 %v2570_v8  ;;  %v2597_v17 = vpack.c.bf16 %v26_v15, %v25_v14  ;;  %2372 = vmatpush3.bf16.msra.mxu1 %v2568_v7  ;;  %v2610_v21 = vpack.c.bf16 %v44_v20, %v43_v19  ;;  %v27_v22 = vld [vmem:[%s3795_s4 + $0x20] sm:$0xff]  ;;  %v28_v23 = vld [vmem:[%s3795_s4 + $0x28] sm:$0xff]  ;;  %v45_v24 = vld [vmem:[%s3795_s4 + $0xb0] sm:$0xff] }
   0x7   :  { %2342 = vmatprep.subr.bf16.mxu0 %v2582_v12  ;;  %2374 = vmatprep.subr.bf16.mxu1 %v2595_v16  ;;  %v46_v25 = vld [vmem:[%s3795_s4 + $0xb8] sm:$0xff]  ;;  %v2627_v26 = vpack.c.bf16 %v28_v23, %v27_v22  ;;  %v65_v27 = vld [vmem:[%s3796_s0 + $0x28] sm:$0xff]  ;;  %v29_v28 = vld [vmem:[%s3795_s4 + $0x30] sm:$0xff] }
   0x8   :  { %2217 = vmatprep.mubr.msk.f32.mxu1 %vm114_vm0, %v62_v18  ;;  %v30_v29 = vld [vmem:[%s3795_s4 + $0x38] sm:$0xff]  ;;  %v68_v30 = vld [vmem:[%s3796_s0 + $0x40] sm:$0xff]  ;;  %v2644_v31 = vpack.c.bf16 %v46_v25, %v45_v24  ;;  %v48_v33 = vld [vmem:[%s3795_s4 + $0xc8] sm:$0xff] }
   0x9   :  { %v47_v32 = vld [vmem:[%s3795_s4 + $0xc0] sm:$0xff]  ;;  %v2654_v34 = vpack.c.bf16 %v30_v29, %v29_v28  ;;  %v71_v35 = vld [vmem:[%s3796_s0 + $0x58] sm:$0xff]  ;;  %v32_v37 = vld [vmem:[%s3795_s4 + $0x48] sm:$0xff] }
   0xa   :  { %2344 = vmatpush3.bf16.msra.mxu0 %v2597_v17  ;;  %2376 = vmatpush3.bf16.msra.mxu1 %v2595_v16  ;;  %v31_v36 = vld [vmem:[%s3795_s4 + $0x40] sm:$0xff]  ;;  %v74_v38 = vld [vmem:[%s3796_s0 + $0x70] sm:$0xff]  ;;  %v2672_v39 = vpack.c.bf16 %v48_v33, %v47_v32  ;;  %v50_v41 = vld [vmem:[%s3795_s4 + $0xd8] sm:$0xff] }
   0xb   :  { %2346 = vmatprep.subr.bf16.mxu0 %v2610_v21  ;;  %2378 = vmatprep.subr.bf16.mxu1 %v2557_v3  ;;  %v49_v40 = vld [vmem:[%s3795_s4 + $0xd0] sm:$0xff]  ;;  %v2682_v42 = vpack.c.bf16 %v32_v37, %v31_v36  ;;  %v61_v43 = vld [vmem:[%s3796_s0 + $0x8] sm:$0xff]  ;;  %v34_v46 = vld [vmem:[%s3795_s4 + $0x58] sm:$0xff] }
   0xc   :  { %v77_v44 = vld [vmem:[%s3796_s0 + $0x88] sm:$0xff]  ;;  %v33_v45 = vld [vmem:[%s3795_s4 + $0x50] sm:$0xff]  ;;  %v80_v47 = vld [vmem:[%s3796_s0 + $0xa0] sm:$0xff]  ;;  %v2703_v48 = vpack.c.bf16 %v50_v41, %v49_v40  ;;  %227 = vmatprep.mubr.f32.mxu0 %v61_v43 }
   0xd   :  { %2218 = vmatmul.mubr.msk.f32.vlgmr.msra.gmra.mrb[0].mxu1 %vm114_vm0, %v65_v27  ;;  %v51_v49 = vld [vmem:[%s3795_s4 + $0xe0] sm:$0xff]  ;;  %v52_v50 = vld [vmem:[%s3795_s4 + $0xe8] sm:$0xff]  ;;  %v2713_v51 = vpack.c.bf16 %v34_v46, %v33_v45  ;;  %v83_v52 = vld [vmem:[%s3796_s0 + $0xb8] sm:$0xff] }
   0xe   :  { %2348 = vmatpush3.bf16.msra.mxu0 %v2627_v26  ;;  %2380 = vmatpush3.bf16.msra.mxu1 %v2570_v8  ;;  %v35_v53 = vld [vmem:[%s3795_s4 + $0x60] sm:$0xff]  ;;  %v36_v54 = vld [vmem:[%s3795_s4 + $0x68] sm:$0xff]  ;;  %v86_v55 = vld [vmem:[%s3796_s0 + $0xd0] sm:$0xff]  ;;  %v2731_v56 = vpack.c.bf16 %v52_v50, %v51_v49 }
   0xf   :  { %2220 = vmatprep.mubr.msk.f32.mxu1 %vm114_vm0, %v68_v30  ;;  %2350 = vmatprep.subr.bf16.mxu0 %v2644_v31  ;;  %v53_v57 = vld [vmem:[%s3795_s4 + $0xf0] sm:$0xff]  ;;  %v54_v58 = vld [vmem:[%s3795_s4 + $0xf8] sm:$0xff]  ;;  %v2741_v59 = vpack.c.bf16 %v36_v54, %v35_v53  ;;  %v89_v60 = vld [vmem:[%s3796_s0 + $0xe8] sm:$0xff] }
  0x10   :  { %2382 = vmatprep.subr.bf16.mxu1 %v2582_v12  ;;  %v37_v61 = vld [vmem:[%s3795_s4 + $0x70] sm:$0xff]  ;;  %v38_v62 = vld [vmem:[%s3795_s4 + $0x78] sm:$0xff]  ;;  %v92_v63 = vld [vmem:[%s3796_s0 + $0x100] sm:$0xff]  ;;  %v2759_v0 = vpack.c.bf16 %v54_v58, %v53_v57 }
  0x11   :  { %2221 = vmatmul.mubr.msk.f32.gmra.mrb[2].mxu1 %vm114_vm0, %v71_v35  ;;  %v2763_v1 = vpack.c.bf16 %v38_v62, %v37_v61  ;;  %v95_v2 = vld [vmem:[%s3796_s0 + $0x118] sm:$0xff]  ;;  %v98_v4 = vld [vmem:[%s3796_s0 + $0x130] sm:$0xff]  ;;  %v60_v5 = vld [vmem:[%s3796_s0] sm:$0xff] }
  0x12   :  { %2352 = vmatpush3.bf16.msra.mxu0 %v2654_v34  ;;  %2384 = vmatpush3.bf16.msra.mxu1 %v2597_v17  ;;  %v101_v6 = vld [vmem:[%s3796_s0 + $0x148] sm:$0xff]  ;;  %v64_v9 = vld [vmem:[%s3796_s0 + $0x20] sm:$0xff]  ;;  %v63_v11 = vld [vmem:[%s3796_s0 + $0x18] sm:$0xff] }
  0x13   :  { %2223 = vmatprep.mubr.msk.f32.mxu1 %vm114_vm0, %v74_v38  ;;  %2354 = vmatprep.subr.bf16.mxu0 %v2672_v39  ;;  %v104_v10 = vld [vmem:[%s3796_s0 + $0x160] sm:$0xff]  ;;  %v107_v13 = vld [vmem:[%s3796_s0 + $0x178] sm:$0xff]  ;;  %v470_v15 = vld [vmem:[%s3797_s1 + $0x8] sm:$0xff] }
  0x14   :  { %2386 = vmatprep.subr.bf16.mxu1 %v2610_v21  ;;  %v67_v14 = vld [vmem:[%s3796_s0 + $0x38] sm:$0xff]  ;;  %v66_v18 = vld [vmem:[%s3796_s0 + $0x30] sm:$0xff]  ;;  %v469_v19 = vld [vmem:[%s3797_s1] sm:$0xff] }
  0x15   :  { %2224 = vmatmul.mubr.msk.f32.gmra.mrb[4].mxu1 %vm114_vm0, %v77_v44  ;;  %v70_v20 = vld [vmem:[%s3796_s0 + $0x50] sm:$0xff]  ;;  %v473_v22 = vld [vmem:[%s3797_s1 + $0x20] sm:$0xff]  ;;  %v69_v23 = vld [vmem:[%s3796_s0 + $0x48] sm:$0xff] }
  0x16   :  { %2356 = vmatpush3.bf16.msra.mxu0 %v2682_v42  ;;  %2388 = vmatpush3.bf16.msra.mxu1 %v2627_v26  ;;  %v472_v24 = vld [vmem:[%s3797_s1 + $0x18] sm:$0xff]  ;;  %v73_v25 = vld [vmem:[%s3796_s0 + $0x68] sm:$0xff]  ;;  %v72_v28 = vld [vmem:[%s3796_s0 + $0x60] sm:$0xff] }
  0x17   :  { %2226 = vmatprep.mubr.msk.f32.mxu1 %vm114_vm0, %v80_v47  ;;  %2358 = vmatprep.subr.bf16.mxu0 %v2703_v48  ;;  %v476_v27 = vld [vmem:[%s3797_s1 + $0x38] sm:$0xff]  ;;  %v475_v29 = vld [vmem:[%s3797_s1 + $0x30] sm:$0xff]  ;;  %v76_v30 = vld [vmem:[%s3796_s0 + $0x80] sm:$0xff] }
  0x18   :  { %2390 = vmatprep.subr.bf16.mxu1 %v2644_v31  ;;  %v479_v32 = vld [vmem:[%s3797_s1 + $0x50] sm:$0xff]  ;;  %v75_v33 = vld [vmem:[%s3796_s0 + $0x78] sm:$0xff]  ;;  %v478_v35 = vld [vmem:[%s3797_s1 + $0x48] sm:$0xff] }
  0x19   :  { %2227 = vmatmul.mubr.msk.f32.gmra.mrb[6].mxu1 %vm114_vm0, %v83_v52  ;;  %v79_v36 = vld [vmem:[%s3796_s0 + $0x98] sm:$0xff]  ;;  %v482_v37 = vld [vmem:[%s3797_s1 + $0x68] sm:$0xff]  ;;  %v78_v38 = vld [vmem:[%s3796_s0 + $0x90] sm:$0xff] }
  0x1a   :  { %2360 = vmatpush3.bf16.msra.mxu0 %v2713_v51  ;;  %2392 = vmatpush3.bf16.msra.mxu1 %v2654_v34  ;;  %v481_v40 = vld [vmem:[%s3797_s1 + $0x60] sm:$0xff]  ;;  %v82_v41 = vld [vmem:[%s3796_s0 + $0xb0] sm:$0xff]  ;;  %v81_v44 = vld [vmem:[%s3796_s0 + $0xa8] sm:$0xff] }
  0x1b   :  { %2229 = vmatprep.mubr.msk.f32.mxu1 %vm114_vm0, %v86_v55  ;;  %2362 = vmatprep.subr.bf16.mxu0 %v2731_v56  ;;  %v485_v43 = vld [vmem:[%s3797_s1 + $0x80] sm:$0xff]  ;;  %v484_v45 = vld [vmem:[%s3797_s1 + $0x78] sm:$0xff]  ;;  %v85_v46 = vld [vmem:[%s3796_s0 + $0xc8] sm:$0xff] }
  0x1c   :  { %2394 = vmatprep.subr.bf16.mxu1 %v2672_v39  ;;  %v488_v47 = vld [vmem:[%s3797_s1 + $0x98] sm:$0xff]  ;;  %v84_v49 = vld [vmem:[%s3796_s0 + $0xc0] sm:$0xff]  ;;  %v487_v50 = vld [vmem:[%s3797_s1 + $0x90] sm:$0xff] }
  0x1d   :  { %2230 = vmatmul.mubr.msk.f32.gmra.mrb[8].mxu1 %vm114_vm0, %v89_v60  ;;  %v88_v52 = vld [vmem:[%s3796_s0 + $0xe0] sm:$0xff]  ;;  %v491_v53 = vld [vmem:[%s3797_s1 + $0xb0] sm:$0xff]  ;;  %v87_v54 = vld [vmem:[%s3796_s0 + $0xd8] sm:$0xff] }
  0x1e   :  { %2364 = vmatpush3.bf16.msra.mxu0 %v2741_v59  ;;  %2396 = vmatpush3.bf16.msra.mxu1 %v2682_v42  ;;  %v490_v55 = vld [vmem:[%s3797_s1 + $0xa8] sm:$0xff]  ;;  %v91_v57 = vld [vmem:[%s3796_s0 + $0xf8] sm:$0xff]  ;;  %v90_v60 = vld [vmem:[%s3796_s0 + $0xf0] sm:$0xff] }
  0x1f   :  { %2232 = vmatprep.mubr.msk.f32.mxu1 %vm114_vm0, %v92_v63  ;;  %2366 = vmatprep.subr.bf16.mxu0 %v2759_v0  ;;  %v494_v58 = vld [vmem:[%s3797_s1 + $0xc8] sm:$0xff]  ;;  %v493_v61 = vld [vmem:[%s3797_s1 + $0xc0] sm:$0xff]  ;;  %v94_v62 = vld [vmem:[%s3796_s0 + $0x110] sm:$0xff] }
  0x20   :  { %2398 = vmatprep.subr.bf16.mxu1 %v2703_v48  ;;  %v497_v63 = vld [vmem:[%s3797_s1 + $0xe0] sm:$0xff] }
  0x21   :  { %2233 = vmatmul.mubr.msk.f32.gmra.mrb[10].mxu1 %vm114_vm0, %v95_v2  ;;  %v93_v2 = vld [vmem:[%s3796_s0 + $0x108] sm:$0xff] }
  0x22   :  { %2368 = vmatpush3.bf16.msra.mxu0 %v2763_v1  ;;  %2400 = vmatpush3.bf16.msra.mxu1 %v2713_v51 }
  0x23   :  { %2235 = vmatprep.mubr.msk.f32.mxu1 %vm114_vm0, %v98_v4  ;;  %2402 = vmatprep.subr.bf16.mxu1 %v2731_v56  ;;  %v496_v4 = vld [vmem:[%s3797_s1 + $0xd8] sm:$0xff] }
  0x24   :  { %2410 = vmatprep.subr.bf16.mxu0 %v2568_v7 }
  0x25   :  { %228 = vmatmul.mubr.f32.vlgmr.msra.gmra.mrb[0].mxu0 %v60_v5  ;;  %2236 = vmatmul.mubr.msk.f32.gmra.mrb[12].mxu1 %vm114_vm0, %v101_v6  ;;  %v97_v5 = vld [vmem:[%s3796_s0 + $0x128] sm:$0xff]  ;;  %v500_v6 = vld [vmem:[%s3797_s1 + $0xf8] sm:$0xff] }
  0x26   :  { %2412 = vmatpush3.bf16.msra.mxu0 %v2568_v7  ;;  %2404 = vmatpush3.bf16.msra.mxu1 %v2741_v59 }
  0x27   :  { %232 = vmatprep.mubr.f32.mxu0 %v64_v9  ;;  %2238 = vmatprep.mubr.msk.f32.mxu1 %vm114_vm0, %v104_v10  ;;  %v96_v9 = vld [vmem:[%s3796_s0 + $0x120] sm:$0xff]  ;;  %v499_v10 = vld [vmem:[%s3797_s1 + $0xf0] sm:$0xff] }
  0x28   :  { %2406 = vmatprep.subr.bf16.mxu1 %v2759_v0  ;;  %2414 = vmatprep.subr.bf16.mxu0 %v2595_v16 }
  0x29   :  { %233 = vmatmul.mubr.f32.gmra.mrb[2].mxu0 %v63_v11  ;;  %2239 = vmatmul.mubr.msk.f32.gmra.mrb[14].mxu1 %vm114_vm0, %v107_v13  ;;  %v100_v11 = vld [vmem:[%s3796_s0 + $0x140] sm:$0xff]  ;;  %v503_v13 = vld [vmem:[%s3797_s1 + $0x110] sm:$0xff] }
  0x2a   :  { %237 = vmatprep.mubr.f32.mxu0 %v67_v14  ;;  %2408 = vmatpush3.bf16.msra.mxu1 %v2763_v1  ;;  %v99_v14 = vld [vmem:[%s3796_s0 + $0x138] sm:$0xff] }
  0x2b   :  { %629 = vmatprep.mubr.f32.mxu1 %v470_v15  ;;  %2418 = vmatprep.subr.bf16.mxu1 %v2557_v3  ;;  %v502_v15 = vld [vmem:[%s3797_s1 + $0x108] sm:$0xff] }
  0x2c   :  { %2416 = vmatpush3.bf16.msra.mxu0 %v2595_v16 }
  0x2d   :  { %238 = vmatmul.mubr.f32.gmra.mrb[4].mxu0 %v66_v18  ;;  %2450 = vmatprep.subr.bf16.mxu0 %v2568_v7  ;;  %v103_v18 = vld [vmem:[%s3796_s0 + $0x158] sm:$0xff] }
  0x2e   :  { %630 = vmatmul.mubr.f32.vlgmr.msra.gmra.mrb[16].mxu1 %v469_v19  ;;  %242 = vmatprep.mubr.f32.mxu0 %v70_v20  ;;  %v506_v19 = vld [vmem:[%s3797_s1 + $0x128] sm:$0xff]  ;;  %v102_v20 = vld [vmem:[%s3796_s0 + $0x150] sm:$0xff] }
  0x2f   :  { %634 = vmatprep.mubr.f32.mxu1 %v473_v22  ;;  %2420 = vmatpush3.bf16.msra.mxu1 %v2570_v8  ;;  %v505_v22 = vld [vmem:[%s3797_s1 + $0x120] sm:$0xff] }
  0x30   :  { %2422 = vmatprep.subr.bf16.mxu1 %v2582_v12 }
  0x31   :  { %243 = vmatmul.mubr.f32.gmra.mrb[6].mxu0 %v69_v23  ;;  %v106_v23 = vld [vmem:[%s3796_s0 + $0x170] sm:$0xff] }
  0x32   :  { %635 = vmatmul.mubr.f32.gmra.mrb[18].mxu1 %v472_v24  ;;  %247 = vmatprep.mubr.f32.mxu0 %v73_v25  ;;  %v509_v24 = vld [vmem:[%s3797_s1 + $0x140] sm:$0xff]  ;;  %v105_v25 = vld [vmem:[%s3796_s0 + $0x168] sm:$0xff] }
  0x33   :  { %639 = vmatprep.mubr.f32.mxu1 %v476_v27  ;;  %2424 = vmatpush3.bf16.msra.mxu1 %v2597_v17  ;;  %v508_v27 = vld [vmem:[%s3797_s1 + $0x138] sm:$0xff] }
  0x34   :  { %2426 = vmatprep.subr.bf16.mxu1 %v2610_v21 }
  0x35   :  { %248 = vmatmul.mubr.f32.gmra.mrb[8].mxu0 %v72_v28  ;;  %v471_v28 = vld [vmem:[%s3797_s1 + $0x10] sm:$0xff] }
  0x36   :  { %640 = vmatmul.mubr.f32.gmra.mrb[20].mxu1 %v475_v29  ;;  %252 = vmatprep.mubr.f32.mxu0 %v76_v30  ;;  %v512_v29 = vld [vmem:[%s3797_s1 + $0x158] sm:$0xff]  ;;  %v474_v30 = vld [vmem:[%s3797_s1 + $0x28] sm:$0xff] }
  0x37   :  { %644 = vmatprep.mubr.f32.mxu1 %v479_v32  ;;  %2428 = vmatpush3.bf16.msra.mxu1 %v2627_v26  ;;  %v511_v32 = vld [vmem:[%s3797_s1 + $0x150] sm:$0xff] }
  0x38   :  { %2430 = vmatprep.subr.bf16.mxu1 %v2644_v31 }
  0x39   :  { %253 = vmatmul.mubr.f32.gmra.mrb[10].mxu0 %v75_v33  ;;  %v515_v33 = vld [vmem:[%s3797_s1 + $0x170] sm:$0xff] }
  0x3a   :  { %645 = vmatmul.mubr.f32.gmra.mrb[22].mxu1 %v478_v35  ;;  %257 = vmatprep.mubr.f32.mxu0 %v79_v36  ;;  %v477_v35 = vld [vmem:[%s3797_s1 + $0x40] sm:$0xff]  ;;  %v480_v36 = vld [vmem:[%s3797_s1 + $0x58] sm:$0xff] }
  0x3b   :  { %649 = vmatprep.mubr.f32.mxu1 %v482_v37  ;;  %2432 = vmatpush3.bf16.msra.mxu1 %v2654_v34  ;;  %v514_v37 = vld [vmem:[%s3797_s1 + $0x168] sm:$0xff] }
  0x3c   :  { %2434 = vmatprep.subr.bf16.mxu1 %v2672_v39 }
  0x3d   :  { %258 = vmatmul.mubr.f32.gmra.mrb[12].mxu0 %v78_v38  ;;  %v483_v38 = vld [vmem:[%s3797_s1 + $0x70] sm:$0xff] }
  0x3e   :  { %650 = vmatmul.mubr.f32.gmra.mrb[24].mxu1 %v481_v40  ;;  %262 = vmatprep.mubr.f32.mxu0 %v82_v41  ;;  %v888_v40 = vld [vmem:[%s3798_s2 + $0x8] sm:$0xff] }
  0x3f   :  { %654 = vmatprep.mubr.f32.mxu1 %v485_v43  ;;  %2436 = vmatpush3.bf16.msra.mxu1 %v2682_v42  ;;  %v486_v41 = vld [vmem:[%s3797_s1 + $0x88] sm:$0xff]  ;;  %v887_v43 = vld [vmem:[%s3798_s2] sm:$0xff] }
  0x40   :  { %2438 = vmatprep.subr.bf16.mxu1 %v2703_v48 }
  0x41   :  { %263 = vmatmul.mubr.f32.gmra.mrb[14].mxu0 %v81_v44  ;;  %v489_v44 = vld [vmem:[%s3797_s1 + $0xa0] sm:$0xff] }
  0x42   :  { %655 = vmatmul.mubr.f32.gmra.mrb[26].mxu1 %v484_v45  ;;  %267 = vmatprep.mubr.f32.mxu0 %v85_v46  ;;  %v891_v45 = vld [vmem:[%s3798_s2 + $0x20] sm:$0xff]  ;;  %v492_v46 = vld [vmem:[%s3797_s1 + $0xb8] sm:$0xff] }
  0x43   :  { %659 = vmatprep.mubr.f32.mxu1 %v488_v47  ;;  %2440 = vmatpush3.bf16.msra.mxu1 %v2713_v51  ;;  %v890_v47 = vld [vmem:[%s3798_s2 + $0x18] sm:$0xff] }
  0x44   :  { %2442 = vmatprep.subr.bf16.mxu1 %v2731_v56 }
  0x45   :  { %268 = vmatmul.mubr.f32.gmra.mrb[16].mxu0 %v84_v49  ;;  %v894_v49 = vld [vmem:[%s3798_s2 + $0x38] sm:$0xff] }
  0x46   :  { %660 = vmatmul.mubr.f32.gmra.mrb[28].mxu1 %v487_v50  ;;  %272 = vmatprep.mubr.f32.mxu0 %v88_v52  ;;  %v498_v50 = vld [vmem:[%s3797_s1 + $0xe8] sm:$0xff]  ;;  %v893_v52 = vld [vmem:[%s3798_s2 + $0x30] sm:$0xff] }
  0x47   :  { %664 = vmatprep.mubr.f32.mxu1 %v491_v53  ;;  %2444 = vmatpush3.bf16.msra.mxu1 %v2741_v59  ;;  %v501_v53 = vld [vmem:[%s3797_s1 + $0x100] sm:$0xff] }
  0x48   :  { %2446 = vmatprep.subr.bf16.mxu1 %v2759_v0 }
  0x49   :  { %273 = vmatmul.mubr.f32.gmra.mrb[18].mxu0 %v87_v54  ;;  %v897_v54 = vld [vmem:[%s3798_s2 + $0x50] sm:$0xff] }
  0x4a   :  { %665 = vmatmul.mubr.f32.gmra.mrb[30].mxu1 %v490_v55  ;;  %277 = vmatprep.mubr.f32.mxu0 %v91_v57  ;;  %v504_v55 = vld [vmem:[%s3797_s1 + $0x118] sm:$0xff]  ;;  %v896_v57 = vld [vmem:[%s3798_s2 + $0x48] sm:$0xff] }
  0x4b   :  { %669 = vmatprep.mubr.f32.mxu1 %v494_v58  ;;  %2448 = vmatpush3.bf16.msra.mxu1 %v2763_v1  ;;  %v507_v58 = vld [vmem:[%s3797_s1 + $0x130] sm:$0xff] }
  0x4c   :  { %2497 = vmatprep.subr.bf16.mxu1 %v2557_v3 }
  0x4d   :  { %278 = vmatmul.mubr.f32.gmra.mrb[20].mxu0 %v90_v60  ;;  %v900_v60 = vld [vmem:[%s3798_s2 + $0x68] sm:$0xff] }
  0x4e   :  { %670 = vmatmul.mubr.f32.gmra.mrb[32].mxu1 %v493_v61  ;;  %282 = vmatprep.mubr.f32.mxu0 %v94_v62  ;;  %v510_v61 = vld [vmem:[%s3797_s1 + $0x148] sm:$0xff]  ;;  %v899_v62 = vld [vmem:[%s3798_s2 + $0x60] sm:$0xff] }
  0x4f   :  { %674 = vmatprep.mubr.f32.mxu1 %v497_v63  ;;  %v513_v63 = vld [vmem:[%s3797_s1 + $0x160] sm:$0xff] }
  0x51   :  { %283 = vmatmul.mubr.f32.gmra.mrb[22].mxu0 %v93_v2  ;;  %v903_v2 = vld [vmem:[%s3798_s2 + $0x80] sm:$0xff] }
  0x52   :  { %675 = vmatmul.mubr.f32.gmra.mrb[34].mxu1 %v496_v4  ;;  %287 = vmatprep.mubr.f32.mxu0 %v97_v5  ;;  %v516_v4 = vld [vmem:[%s3797_s1 + $0x178] sm:$0xff] }
  0x53   :  { %679 = vmatprep.mubr.f32.mxu1 %v500_v6  ;;  %v902_v5 = vld [vmem:[%s3798_s2 + $0x78] sm:$0xff]  ;;  %v889_v6 = vld [vmem:[%s3798_s2 + $0x10] sm:$0xff] }
  0x55   :  { %288 = vmatmul.mubr.f32.gmra.mrb[24].mxu0 %v96_v9  ;;  %v906_v9 = vld [vmem:[%s3798_s2 + $0x98] sm:$0xff] }
  0x56   :  { %680 = vmatmul.mubr.f32.gmra.mrb[36].mxu1 %v499_v10  ;;  %292 = vmatprep.mubr.f32.mxu0 %v100_v11  ;;  %v892_v10 = vld [vmem:[%s3798_s2 + $0x28] sm:$0xff]  ;;  %v905_v11 = vld [vmem:[%s3798_s2 + $0x90] sm:$0xff] }
  0x57   :  { %684 = vmatprep.mubr.f32.mxu1 %v503_v13  ;;  %v909_v13 = vld [vmem:[%s3798_s2 + $0xb0] sm:$0xff] }
  0x59   :  { %293 = vmatmul.mubr.f32.gmra.mrb[26].mxu0 %v99_v14  ;;  %v895_v14 = vld [vmem:[%s3798_s2 + $0x40] sm:$0xff] }
  0x5a   :  { %685 = vmatmul.mubr.f32.gmra.mrb[38].mxu1 %v502_v15  ;;  %297 = vmatprep.mubr.f32.mxu0 %v103_v18  ;;  %v898_v15 = vld [vmem:[%s3798_s2 + $0x58] sm:$0xff]  ;;  %v908_v18 = vld [vmem:[%s3798_s2 + $0xa8] sm:$0xff] }
  0x5b   :  { %689 = vmatprep.mubr.f32.mxu1 %v506_v19  ;;  %v912_v19 = vld [vmem:[%s3798_s2 + $0xc8] sm:$0xff] }
  0x5d   :  { %298 = vmatmul.mubr.f32.gmra.mrb[28].mxu0 %v102_v20  ;;  %v911_v20 = vld [vmem:[%s3798_s2 + $0xc0] sm:$0xff] }
  0x5e   :  { %690 = vmatmul.mubr.f32.gmra.mrb[40].mxu1 %v505_v22  ;;  %302 = vmatprep.mubr.f32.mxu0 %v106_v23  ;;  %v915_v22 = vld [vmem:[%s3798_s2 + $0xe0] sm:$0xff]  ;;  %v914_v23 = vld [vmem:[%s3798_s2 + $0xd8] sm:$0xff] }
  0x5f   :  { %694 = vmatprep.mubr.f32.mxu1 %v509_v24  ;;  %v918_v24 = vld [vmem:[%s3798_s2 + $0xf8] sm:$0xff] }
  0x61   :  { %303 = vmatmul.mubr.f32.gmra.mrb[30].mxu0 %v105_v25  ;;  %v916_v25 = vld [vmem:[%s3798_s2 + $0xe8] sm:$0xff] }
  0x62   :  { %695 = vmatmul.mubr.f32.gmra.mrb[42].mxu1 %v508_v27  ;;  %2249 = vmatprep.mubr.msk.f32.mxu0 %vm114_vm0, %v471_v28  ;;  %v921_v27 = vld [vmem:[%s3798_s2 + $0x110] sm:$0xff]  ;;  %v922_v28 = vld [vmem:[%s3798_s2 + $0x118] sm:$0xff] }
  0x63   :  { %699 = vmatprep.mubr.f32.mxu1 %v512_v29  ;;  %v924_v29 = vld [vmem:[%s3798_s2 + $0x128] sm:$0xff] }
  0x65   :  { %2250 = vmatmul.mubr.msk.f32.vlgmr.msra.gmra.mrb[32].mxu0 %vm114_vm0, %v474_v30  ;;  %v928_v30 = vld [vmem:[%s3798_s2 + $0x148] sm:$0xff] }
  0x66   :  { %700 = vmatmul.mubr.f32.gmra.mrb[44].mxu1 %v511_v32  ;;  %2452 = vmatpush3.bf16.msra.mxu0 %v2568_v7  ;;  %v927_v32 = vld [vmem:[%s3798_s2 + $0x140] sm:$0xff] }
  0x67   :  { %704 = vmatprep.mubr.f32.mxu1 %v515_v33  ;;  %2252 = vmatprep.mubr.msk.f32.mxu0 %vm114_vm0, %v477_v35  ;;  %v934_v33 = vld [vmem:[%s3798_s2 + $0x178] sm:$0xff] }
  0x68   :  { %2454 = vmatprep.subr.bf16.mxu0 %v2595_v16  ;;  %v930_v35 = vld [vmem:[%s3798_s2 + $0x158] sm:$0xff] }
  0x69   :  { %2253 = vmatmul.mubr.msk.f32.gmra.mrb[34].mxu0 %vm114_vm0, %v480_v36  ;;  %v1289_v36 = vld [vmem:[%s3799_s3] sm:$0xff] }
  0x6a   :  { %705 = vmatmul.mubr.f32.gmra.mrb[46].mxu1 %v514_v37  ;;  %2255 = vmatprep.mubr.msk.f32.mxu0 %vm114_vm0, %v483_v38  ;;  %v1293_v37 = vld [vmem:[%s3799_s3 + $0x20] sm:$0xff]  ;;  %v933_v38 = vld [vmem:[%s3798_s2 + $0x170] sm:$0xff] }
  0x6b   :  { %1047 = vmatprep.mubr.f32.mxu1 %v888_v40  ;;  %2456 = vmatpush3.bf16.msra.mxu0 %v2595_v16  ;;  %v932_v40 = vld [vmem:[%s3798_s2 + $0x168] sm:$0xff] }
  0x6c   :  { %2458 = vmatprep.subr.bf16.mxu0 %v2557_v3  ;;  %v495_v3 = vld [vmem:[%s3797_s1 + $0xd0] sm:$0xff] }
  0x6d   :  { %2256 = vmatmul.mubr.msk.f32.gmra.mrb[36].mxu0 %vm114_vm0, %v486_v41  ;;  %v1296_v41 = vld [vmem:[%s3799_s3 + $0x38] sm:$0xff] }
  0x6e   :  { %1048 = vmatmul.mubr.f32.vlgmr.msra.gmra.mrb[48].mxu1 %v887_v43  ;;  %2258 = vmatprep.mubr.msk.f32.mxu0 %vm114_vm0, %v489_v44  ;;  %v1329_v43 = vld [vmem:[%s3799_s3 + $0x140] sm:$0xff]  ;;  %v1295_v44 = vld [vmem:[%s3799_s3 + $0x30] sm:$0xff] }
  0x6f   :  { %1052 = vmatprep.mubr.f32.mxu1 %v891_v45  ;;  %2505 = vmatpush3.bf16.msra.mxu1 %v2570_v8  ;;  %v1328_v45 = vld [vmem:[%s3799_s3 + $0x138] sm:$0xff] }
  0x70   :  { %2498 = vmatprep.subr.bf16.mxu1 %v2582_v12 }
  0x71   :  { %2259 = vmatmul.mubr.msk.f32.gmra.mrb[38].mxu0 %vm114_vm0, %v492_v46  ;;  %v1299_v46 = vld [vmem:[%s3799_s3 + $0x50] sm:$0xff] }
  0x72   :  { %1053 = vmatmul.mubr.f32.gmra.mrb[50].mxu1 %v890_v47  ;;  %2261 = vmatprep.mubr.msk.f32.mxu0 %vm114_vm0, %v495_v3  ;;  %v1332_v47 = vld [vmem:[%s3799_s3 + $0x158] sm:$0xff]  ;;  %v1298_v3 = vld [vmem:[%s3799_s3 + $0x48] sm:$0xff] }
  0x73   :  { %1057 = vmatprep.mubr.f32.mxu1 %v894_v49  ;;  %2506 = vmatpush3.bf16.msra.mxu1 %v2597_v17  ;;  %v1331_v49 = vld [vmem:[%s3799_s3 + $0x150] sm:$0xff] }
  0x74   :  { %2499 = vmatprep.subr.bf16.mxu1 %v2610_v21 }
  0x75   :  { %2262 = vmatmul.mubr.msk.f32.gmra.mrb[40].mxu0 %vm114_vm0, %v498_v50  ;;  %v1302_v50 = vld [vmem:[%s3799_s3 + $0x68] sm:$0xff] }
  0x76   :  { %1058 = vmatmul.mubr.f32.gmra.mrb[52].mxu1 %v893_v52  ;;  %2264 = vmatprep.mubr.msk.f32.mxu0 %vm114_vm0, %v501_v53  ;;  %v1335_v52 = vld [vmem:[%s3799_s3 + $0x170] sm:$0xff]  ;;  %v1301_v53 = vld [vmem:[%s3799_s3 + $0x60] sm:$0xff] }
  0x77   :  { %1062 = vmatprep.mubr.f32.mxu1 %v897_v54  ;;  %2507 = vmatpush3.bf16.msra.mxu1 %v2627_v26  ;;  %v1305_v54 = vld [vmem:[%s3799_s3 + $0x80] sm:$0xff] }
  0x78   :  { %2500 = vmatprep.subr.bf16.mxu1 %v2644_v31 }
  0x79   :  { %2265 = vmatmul.mubr.msk.f32.gmra.mrb[42].mxu0 %vm114_vm0, %v504_v55  ;;  %v1291_v55 = vld [vmem:[%s3799_s3 + $0x10] sm:$0xff] }
  0x7a   :  { %1063 = vmatmul.mubr.f32.gmra.mrb[54].mxu1 %v896_v57  ;;  %2267 = vmatprep.mubr.msk.f32.mxu0 %vm114_vm0, %v507_v58  ;;  %v1304_v57 = vld [vmem:[%s3799_s3 + $0x78] sm:$0xff] }
  0x7b   :  { %1067 = vmatprep.mubr.f32.mxu1 %v900_v60  ;;  %2508 = vmatpush3.bf16.msra.mxu1 %v2654_v34  ;;  %v1308_v58 = vld [vmem:[%s3799_s3 + $0x98] sm:$0xff]  ;;  %v1297_v60 = vld [vmem:[%s3799_s3 + $0x40] sm:$0xff] }
  0x7c   :  { %2501 = vmatprep.subr.bf16.mxu1 %v2672_v39 }
  0x7d   :  { %2268 = vmatmul.mubr.msk.f32.gmra.mrb[44].mxu0 %vm114_vm0, %v510_v61  ;;  %v1307_v61 = vld [vmem:[%s3799_s3 + $0x90] sm:$0xff] }
  0x7e   :  { %1068 = vmatmul.mubr.f32.gmra.mrb[56].mxu1 %v899_v62  ;;  %2270 = vmatprep.mubr.msk.f32.mxu0 %vm114_vm0, %v513_v63  ;;  %v1300_v62 = vld [vmem:[%s3799_s3 + $0x58] sm:$0xff]  ;;  %v1311_v63 = vld [vmem:[%s3799_s3 + $0xb0] sm:$0xff] }
  0x7f   :  { %1072 = vmatprep.mubr.f32.mxu1 %v903_v2  ;;  %2509 = vmatpush3.bf16.msra.mxu1 %v2682_v42  ;;  %v1303_v2 = vld [vmem:[%s3799_s3 + $0x70] sm:$0xff] }
  0x80   :  { %2502 = vmatprep.subr.bf16.mxu1 %v2703_v48 }
  0x81   :  { %2271 = vmatmul.mubr.msk.f32.gmra.mrb[46].mxu0 %vm114_vm0, %v516_v4  ;;  %v1310_v4 = vld [vmem:[%s3799_s3 + $0xa8] sm:$0xff] }
  0x82   :  { %1073 = vmatmul.mubr.f32.gmra.mrb[58].mxu1 %v902_v5  ;;  %2281 = vmatprep.mubr.msk.f32.mxu0 %vm114_vm0, %v889_v6  ;;  %v1306_v5 = vld [vmem:[%s3799_s3 + $0x88] sm:$0xff] }
  0x83   :  { %1077 = vmatprep.mubr.f32.mxu1 %v906_v9  ;;  %2510 = vmatpush3.bf16.msra.mxu1 %v2713_v51  ;;  %v1314_v6 = vld [vmem:[%s3799_s3 + $0xc8] sm:$0xff]  ;;  %v1309_v9 = vld [vmem:[%s3799_s3 + $0xa0] sm:$0xff] }
  0x84   :  { %2503 = vmatprep.subr.bf16.mxu1 %v2731_v56 }
  0x85   :  { %2282 = vmatmul.mubr.msk.f32.vlgmr.msra.gmra.mrb[48].mxu0 %vm114_vm0, %v892_v10  ;;  %v1313_v10 = vld [vmem:[%s3799_s3 + $0xc0] sm:$0xff] }
  0x86   :  { %1078 = vmatmul.mubr.f32.gmra.mrb[60].mxu1 %v905_v11  ;;  %2460 = vmatpush3.bf16.msra.mxu0 %v2570_v8  ;;  %v901_v8 = vld [vmem:[%s3798_s2 + $0x70] sm:$0xff]  ;;  %v1312_v11 = vld [vmem:[%s3799_s3 + $0xb8] sm:$0xff] }
  0x87   :  { %1082 = vmatprep.mubr.f32.mxu1 %v909_v13  ;;  %2284 = vmatprep.mubr.msk.f32.mxu0 %vm114_vm0, %v895_v14  ;;  %v1317_v13 = vld [vmem:[%s3799_s3 + $0xe0] sm:$0xff]  ;;  %v1315_v14 = vld [vmem:[%s3799_s3 + $0xd0] sm:$0xff] }
  0x88   :  { %2462 = vmatprep.subr.bf16.mxu0 %v2582_v12  ;;  %2511 = vmatpush3.bf16.msra.mxu1 %v2741_v59  ;;  %v904_v12 = vld [vmem:[%s3798_s2 + $0x88] sm:$0xff] }
  0x89   :  { %2285 = vmatmul.mubr.msk.f32.gmra.mrb[50].mxu0 %vm114_vm0, %v898_v15  ;;  %2504 = vmatprep.subr.bf16.mxu1 %v2759_v0  ;;  %v1316_v15 = vld [vmem:[%s3799_s3 + $0xd8] sm:$0xff] }
  0x8a   :  { %1083 = vmatmul.mubr.f32.gmra.mrb[62].mxu1 %v908_v18  ;;  %2464 = vmatpush3.bf16.msra.mxu0 %v2597_v17  ;;  %v907_v17 = vld [vmem:[%s3798_s2 + $0xa0] sm:$0xff]  ;;  %v1318_v18 = vld [vmem:[%s3799_s3 + $0xe8] sm:$0xff] }
  0x8b   :  { %1087 = vmatprep.mubr.f32.mxu1 %v912_v19  ;;  %2287 = vmatprep.mubr.msk.f32.mxu0 %vm114_vm0, %v901_v8  ;;  %v1320_v19 = vld [vmem:[%s3799_s3 + $0xf8] sm:$0xff]  ;;  %v1321_v8 = vld [vmem:[%s3799_s3 + $0x100] sm:$0xff] }
  0x8c   :  { %2466 = vmatprep.subr.bf16.mxu0 %v2610_v21  ;;  %2512 = vmatpush3.bf16.msra.mxu1 %v2763_v1  ;;  %v910_v21 = vld [vmem:[%s3798_s2 + $0xb8] sm:$0xff] }
  0x8d   :  { %2288 = vmatmul.mubr.msk.f32.gmra.mrb[52].mxu0 %vm114_vm0, %v904_v12  ;;  %2490 = vmatprep.subr.bf16.mxu1 %v2568_v7  ;;  %v1319_v12 = vld [vmem:[%s3799_s3 + $0xf0] sm:$0xff] }
  0x8e   :  { %1088 = vmatmul.mubr.f32.gmra.mrb[64].mxu1 %v911_v20  ;;  %2468 = vmatpush3.bf16.msra.mxu0 %v2627_v26  ;;  %v913_v26 = vld [vmem:[%s3798_s2 + $0xd0] sm:$0xff]  ;;  %v1324_v20 = vld [vmem:[%s3799_s3 + $0x118] sm:$0xff] }
  0x8f   :  { %1092 = vmatprep.mubr.f32.mxu1 %v915_v22  ;;  %2290 = vmatprep.mubr.msk.f32.mxu0 %vm114_vm0, %v907_v17  ;;  %v1323_v22 = vld [vmem:[%s3799_s3 + $0x110] sm:$0xff] }
  0x90   :  { %2470 = vmatprep.subr.bf16.mxu0 %v2644_v31  ;;  %v917_v31 = vld [vmem:[%s3798_s2 + $0xf0] sm:$0xff] }
  0x91   :  { %2291 = vmatmul.mubr.msk.f32.gmra.mrb[54].mxu0 %vm114_vm0, %v910_v21  ;;  %v1327_v17 = vld [vmem:[%s3799_s3 + $0x130] sm:$0xff]  ;;  %v1322_v21 = vld [vmem:[%s3799_s3 + $0x108] sm:$0xff] }
  0x92   :  { %1093 = vmatmul.mubr.f32.gmra.mrb[66].mxu1 %v914_v23  ;;  %2472 = vmatpush3.bf16.msra.mxu0 %v2654_v34  ;;  %v919_v34 = vld [vmem:[%s3798_s2 + $0x100] sm:$0xff]  ;;  %v1330_v23 = vld [vmem:[%s3799_s3 + $0x148] sm:$0xff] }
  0x93   :  { %1097 = vmatprep.mubr.f32.mxu1 %v918_v24  ;;  %2293 = vmatprep.mubr.msk.f32.mxu0 %vm114_vm0, %v913_v26  ;;  %v1326_v24 = vld [vmem:[%s3799_s3 + $0x128] sm:$0xff]  ;;  %v1333_v26 = vld [vmem:[%s3799_s3 + $0x160] sm:$0xff] }
  0x94   :  { %2474 = vmatprep.subr.bf16.mxu0 %v2672_v39  ;;  %v920_v39 = vld [vmem:[%s3798_s2 + $0x108] sm:$0xff] }
  0x95   :  { %2294 = vmatmul.mubr.msk.f32.gmra.mrb[56].mxu0 %vm114_vm0, %v916_v25  ;;  %v1325_v25 = vld [vmem:[%s3799_s3 + $0x120] sm:$0xff] }
  0x96   :  { %1098 = vmatmul.mubr.f32.gmra.mrb[68].mxu1 %v917_v31  ;;  %2476 = vmatpush3.bf16.msra.mxu0 %v2682_v42  ;;  %v925_v42 = vld [vmem:[%s3798_s2 + $0x130] sm:$0xff]  ;;  %v1336_v31 = vld [vmem:[%s3799_s3 + $0x178] sm:$0xff] }
  0x97   :  { %1102 = vmatprep.mubr.f32.mxu1 %v921_v27  ;;  %2296 = vmatprep.mubr.msk.f32.mxu0 %vm114_vm0, %v919_v34 }
  0x98   :  { %2478 = vmatprep.subr.bf16.mxu0 %v2703_v48  ;;  %v923_v48 = vld [vmem:[%s3798_s2 + $0x120] sm:$0xff] }
  0x99   :  { %2297 = vmatmul.mubr.msk.f32.gmra.mrb[58].mxu0 %vm114_vm0, %v922_v28 }
  0x9a   :  { %1103 = vmatmul.mubr.f32.gmra.mrb[70].mxu1 %v920_v39  ;;  %2480 = vmatpush3.bf16.msra.mxu0 %v2713_v51  ;;  %v931_v51 = vld [vmem:[%s3798_s2 + $0x160] sm:$0xff] }
  0x9b   :  { %1107 = vmatprep.mubr.f32.mxu1 %v924_v29  ;;  %2299 = vmatprep.mubr.msk.f32.mxu0 %vm114_vm0, %v925_v42 }
  0x9c   :  { %2482 = vmatprep.subr.bf16.mxu0 %v2731_v56  ;;  %v926_v56 = vld [vmem:[%s3798_s2 + $0x138] sm:$0xff] }
  0x9d   :  { %2300 = vmatmul.mubr.msk.f32.gmra.mrb[60].mxu0 %vm114_vm0, %v928_v30 }
  0x9e   :  { %1108 = vmatmul.mubr.f32.gmra.mrb[72].mxu1 %v923_v48  ;;  %2484 = vmatpush3.bf16.msra.mxu0 %v2741_v59  ;;  %v1290_v59 = vld [vmem:[%s3799_s3 + $0x8] sm:$0xff] }
  0x9f   :  { %1112 = vmatprep.mubr.f32.mxu1 %v927_v32  ;;  %2302 = vmatprep.mubr.msk.f32.mxu0 %vm114_vm0, %v931_v51 }
  0xa0   :  { %2486 = vmatprep.subr.bf16.mxu0 %v2759_v0  ;;  %v929_v0 = vld [vmem:[%s3798_s2 + $0x150] sm:$0xff] }
  0xa1   :  { %2303 = vmatmul.mubr.msk.f32.gmra.mrb[62].mxu0 %vm114_vm0, %v934_v33 }
  0xa2   :  { %1113 = vmatmul.mubr.f32.gmra.mrb[74].mxu1 %v926_v56  ;;  %2488 = vmatpush3.bf16.msra.mxu0 %v2763_v1  ;;  %v1292_v1 = vld [vmem:[%s3799_s3 + $0x18] sm:$0xff] }
  0xa3   :  { %1117 = vmatprep.mubr.f32.mxu1 %v930_v35  ;;  %1449 = vmatprep.mubr.f32.mxu0 %v1290_v59  ;;  %v3443_v59 = vld [vmem:[%s3800_s5] ss:$0 sm:$0xff] }
  0xa5   :  { %1450 = vmatmul.mubr.f32.vlgmr.msra.gmra.mrb[64].mxu0 %v1289_v36 }
  0xa6   :  { %1118 = vmatmul.mubr.f32.gmra.mrb[76].mxu1 %v929_v0  ;;  %1454 = vmatprep.mubr.f32.mxu0 %v1293_v37 }
  0xa7   :  { %1122 = vmatprep.mubr.f32.mxu1 %v933_v38 }
  0xa9   :  { %1455 = vmatmul.mubr.f32.gmra.mrb[66].mxu0 %v1292_v1 }
  0xaa   :  { %1123 = vmatmul.mubr.f32.gmra.mrb[78].mxu1 %v932_v40  ;;  %1459 = vmatprep.mubr.f32.mxu0 %v1296_v41 }
  0xab   :  { %1514 = vmatprep.mubr.f32.mxu1 %v1329_v43 }
  0xad   :  { %1460 = vmatmul.mubr.f32.gmra.mrb[68].mxu0 %v1295_v44 }
  0xae   :  { %1515 = vmatmul.mubr.f32.vlgmr.msra.gmra.mrb[80].mxu1 %v1328_v45  ;;  %1464 = vmatprep.mubr.f32.mxu0 %v1299_v46 }
  0xaf   :  { %1519 = vmatprep.mubr.f32.mxu1 %v1332_v47  ;;  %2492 = vmatpush3.bf16.msra.mxu1 %v2568_v7  ;;  %v1334_v7 = vld [vmem:[%s3799_s3 + $0x168] sm:$0xff] }
  0xb0   :  { %2494 = vmatprep.subr.bf16.mxu1 %v2595_v16 }
  0xb1   :  { %1465 = vmatmul.mubr.f32.gmra.mrb[70].mxu0 %v1298_v3 }
  0xb2   :  { %1520 = vmatmul.mubr.f32.gmra.mrb[82].mxu1 %v1331_v49  ;;  %1469 = vmatprep.mubr.f32.mxu0 %v1302_v50 }
  0xb3   :  { %1524 = vmatprep.mubr.f32.mxu1 %v1335_v52  ;;  %2496 = vmatpush3.bf16.msra.mxu1 %v2595_v16  ;;  %v1294_v16 = vld [vmem:[%s3799_s3 + $0x28] sm:$0xff] }
  0xb5   :  { %1470 = vmatmul.mubr.f32.gmra.mrb[72].mxu0 %v1301_v53 }
  0xb6   :  { %1525 = vmatmul.mubr.f32.gmra.mrb[84].mxu1 %v1334_v7  ;;  %1474 = vmatprep.mubr.f32.mxu0 %v1305_v54 }
  0xb7   :  { %2313 = vmatprep.mubr.msk.f32.mxu1 %vm114_vm0, %v1291_v55 }
  0xb9   :  { %1475 = vmatmul.mubr.f32.gmra.mrb[74].mxu0 %v1304_v57 }
  0xba   :  { %2314 = vmatmul.mubr.msk.f32.vlgmr.msra.gmra.mrb[86].mxu1 %vm114_vm0, %v1294_v16  ;;  %1479 = vmatprep.mubr.f32.mxu0 %v1308_v58 }
  0xbb   :  { %2316 = vmatprep.mubr.msk.f32.mxu1 %vm114_vm0, %v1297_v60 }
  0xbd   :  { %1480 = vmatmul.mubr.f32.gmra.mrb[76].mxu0 %v1307_v61 }
  0xbe   :  { %2317 = vmatmul.mubr.msk.f32.gmra.mrb[88].mxu1 %vm114_vm0, %v1300_v62  ;;  %1484 = vmatprep.mubr.f32.mxu0 %v1311_v63 }
  0xbf   :  { %2319 = vmatprep.mubr.msk.f32.mxu1 %vm114_vm0, %v1303_v2 }
  0xc1   :  { %1485 = vmatmul.mubr.f32.gmra.mrb[78].mxu0 %v1310_v4 }
  0xc2   :  { %2320 = vmatmul.mubr.msk.f32.gmra.mrb[90].mxu1 %vm114_vm0, %v1306_v5  ;;  %1489 = vmatprep.mubr.f32.mxu0 %v1314_v6 }
  0xc3   :  { %2322 = vmatprep.mubr.msk.f32.mxu1 %vm114_vm0, %v1309_v9 }
  0xc5   :  { %1490 = vmatmul.mubr.f32.gmra.mrb[80].mxu0 %v1313_v10 }
  0xc6   :  { %2323 = vmatmul.mubr.msk.f32.gmra.mrb[92].mxu1 %vm114_vm0, %v1312_v11  ;;  %1494 = vmatprep.mubr.f32.mxu0 %v1317_v13 }
  0xc7   :  { %2325 = vmatprep.mubr.msk.f32.mxu1 %vm114_vm0, %v1315_v14 }
  0xc9   :  { %1495 = vmatmul.mubr.f32.gmra.mrb[82].mxu0 %v1316_v15 }
  0xca   :  { %2326 = vmatmul.mubr.msk.f32.gmra.mrb[94].mxu1 %vm114_vm0, %v1318_v18  ;;  %1499 = vmatprep.mubr.f32.mxu0 %v1320_v19 }
  0xcb   :  { %2328 = vmatprep.mubr.msk.f32.mxu1 %vm114_vm0, %v1321_v8 }
  0xcd   :  { %1500 = vmatmul.mubr.f32.gmra.mrb[84].mxu0 %v1319_v12 }
  0xce   :  { %2329 = vmatmul.mubr.msk.f32.gmra.mrb[96].mxu1 %vm114_vm0, %v1324_v20  ;;  %1504 = vmatprep.mubr.f32.mxu0 %v1323_v22 }
  0xcf   :  { %2331 = vmatprep.mubr.msk.f32.mxu1 %vm114_vm0, %v1327_v17 }
  0xd1   :  { %1505 = vmatmul.mubr.f32.gmra.mrb[86].mxu0 %v1322_v21 }
  0xd2   :  { %2332 = vmatmul.mubr.msk.f32.gmra.mrb[98].mxu1 %vm114_vm0, %v1330_v23  ;;  %1509 = vmatprep.mubr.f32.mxu0 %v1326_v24 }
  0xd3   :  { %2334 = vmatprep.mubr.msk.f32.mxu1 %vm114_vm0, %v1333_v26 }
  0xd5   :  { %1510 = vmatmul.mubr.f32.gmra.mrb[88].mxu0 %v1325_v25 }
  0xd6   :  { %2335 = vmatmul.mubr.msk.f32.gmra.mrb[100].mxu1 %vm114_vm0, %v1336_v31 }
  0xe0   :  { %v2219_v27 = vpop.f32.mrb[0].mxu1 }
  0xe1   :  { %v374_v34 = vpop.f32.mrb[1].mxu1 }
  0xe4   :  { %v2222_v28 = vpop.f32.mrb[2].mxu1 }
  0xe5   :  { %v384_v39 = vpop.f32.mrb[3].mxu1 }
  0xe8   :  { %v2225_v29 = vpop.f32.mrb[4].mxu1 }
  0xe9   :  { %v394_v42 = vpop.f32.mrb[5].mxu1 }
  0xec   :  { %v3428_v30 = vpop.f32.mrb[6].mxu1 }
  0xed   :  { %v3430_v48 = vpop.f32.mrb[7].mxu1 }
  0xf0   :  { %v3432_v32 = vpop.f32.mrb[8].mxu1 }
  0xf1   :  { %v3434_v51 = vpop.f32.mrb[9].mxu1 }
  0xf4   :  { %v3436_v33 = vpop.f32.mrb[10].mxu1 }
  0xf5   :  { %v3438_v56 = vpop.f32.mrb[11].mxu1 }
  0xf8   :  { %v1841_v35 = vpop.f32.mrb[0].mxu0  ;;  %v3445_v0 = vpop.f32.mrb[12].mxu1 }
  0xf9   :  { %v1842_v36 = vpop.f32.mrb[1].mxu0  ;;  %v3447_v38 = vpop.f32.mrb[13].mxu1 }
  0xfa   :  { %v1843_v37 = vadd.f32 %v1842_v36, %v1841_v35 }
  0xfc   :  { %v230_v1 = vadd.f32 %v1843_v37, %v3443_v59  ;;  %v1844_v40 = vpop.f32.mrb[2].mxu0  ;;  %v3450_v43 = vpop.f32.mrb[14].mxu1 }
  0xfd   :  { %v1845_v41 = vpop.f32.mrb[3].mxu0  ;;  %v3454_v46 = vpop.f32.mrb[15].mxu1 }
  0xfe   :  { %v3452_v44 = vadd.f32 %v374_v34, %v230_v1  ;;  %v1846_v45 = vadd.f32 %v1845_v41, %v1844_v40 }
 0x100   :  { %v235_v47 = vadd.f32 %v1846_v45, %v3443_v59  ;;  %v1847_v3 = vpop.f32.mrb[4].mxu0 }
 0x101   :  { %v1848_v49 = vpop.f32.mrb[5].mxu0  ;;  %v1941_v50 = vpop.f32.mrb[16].mxu1 }
 0x102   :  { %v3457_v52 = vadd.f32 %v2219_v27, %v235_v47  ;;  %v1849_v53 = vadd.f32 %v1848_v49, %v1847_v3  ;;  %v1942_v7 = vpop.f32.mrb[17].mxu1 }
 0x103   :  { %v3459_v54 = vadd.f32 %v1942_v7, %v1941_v50 }
 0x104   :  { %v240_v55 = vadd.f32 %v1849_v53, %v3443_v59  ;;  %v1850_v57 = vpop.f32.mrb[6].mxu0 }
 0x105   :  { %v1851_v16 = vpop.f32.mrb[7].mxu0  ;;  %v1944_v58 = vpop.f32.mrb[18].mxu1 }
 0x106   :  { %v3462_v60 = vadd.f32 %v384_v39, %v240_v55  ;;  %v1852_v61 = vadd.f32 %v1851_v16, %v1850_v57  ;;  %v1945_v62 = vpop.f32.mrb[19].mxu1 }
 0x107   :  { %v3464_v63 = vadd.f32 %v1945_v62, %v1944_v58 }
 0x108   :  { %v245_v2 = vadd.f32 %v1852_v61, %v3443_v59  ;;  %v1853_v4 = vpop.f32.mrb[8].mxu0 }
 0x109   :  { %v1854_v5 = vpop.f32.mrb[9].mxu0  ;;  %v1947_v6 = vpop.f32.mrb[20].mxu1 }
 0x10a   :  { %v3467_v9 = vadd.f32 %v2222_v28, %v245_v2  ;;  %v1855_v10 = vadd.f32 %v1854_v5, %v1853_v4  ;;  %v1948_v11 = vpop.f32.mrb[21].mxu1 }
 0x10b   :  { %v3469_v13 = vadd.f32 %v1948_v11, %v1947_v6 }
 0x10c   :  { %v250_v14 = vadd.f32 %v1855_v10, %v3443_v59  ;;  %v1856_v15 = vpop.f32.mrb[10].mxu0 }
 0x10d   :  { %v1857_v18 = vpop.f32.mrb[11].mxu0  ;;  %v1950_v19 = vpop.f32.mrb[22].mxu1 }
 0x10e   :  { %v3472_v8 = vadd.f32 %v394_v42, %v250_v14  ;;  %v1858_v12 = vadd.f32 %v1857_v18, %v1856_v15  ;;  %v1951_v20 = vpop.f32.mrb[23].mxu1 }
 0x10f   :  { %v3474_v22 = vadd.f32 %v1951_v20, %v1950_v19 }
 0x110   :  { %v255_v17 = vadd.f32 %v1858_v12, %v3443_v59  ;;  %v1859_v21 = vpop.f32.mrb[12].mxu0 }
 0x111   :  { %v1860_v23 = vpop.f32.mrb[13].mxu0  ;;  %v1953_v24 = vpop.f32.mrb[24].mxu1 }
 0x112   :  { %v3477_v26 = vadd.f32 %v2225_v29, %v255_v17  ;;  %v1861_v25 = vadd.f32 %v1860_v23, %v1859_v21  ;;  %v1954_v31 = vpop.f32.mrb[25].mxu1 }
 0x113   :  { %v3479_v27 = vadd.f32 %v1954_v31, %v1953_v24 }
 0x114   :  { %v260_v34 = vadd.f32 %v1861_v25, %v3443_v59  ;;  %v1862_v28 = vpop.f32.mrb[14].mxu0 }
 0x115   :  { %v1863_v39 = vpop.f32.mrb[15].mxu0  ;;  %v1956_v42 = vpop.f32.mrb[26].mxu1 }
 0x116   :  { %v3483_v35 = vadd.f32 %v3430_v48, %v260_v34  ;;  %v1864_v36 = vadd.f32 %v1863_v39, %v1862_v28  ;;  %v1957_v37 = vpop.f32.mrb[27].mxu1 }
 0x117   :  { %v3485_v1 = vadd.f32 %v1957_v37, %v1956_v42 }
 0x118   :  { %v265_v40 = vadd.f32 %v1864_v36, %v3443_v59  ;;  %v1865_v29 = vpop.f32.mrb[16].mxu0 }
 0x119   :  { %v1866_v41 = vpop.f32.mrb[17].mxu0  ;;  %v1959_v45 = vpop.f32.mrb[28].mxu1 }
 0x11a   :  { %v3489_v47 = vadd.f32 %v3428_v30, %v265_v40  ;;  %v1867_v3 = vadd.f32 %v1866_v41, %v1865_v29  ;;  %v1960_v49 = vpop.f32.mrb[29].mxu1 }
 0x11b   :  { %v3491_v50 = vadd.f32 %v1960_v49, %v1959_v45 }
 0x11c   :  { %v270_v53 = vadd.f32 %v1867_v3, %v3443_v59  ;;  %v1868_v48 = vpop.f32.mrb[18].mxu0 }
 0x11d   :  { %v1869_v7 = vpop.f32.mrb[19].mxu0  ;;  %v1962_v55 = vpop.f32.mrb[30].mxu1 }
 0x11e   :  { %v3495_v57 = vadd.f32 %v3434_v51, %v270_v53  ;;  %v1870_v16 = vadd.f32 %v1869_v7, %v1868_v48  ;;  %v1963_v58 = vpop.f32.mrb[31].mxu1 }
 0x11f   :  { %v3497_v61 = vadd.f32 %v1963_v58, %v1962_v55 }
 0x120   :  { %v275_v62 = vadd.f32 %v1870_v16, %v3443_v59  ;;  %v1871_v30 = vpop.f32.mrb[20].mxu0 }
 0x121   :  { %v1872_v2 = vpop.f32.mrb[21].mxu0  ;;  %v1965_v4 = vpop.f32.mrb[32].mxu1 }
 0x122   :  { %v3501_v5 = vadd.f32 %v3432_v32, %v275_v62  ;;  %v1873_v6 = vadd.f32 %v1872_v2, %v1871_v30  ;;  %v1966_v10 = vpop.f32.mrb[33].mxu1 }
 0x123   :  { %v3503_v11 = vadd.f32 %v1966_v10, %v1965_v4 }
 0x124   :  { %v280_v14 = vadd.f32 %v1873_v6, %v3443_v59  ;;  %v1874_v51 = vpop.f32.mrb[22].mxu0  ;;  %v637_v6 = vadd.f32 %v3464_v63, %v3443_v59  ;;  %v647_v63 = vadd.f32 %v3474_v22, %v3443_v59  ;;  %v456_v22 = vmax.f32 %v3467_v9, 0.0 }
 0x125   :  { %v1875_v15 = vpop.f32.mrb[23].mxu0  ;;  %v1968_v18 = vpop.f32.mrb[34].mxu1 }
 0x126   :  { %v3507_v19 = vadd.f32 %v3438_v56, %v280_v14  ;;  %v1876_v12 = vadd.f32 %v1875_v15, %v1874_v51  ;;  %v1969_v20 = vpop.f32.mrb[35].mxu1  ;;  %v632_v51 = vadd.f32 %v3459_v54, %v3443_v59 }
 0x127   :  { %v3509_v17 = vadd.f32 %v1969_v20, %v1968_v18 }
 0x128   :  { %v285_v21 = vadd.f32 %v1876_v12, %v3443_v59  ;;  %v1877_v32 = vpop.f32.mrb[24].mxu0 }
 0x129   :  { %v1878_v23 = vpop.f32.mrb[25].mxu0  ;;  %v1971_v24 = vpop.f32.mrb[36].mxu1 }
 0x12a   :  { %v3513_v25 = vadd.f32 %v3436_v33, %v285_v21  ;;  %v1879_v31 = vadd.f32 %v1878_v23, %v1877_v32  ;;  %v1972_v34 = vpop.f32.mrb[37].mxu1  ;;  %v454_v32 = vmax.f32 %v3457_v52, 0.0 }
 0x12b   :  { %v3515_v28 = vadd.f32 %v1972_v34, %v1971_v24 }
 0x12c   :  { %v290_v39 = vadd.f32 %v1879_v31, %v3443_v59  ;;  %v1880_v56 = vpop.f32.mrb[26].mxu0  ;;  %v453_v31 = vmax.f32 %v3452_v44, 0.0  ;;  %v657_v44 = vadd.f32 %v3485_v1, %v3443_v59  ;;  %v458_v1 = vmax.f32 %v3477_v26, 0.0 }
 0x12d   :  { %v1881_v42 = vpop.f32.mrb[27].mxu0  ;;  %v1974_v36 = vpop.f32.mrb[38].mxu1 }
 0x12e   :  { %v3519_v37 = vadd.f32 %v3447_v38, %v290_v39  ;;  %v1882_v40 = vadd.f32 %v1881_v42, %v1880_v56  ;;  %v1975_v29 = vpop.f32.mrb[39].mxu1  ;;  %v642_v39 = vadd.f32 %v3469_v13, %v3443_v59 }
 0x12f   :  { %v3521_v41 = vadd.f32 %v1975_v29, %v1974_v36 }
 0x130   :  { %v295_v45 = vadd.f32 %v1882_v40, %v3443_v59  ;;  %v1883_v33 = vpop.f32.mrb[28].mxu0 }
 0x131   :  { %v1884_v3 = vpop.f32.mrb[29].mxu0  ;;  %v1977_v49 = vpop.f32.mrb[40].mxu1 }
 0x132   :  { %v3525_v53 = vadd.f32 %v3445_v0, %v295_v45  ;;  %v1885_v48 = vadd.f32 %v1884_v3, %v1883_v33  ;;  %v1978_v7 = vpop.f32.mrb[41].mxu1  ;;  %v455_v3 = vmax.f32 %v3462_v60, 0.0  ;;  %v667_v60 = vadd.f32 %v3497_v61, %v3443_v59 }
 0x133   :  { %v3527_v55 = vadd.f32 %v1978_v7, %v1977_v49  ;;  %v460_v61 = vmax.f32 %v3489_v47, 0.0 }
 0x134   :  { %v300_v16 = vadd.f32 %v1885_v48, %v3443_v59  ;;  %v1886_v38 = vpop.f32.mrb[30].mxu0  ;;  %v652_v48 = vadd.f32 %v3479_v27, %v3443_v59 }
 0x135   :  { %v1887_v58 = vpop.f32.mrb[31].mxu0  ;;  %v1980_v62 = vpop.f32.mrb[42].mxu1 }
 0x136   :  { %v3531_v30 = vadd.f32 %v3454_v46, %v300_v16  ;;  %v1888_v2 = vadd.f32 %v1887_v58, %v1886_v38  ;;  %v1981_v4 = vpop.f32.mrb[43].mxu1 }
 0x137   :  { %v3535_v10 = vadd.f32 %v1981_v4, %v1980_v62 }
 0x138   :  { %v305_v0 = vadd.f32 %v1888_v2, %v3443_v59  ;;  %v2251_v14 = vpop.f32.mrb[32].mxu0 }
 0x139   :  { %v782_v15 = vadd.f32 %v2251_v14, %v637_v6  ;;  %v776_v18 = vpop.f32.mrb[33].mxu0  ;;  %v1983_v12 = vpop.f32.mrb[44].mxu1 }
 0x13a   :  { %v3541_v20 = vadd.f32 %v3450_v43, %v305_v0  ;;  %v777_v46 = vadd.f32 %v776_v18, %v632_v51  ;;  %v1984_v21 = vpop.f32.mrb[45].mxu1  ;;  %v457_v0 = vmax.f32 %v3472_v8, 0.0  ;;  %v662_v51 = vadd.f32 %v3491_v50, %v3443_v59 }
 0x13b   :  { %v856_v23 = vmax.f32 %v782_v15, 0.0  ;;  %v3546_v24 = vadd.f32 %v1984_v21, %v1983_v12  ;;  %v677_v8 = vadd.f32 %v3509_v17, %v3443_v59 }
 0x13c   :  { %v855_v34 = vmax.f32 %v777_v46, 0.0  ;;  %v2254_v54 = vpop.f32.mrb[34].mxu0 }
 0x13d   :  { %v3551_v56 = vmax.f32 %v454_v32, %v856_v23  ;;  %v792_v43 = vadd.f32 %v2254_v54, %v647_v63  ;;  %v786_v42 = vpop.f32.mrb[35].mxu0  ;;  %v1986_v36 = vpop.f32.mrb[46].mxu1  ;;  %v672_v54 = vadd.f32 %v3503_v11, %v3443_v59 }
 0x13e   :  { %v3553_v40 = vmax.f32 %v453_v31, %v855_v34  ;;  %v787_v52 = vadd.f32 %v786_v42, %v642_v39  ;;  %v1987_v29 = vpop.f32.mrb[47].mxu1  ;;  %v459_v31 = vmax.f32 %v3483_v35, 0.0  ;;  %v687_v35 = vadd.f32 %v3521_v41, %v3443_v59 }
 0x13f   :  { %v858_v45 = vmax.f32 %v792_v43, 0.0  ;;  %v3558_v33 = vadd.f32 %v1987_v29, %v1986_v36 }
 0x140   :  { %v857_v13 = vmax.f32 %v787_v52, 0.0  ;;  %v2257_v49 = vpop.f32.mrb[36].mxu0 }
 0x141   :  { %v3563_v7 = vmax.f32 %v456_v22, %v858_v45  ;;  %v802_v16 = vadd.f32 %v2257_v49, %v657_v44  ;;  %v796_v38 = vpop.f32.mrb[37].mxu0  ;;  %v2041_v58 = vpop.f32.mrb[48].mxu1  ;;  %v462_v22 = vmax.f32 %v3501_v5, 0.0  ;;  %v461_v44 = vmax.f32 %v3495_v57, 0.0 }
 0x142   :  { %v3565_v62 = vmax.f32 %v455_v3, %v857_v13  ;;  %v797_v9 = vadd.f32 %v796_v38, %v652_v48  ;;  %v2042_v2 = vpop.f32.mrb[49].mxu1  ;;  %v682_v13 = vadd.f32 %v3515_v28, %v3443_v59  ;;  %v697_v57 = vadd.f32 %v3535_v10, %v3443_v59 }
 0x143   :  { %v860_v4 = vmax.f32 %v802_v16, 0.0  ;;  %v3570_v6 = vadd.f32 %v2042_v2, %v2041_v58  ;;  %v464_v2 = vmax.f32 %v3513_v25, 0.0 }
 0x144   :  { %v859_v27 = vmax.f32 %v797_v9, 0.0  ;;  %v2260_v14 = vpop.f32.mrb[38].mxu0 }
 0x145   :  { %v3575_v15 = vmax.f32 %v458_v1, %v860_v4  ;;  %v812_v18 = vadd.f32 %v2260_v14, %v667_v60  ;;  %v806_v12 = vpop.f32.mrb[39].mxu0  ;;  %v2044_v46 = vpop.f32.mrb[50].mxu1  ;;  %v463_v4 = vmax.f32 %v3507_v19, 0.0  ;;  %v707_v19 = vadd.f32 %v3558_v33, %v3443_v59 }
 0x146   :  { %v3577_v21 = vmax.f32 %v457_v0, %v859_v27  ;;  %v807_v26 = vadd.f32 %v806_v12, %v662_v51  ;;  %v2045_v32 = vpop.f32.mrb[51].mxu1  ;;  %v692_v0 = vadd.f32 %v3527_v55, %v3443_v59 }
 0x147   :  { %v862_v23 = vmax.f32 %v812_v18, 0.0  ;;  %v2046_v63 = vadd.f32 %v2045_v32, %v2044_v46 }
 0x148   :  { %v861_v34 = vmax.f32 %v807_v26, 0.0  ;;  %v2263_v50 = vpop.f32.mrb[40].mxu0  ;;  %v466_v26 = vmax.f32 %v3525_v53, 0.0 }
 0x149   :  { %v3585_v39 = vmax.f32 %v460_v61, %v862_v23  ;;  %v822_v43 = vadd.f32 %v2263_v50, %v677_v8  ;;  %v816_v42 = vpop.f32.mrb[41].mxu0  ;;  %v2047_v36 = vpop.f32.mrb[52].mxu1  ;;  %v465_v61 = vmax.f32 %v3519_v37, 0.0  ;;  %v702_v8 = vadd.f32 %v3546_v24, %v3443_v59 }
 0x14a   :  { %v3587_v52 = vmax.f32 %v459_v31, %v861_v34  ;;  %v817_v47 = vadd.f32 %v816_v42, %v672_v54  ;;  %v2048_v29 = vpop.f32.mrb[53].mxu1  ;;  %v1050_v24 = vadd.f32 %v3570_v6, %v3443_v59 }
 0x14b   :  { %v864_v17 = vmax.f32 %v822_v43, 0.0  ;;  %v2049_v45 = vadd.f32 %v2048_v29, %v2047_v36  ;;  %v468_v36 = vmax.f32 %v3541_v20, 0.0  ;;  %v467_v29 = vmax.f32 %v3531_v30, 0.0 }
 0x14c   :  { %v863_v3 = vmax.f32 %v817_v47, 0.0  ;;  %v2266_v11 = vpop.f32.mrb[42].mxu0  ;;  %v1055_v47 = vadd.f32 %v2046_v63, %v3443_v59 }
 0x14d   :  { %v3595_v49 = vmax.f32 %v462_v22, %v864_v17  ;;  %v832_v48 = vadd.f32 %v2266_v11, %v687_v35  ;;  %v826_v16 = vpop.f32.mrb[43].mxu0  ;;  %v2050_v38 = vpop.f32.mrb[54].mxu1 }
 0x14e   :  { %v3597_v58 = vmax.f32 %v461_v44, %v863_v3  ;;  %v827_v5 = vadd.f32 %v826_v16, %v682_v13  ;;  %v2051_v9 = vpop.f32.mrb[55].mxu1 }
 0x14f   :  { %v866_v41 = vmax.f32 %v832_v48, 0.0  ;;  %v2052_v1 = vadd.f32 %v2051_v9, %v2050_v38  ;;  %v1060_v38 = vadd.f32 %v2049_v45, %v3443_v59 }
 0x150   :  { %v865_v60 = vmax.f32 %v827_v5, 0.0  ;;  %v2269_v28 = vpop.f32.mrb[44].mxu0 }
 0x151   :  { %v3605_v27 = vmax.f32 %v464_v2, %v866_v41  ;;  %v842_v14 = vadd.f32 %v2269_v28, %v697_v57  ;;  %v836_v51 = vpop.f32.mrb[45].mxu0  ;;  %v2053_v18 = vpop.f32.mrb[56].mxu1  ;;  %v1065_v63 = vadd.f32 %v2052_v1, %v3443_v59 }
 0x152   :  { %v3607_v12 = vmax.f32 %v463_v4, %v865_v60  ;;  %v837_v25 = vadd.f32 %v836_v51, %v692_v0  ;;  %v2054_v46 = vpop.f32.mrb[57].mxu1 }
 0x153   :  { %v868_v10 = vmax.f32 %v842_v14, 0.0  ;;  %v2055_v32 = vadd.f32 %v2054_v46, %v2053_v18 }
 0x154   :  { %v867_v23 = vmax.f32 %v837_v25, 0.0  ;;  %v2272_v55 = vpop.f32.mrb[46].mxu0 }
 0x155   :  { %v3615_v31 = vmax.f32 %v466_v26, %v868_v10  ;;  %v852_v34 = vadd.f32 %v2272_v55, %v707_v19  ;;  %v846_v50 = vpop.f32.mrb[47].mxu0  ;;  %v2056_v54 = vpop.f32.mrb[58].mxu1  ;;  %v1070_v28 = vadd.f32 %v2055_v32, %v3443_v59 }
 0x156   :  { %v3617_v43 = vmax.f32 %v465_v61, %v867_v23  ;;  %v847_v53 = vadd.f32 %v846_v50, %v702_v8  ;;  %v2057_v42 = vpop.f32.mrb[59].mxu1 }
 0x157   :  { %v870_v33 = vmax.f32 %v852_v34, 0.0  ;;  %v2058_v37 = vadd.f32 %v2057_v42, %v2056_v54 }
 0x158   :  { %v869_v22 = vmax.f32 %v847_v53, 0.0  ;;  %v2283_v17 = vpop.f32.mrb[48].mxu0 }
 0x159   :  { %v3624_v35 = vmax.f32 %v468_v36, %v870_v33  ;;  %v3626_v44 = vadd.f32 %v2283_v17, %v1055_v47  ;;  %v1194_v3 = vpop.f32.mrb[49].mxu0  ;;  %v2059_v11 = vpop.f32.mrb[60].mxu1  ;;  %v1075_v57 = vadd.f32 %v2058_v37, %v3443_v59 }
 0x15a   :  { %v3628_v13 = vmax.f32 %v467_v29, %v869_v22  ;;  %v3630_v20 = vadd.f32 %v1194_v3, %v1050_v24  ;;  %v2060_v48 = vpop.f32.mrb[61].mxu1 }
 0x15b   :  { %v2061_v16 = vadd.f32 %v2060_v48, %v2059_v11 }
 0x15c   :  { %v2286_v30 = vpop.f32.mrb[50].mxu0 }
 0x15d   :  { %v3634_v5 = vadd.f32 %v2286_v30, %v1065_v63  ;;  %v1204_v6 = vpop.f32.mrb[51].mxu0  ;;  %v2062_v9 = vpop.f32.mrb[62].mxu1  ;;  %v1080_v26 = vadd.f32 %v2061_v16, %v3443_v59 }
 0x15e   :  { %v3636_v2 = vadd.f32 %v1204_v6, %v1060_v38  ;;  %v2063_v41 = vpop.f32.mrb[63].mxu1 }
 0x15f   :  { %v2064_v4 = vadd.f32 %v2063_v41, %v2062_v9 }
 0x160   :  { %v2289_v60 = vpop.f32.mrb[52].mxu0 }
 0x161   :  { %v3640_v0 = vadd.f32 %v2289_v60, %v1075_v57  ;;  %v1214_v1 = vpop.f32.mrb[53].mxu0  ;;  %v2065_v14 = vpop.f32.mrb[64].mxu1  ;;  %v1085_v51 = vadd.f32 %v2064_v4, %v3443_v59 }
 0x162   :  { %v3643_v45 = vadd.f32 %v1214_v1, %v1070_v28  ;;  %v2066_v18 = vpop.f32.mrb[65].mxu1 }
 0x163   :  { %v2067_v25 = vadd.f32 %v2066_v18, %v2065_v14 }
 0x164   :  { %v2292_v46 = vpop.f32.mrb[54].mxu0 }
 0x165   :  { %v2068_v10 = vpop.f32.mrb[66].mxu1  ;;  %v3646_v19 = vadd.f32 %v2292_v46, %v1085_v51  ;;  %v1224_v61 = vpop.f32.mrb[55].mxu0  ;;  %v1090_v32 = vadd.f32 %v2067_v25, %v3443_v59 }
 0x166   :  { %v2069_v23 = vpop.f32.mrb[67].mxu1  ;;  %v3648_v55 = vadd.f32 %v1224_v61, %v1080_v26 }
 0x167   :  { %v2070_v8 = vadd.f32 %v2069_v23, %v2068_v10 }
 0x168   :  { %v2295_v34 = vpop.f32.mrb[56].mxu0 }
 0x169   :  { %v2071_v50 = vpop.f32.mrb[68].mxu1  ;;  %v1095_v54 = vadd.f32 %v2070_v8, %v3443_v59  ;;  %v1234_v53 = vpop.f32.mrb[57].mxu0 }
 0x16a   :  { %v2072_v42 = vpop.f32.mrb[69].mxu1  ;;  %v3652_v36 = vadd.f32 %v1234_v53, %v1090_v32 }
 0x16b   :  { %v3654_v33 = vadd.f32 %v2295_v34, %v1095_v54  ;;  %v2073_v47 = vadd.f32 %v2072_v42, %v2071_v50 }
 0x16c   :  { %v2298_v37 = vpop.f32.mrb[58].mxu0 }
 0x16d   :  { %v2074_v29 = vpop.f32.mrb[70].mxu1  ;;  %v1100_v22 = vadd.f32 %v2073_v47, %v3443_v59  ;;  %v1244_v17 = vpop.f32.mrb[59].mxu0 }
 0x16e   :  { %v2075_v24 = vpop.f32.mrb[71].mxu1 }
 0x16f   :  { %v2076_v3 = vadd.f32 %v2075_v24, %v2074_v29  ;;  %v3657_v11 = vadd.f32 %v1244_v17, %v1100_v22 }
 0x170   :  { %v2301_v48 = vpop.f32.mrb[60].mxu0 }
 0x171   :  { %v1105_v63 = vadd.f32 %v2076_v3, %v3443_v59  ;;  %v2077_v16 = vpop.f32.mrb[72].mxu1  ;;  %v1254_v30 = vpop.f32.mrb[61].mxu0 }
 0x172   :  { %v2078_v38 = vpop.f32.mrb[73].mxu1 }
 0x173   :  { %v3660_v6 = vadd.f32 %v2298_v37, %v1105_v63  ;;  %v2079_v9 = vadd.f32 %v2078_v38, %v2077_v16 }
 0x174   :  { %v2304_v41 = vpop.f32.mrb[62].mxu0 }
 0x175   :  { %v1110_v57 = vadd.f32 %v2079_v9, %v3443_v59  ;;  %v2080_v4 = vpop.f32.mrb[74].mxu1  ;;  %v1264_v60 = vpop.f32.mrb[63].mxu0 }
 0x176   :  { %v2081_v28 = vpop.f32.mrb[75].mxu1 }
 0x177   :  { %v3663_v1 = vadd.f32 %v1254_v30, %v1110_v57  ;;  %v2082_v14 = vadd.f32 %v2081_v28, %v2080_v4 }
 0x178   :  { %v2141_v51 = vpop.f32.mrb[64].mxu0 }
 0x179   :  { %v1115_v18 = vadd.f32 %v2082_v14, %v3443_v59  ;;  %v2083_v25 = vpop.f32.mrb[76].mxu1  ;;  %v2142_v46 = vpop.f32.mrb[65].mxu0 }
 0x17a   :  { %v2084_v26 = vpop.f32.mrb[77].mxu1  ;;  %v2143_v10 = vadd.f32 %v2142_v46, %v2141_v51 }
 0x17b   :  { %v3666_v61 = vadd.f32 %v2301_v48, %v1115_v18  ;;  %v2085_v23 = vadd.f32 %v2084_v26, %v2083_v25 }
 0x17c   :  { %v2144_v32 = vpop.f32.mrb[66].mxu0 }
 0x17d   :  { %v1120_v8 = vadd.f32 %v2085_v23, %v3443_v59  ;;  %v2086_v34 = vpop.f32.mrb[78].mxu1  ;;  %v2145_v50 = vpop.f32.mrb[67].mxu0 }
 0x17e   :  { %v2087_v54 = vpop.f32.mrb[79].mxu1  ;;  %v2146_v53 = vadd.f32 %v2145_v50, %v2144_v32  ;;  %v1452_v32 = vadd.f32 %v2143_v10, %v3443_v59 }
 0x17f   :  { %v3669_v42 = vadd.f32 %v1264_v60, %v1120_v8  ;;  %v2088_v47 = vadd.f32 %v2087_v54, %v2086_v34 }
 0x180   :  { %v2147_v37 = vpop.f32.mrb[68].mxu0 }
 0x181   :  { %v1125_v29 = vadd.f32 %v2088_v47, %v3443_v59  ;;  %v2148_v22 = vpop.f32.mrb[69].mxu0  ;;  %v2180_v17 = vpop.f32.mrb[80].mxu1  ;;  %v1274_v47 = vmax.f32 %v3626_v44, 0.0  ;;  %v1276_v44 = vmax.f32 %v3634_v5, 0.0 }
 0x182   :  { %v2149_v24 = vadd.f32 %v2148_v22, %v2147_v37  ;;  %v2181_v3 = vpop.f32.mrb[81].mxu1 }
 0x183   :  { %v3672_v48 = vadd.f32 %v2304_v41, %v1125_v29  ;;  %v3674_v63 = vadd.f32 %v2181_v3, %v2180_v17  ;;  %v1457_v41 = vadd.f32 %v2146_v53, %v3443_v59  ;;  %v1273_v17 = vmax.f32 %v3630_v20, 0.0 }
 0x184   :  { %v2150_v16 = vpop.f32.mrb[70].mxu0  ;;  %v1462_v53 = vadd.f32 %v2149_v24, %v3443_v59 }
 0x185   :  { %v2151_v30 = vpop.f32.mrb[71].mxu0  ;;  %v2183_v38 = vpop.f32.mrb[82].mxu1 }
 0x186   :  { %v2152_v9 = vadd.f32 %v2151_v30, %v2150_v16  ;;  %v2184_v57 = vpop.f32.mrb[83].mxu1 }
 0x187   :  { %v3676_v4 = vadd.f32 %v2184_v57, %v2183_v38 }
 0x188   :  { %v2153_v60 = vpop.f32.mrb[72].mxu0  ;;  %v1467_v22 = vadd.f32 %v2152_v9, %v3443_v59 }
 0x189   :  { %v2154_v28 = vpop.f32.mrb[73].mxu0  ;;  %v2186_v14 = vpop.f32.mrb[84].mxu1 }
 0x18a   :  { %v2155_v51 = vadd.f32 %v2154_v28, %v2153_v60  ;;  %v2187_v18 = vpop.f32.mrb[85].mxu1 }
 0x18b   :  { %v3678_v25 = vadd.f32 %v2187_v18, %v2186_v14 }
 0x18c   :  { %v2156_v46 = vpop.f32.mrb[74].mxu0 }
 0x18d   :  { %v2315_v26 = vpop.f32.mrb[86].mxu1  ;;  %v2157_v23 = vpop.f32.mrb[75].mxu0 }
 0x18e   :  { %v1602_v8 = vadd.f32 %v2315_v26, %v1457_v41  ;;  %v2158_v34 = vadd.f32 %v2157_v23, %v2156_v46  ;;  %v1596_v50 = vpop.f32.mrb[87].mxu1  ;;  %v1275_v41 = vmax.f32 %v3636_v2, 0.0 }
 0x18f   :  { %v1597_v54 = vadd.f32 %v1596_v50, %v1452_v32 }
 0x190   :  { %v1676_v37 = vmax.f32 %v1602_v8, 0.0  ;;  %v2159_v29 = vpop.f32.mrb[76].mxu0  ;;  %v1477_v20 = vadd.f32 %v2158_v34, %v3443_v59  ;;  %v1472_v8 = vadd.f32 %v2155_v51, %v3443_v59  ;;  %v1278_v34 = vmax.f32 %v3640_v0, 0.0 }
 0x191   :  { %v1675_v3 = vmax.f32 %v1597_v54, 0.0  ;;  %v2318_v16 = vpop.f32.mrb[88].mxu1  ;;  %v2160_v30 = vpop.f32.mrb[77].mxu0 }
 0x192   :  { %v1692_v38 = vmax.f32 %v1274_v47, %v1676_v37  ;;  %v1612_v57 = vadd.f32 %v2318_v16, %v1467_v22  ;;  %v2161_v10 = vadd.f32 %v2160_v30, %v2159_v29  ;;  %v1606_v60 = vpop.f32.mrb[89].mxu1  ;;  %v1277_v22 = vmax.f32 %v3643_v45, 0.0 }
 0x193   :  { %v1691_v28 = vmax.f32 %v1273_v17, %v1675_v3  ;;  %v1607_v14 = vadd.f32 %v1606_v60, %v1462_v53  ;;  %v1280_v60 = vmax.f32 %v3646_v19, 0.0 }
 0x194   :  { %v1708_v18 = vmax.f32 %v3551_v56, %v1692_v38  ;;  %v1678_v46 = vmax.f32 %v1612_v57, 0.0  ;;  %v2162_v9 = vpop.f32.mrb[78].mxu0  ;;  %v1482_v53 = vadd.f32 %v2161_v10, %v3443_v59 }
 0x195   :  { %v1707_v26 = vmax.f32 %v3553_v40, %v1691_v28  ;;  %v1677_v24 = vmax.f32 %v1607_v14, 0.0  ;;  %v2321_v23 = vpop.f32.mrb[90].mxu1  ;;  %v2163_v32 = vpop.f32.mrb[79].mxu0 }
 0x196   :  { %1725 = vst.msk [vmem:[%s3801_s6 + $0x8] sm:$0xff] %vm1723_vm1, %v1708_v18  ;;  %v1694_v5 = vmax.f32 %v1276_v44, %v1678_v46  ;;  %v1622_v56 = vadd.f32 %v2321_v23, %v1477_v20  ;;  %v2164_v50 = vadd.f32 %v2163_v32, %v2162_v9  ;;  %v1616_v54 = vpop.f32.mrb[91].mxu1  ;;  %v1279_v18 = vmax.f32 %v3648_v55, 0.0 }
 0x197   :  { %1724 = vst.msk [vmem:[%s3801_s6] sm:$0xff] %vm1723_vm1, %v1707_v26  ;;  %v1693_v40 = vmax.f32 %v1275_v41, %v1677_v24  ;;  %v1617_v2 = vadd.f32 %v1616_v54, %v1472_v8  ;;  %v1281_v8 = vmax.f32 %v3652_v36, 0.0  ;;  %v1282_v36 = vmax.f32 %v3654_v33, 0.0 }
 0x198   :  { %v1710_v51 = vmax.f32 %v3563_v7, %v1694_v5  ;;  %v1680_v47 = vmax.f32 %v1622_v56, 0.0  ;;  %v2165_v37 = vpop.f32.mrb[80].mxu0  ;;  %v1487_v29 = vadd.f32 %v2164_v50, %v3443_v59  ;;  %v1286_v33 = vmax.f32 %v3666_v61, 0.0 }
 0x199   :  { %v1709_v17 = vmax.f32 %v3565_v62, %v1693_v40  ;;  %v1679_v3 = vmax.f32 %v1617_v2, 0.0  ;;  %v2324_v16 = vpop.f32.mrb[92].mxu1  ;;  %v2166_v30 = vpop.f32.mrb[81].mxu0 }
 0x19a   :  { %1727 = vst.msk [vmem:[%s3801_s6 + $0x18] sm:$0xff] %vm1723_vm1, %v1710_v51  ;;  %v1696_v0 = vmax.f32 %v1278_v34, %v1680_v47  ;;  %v1632_v7 = vadd.f32 %v2324_v16, %v1487_v29  ;;  %v2167_v38 = vadd.f32 %v2166_v30, %v2165_v37  ;;  %v1626_v57 = vpop.f32.mrb[93].mxu1  ;;  %v1517_v37 = vadd.f32 %v3674_v63, %v3443_v59 }
 0x19b   :  { %1726 = vst.msk [vmem:[%s3801_s6 + $0x10] sm:$0xff] %vm1723_vm1, %v1709_v17  ;;  %v1695_v62 = vmax.f32 %v1277_v22, %v1679_v3  ;;  %v1627_v45 = vadd.f32 %v1626_v57, %v1482_v53  ;;  %v1527_v63 = vadd.f32 %v3678_v25, %v3443_v59 }
 0x19c   :  { %v1712_v10 = vmax.f32 %v3575_v15, %v1696_v0  ;;  %v1682_v28 = vmax.f32 %v1632_v7, 0.0  ;;  %v2168_v14 = vpop.f32.mrb[82].mxu0  ;;  %v1492_v44 = vadd.f32 %v2167_v38, %v3443_v59  ;;  %v1283_v7 = vmax.f32 %v3657_v11, 0.0 }
 0x19d   :  { %v1711_v46 = vmax.f32 %v3577_v21, %v1695_v62  ;;  %v1681_v9 = vmax.f32 %v1627_v45, 0.0  ;;  %v2327_v20 = vpop.f32.mrb[94].mxu1  ;;  %v2169_v41 = vpop.f32.mrb[83].mxu0  ;;  %v1522_v11 = vadd.f32 %v3676_v4, %v3443_v59 }
 0x19e   :  { %1729 = vst.msk [vmem:[%s3801_s6 + $0x28] sm:$0xff] %vm1723_vm1, %v1712_v10  ;;  %v1698_v26 = vmax.f32 %v1280_v60, %v1682_v28  ;;  %v2170_v19 = vadd.f32 %v2169_v41, %v2168_v14  ;;  %v1636_v24 = vpop.f32.mrb[95].mxu1 }
 0x19f   :  { %1728 = vst.msk [vmem:[%s3801_s6 + $0x20] sm:$0xff] %vm1723_vm1, %v1711_v46  ;;  %v1697_v15 = vmax.f32 %v1279_v18, %v1681_v9  ;;  %v1637_v55 = vadd.f32 %v1636_v24, %v1492_v44  ;;  %v1284_v44 = vmax.f32 %v3660_v6, 0.0  ;;  %v1288_v18 = vmax.f32 %v3672_v48, 0.0 }
 0x1a0   :  { %v1714_v21 = vmax.f32 %v3585_v39, %v1698_v26  ;;  %v1497_v23 = vadd.f32 %v2170_v19, %v3443_v59  ;;  %v2171_v32 = vpop.f32.mrb[84].mxu0  ;;  %v1287_v24 = vmax.f32 %v3669_v42, 0.0  ;;  %v1285_v42 = vmax.f32 %v3663_v1, 0.0 }
 0x1a1   :  { %v1713_v5 = vmax.f32 %v3587_v52, %v1697_v15  ;;  %v1683_v56 = vmax.f32 %v1637_v55, 0.0  ;;  %v2172_v50 = vpop.f32.mrb[85].mxu0  ;;  %v2330_v54 = vpop.f32.mrb[96].mxu1 }
 0x1a2   :  { %1731 = vst.msk [vmem:[%s3801_s6 + $0x38] sm:$0xff] %vm1723_vm1, %v1714_v21  ;;  %v1642_v40 = vadd.f32 %v2327_v20, %v1497_v23  ;;  %v2173_v2 = vadd.f32 %v2172_v50, %v2171_v32  ;;  %v1646_v34 = vpop.f32.mrb[97].mxu1 }
 0x1a3   :  { %1730 = vst.msk [vmem:[%s3801_s6 + $0x30] sm:$0xff] %vm1723_vm1, %v1713_v5  ;;  %v1699_v39 = vmax.f32 %v1281_v8, %v1683_v56 }
 0x1a4   :  { %v1684_v52 = vmax.f32 %v1642_v40, 0.0  ;;  %v1502_v51 = vadd.f32 %v2173_v2, %v3443_v59  ;;  %v2174_v47 = vpop.f32.mrb[86].mxu0 }
 0x1a5   :  { %v1715_v29 = vmax.f32 %v3597_v58, %v1699_v39  ;;  %v2333_v22 = vpop.f32.mrb[98].mxu1  ;;  %v2175_v17 = vpop.f32.mrb[87].mxu0 }
 0x1a6   :  { %v1700_v3 = vmax.f32 %v1282_v36, %v1684_v52  ;;  %v1647_v16 = vadd.f32 %v1646_v34, %v1502_v51  ;;  %v1662_v30 = vadd.f32 %v2333_v22, %v1517_v37  ;;  %v2176_v53 = vadd.f32 %v2175_v17, %v2174_v47  ;;  %v1656_v0 = vpop.f32.mrb[99].mxu1 }
 0x1a7   :  { %1732 = vst.msk [vmem:[%s3801_s6 + $0x40] sm:$0xff] %vm1723_vm1, %v1715_v29 }
 0x1a8   :  { %v1716_v58 = vmax.f32 %v3595_v49, %v1700_v3  ;;  %v1685_v38 = vmax.f32 %v1647_v16, 0.0  ;;  %v1688_v57 = vmax.f32 %v1662_v30, 0.0  ;;  %v1507_v62 = vadd.f32 %v2176_v53, %v3443_v59  ;;  %v2177_v45 = vpop.f32.mrb[88].mxu0 }
 0x1a9   :  { %v2336_v60 = vpop.f32.mrb[100].mxu1  ;;  %v2178_v10 = vpop.f32.mrb[89].mxu0 }
 0x1aa   :  { %1733 = vst.msk [vmem:[%s3801_s6 + $0x48] sm:$0xff] %vm1723_vm1, %v1716_v58  ;;  %v1701_v61 = vmax.f32 %v1283_v7, %v1685_v38  ;;  %v1704_v28 = vmax.f32 %v1286_v33, %v1688_v57  ;;  %v1652_v25 = vadd.f32 %v2330_v54, %v1507_v62  ;;  %v1672_v14 = vadd.f32 %v2336_v60, %v1527_v63  ;;  %v1666_v49 = vpop.f32.mrb[101].mxu1 }
 0x1ab   :  { %v2179_v46 = vadd.f32 %v2178_v10, %v2177_v45  ;;  %v1667_v9 = vadd.f32 %v1666_v49, %v1522_v11 }
 0x1ac   :  { %v1717_v20 = vmax.f32 %v3607_v12, %v1701_v61  ;;  %v1720_v4 = vmax.f32 %v3615_v31, %v1704_v28  ;;  %v1686_v41 = vmax.f32 %v1652_v25, 0.0  ;;  %v1690_v26 = vmax.f32 %v1672_v14, 0.0 }
 0x1ad   :  { %v1512_v19 = vadd.f32 %v2179_v46, %v3443_v59  ;;  %v1689_v15 = vmax.f32 %v1667_v9, 0.0 }
 0x1ae   :  { %1734 = vst.msk [vmem:[%s3801_s6 + $0x50] sm:$0xff] %vm1723_vm1, %v1717_v20  ;;  %1737 = vst.msk [vmem:[%s3801_s6 + $0x68] sm:$0xff] %vm1723_vm1, %v1720_v4  ;;  %v1702_v12 = vmax.f32 %v1284_v44, %v1686_v41  ;;  %v1706_v6 = vmax.f32 %v1288_v18, %v1690_v26 }
 0x1af   :  { %v1657_v31 = vadd.f32 %v1656_v0, %v1512_v19  ;;  %v1705_v48 = vmax.f32 %v1287_v24, %v1689_v15 }
 0x1b0   :  { %v1718_v55 = vmax.f32 %v3605_v27, %v1702_v12  ;;  %v1722_v59 = vmax.f32 %v3624_v35, %v1706_v6 }
 0x1b1   :  { %v1687_v21 = vmax.f32 %v1657_v31, 0.0  ;;  %v1721_v23 = vmax.f32 %v3628_v13, %v1705_v48 }
 0x1b2   :  { %1735 = vst.msk [vmem:[%s3801_s6 + $0x58] sm:$0xff] %vm1723_vm1, %v1718_v55  ;;  %1739 = vst.msk [vmem:[%s3801_s6 + $0x78] sm:$0xff] %vm1723_vm1, %v1722_v59 }
 0x1b3   :  { %v1703_v32 = vmax.f32 %v1285_v42, %v1687_v21  ;;  %1738 = vst.msk [vmem:[%s3801_s6 + $0x70] sm:$0xff] %vm1723_vm1, %v1721_v23 }
 0x1b5   :  { %v1719_v27 = vmax.f32 %v3617_v43, %v1703_v32 }
 0x1b7   :  { %1736 = vst.msk [vmem:[%s3801_s6 + $0x60] sm:$0xff] %vm1723_vm1, %v1719_v27 }

// kernel: fashion_cnn_forward.5
= control target key start
LH: loop header
LB: loop body
LE: loop exit
PB: predicated region body
PF: predicated region fallthrough
CT: control target
= control target key end

     0   :  { %vm2385_vm0 = vmmov 0   ;;  %vm444_vm1 = vcmask 523264   ;;  %vm1452_vm2 = vcmask 80896   ;;  %s3737_s1 = inlined_call_operand.vmem [shape: f32[3136,128], index: 1, kind: input, shape index: {}]   ;;  %s3738_s0 = inlined_call_operand.vmem [shape: f32[8,3136], index: 0, kind: input, shape index: {}]   ;;  %s3739_s2 = inlined_call_operand.vmem [shape: f32[1,128], index: 2, kind: input, shape index: {}]   ;;  %s3740_s3 = inlined_call_operand.vmem [shape: f32[128,10], index: 3, kind: input, shape index: {}]   ;;  %s3741_s4 = inlined_call_operand.vmem [shape: f32[1,10], index: 4, kind: input, shape index: {}]   ;;  %s3742_s5 = inlined_call_operand.vmem [shape: f32[8,10], index: 5, kind: output, shape index: {}]  }
   0x1   :  { %v61_v0 = vld [vmem:[%s3737_s1 + $0x80] sm:$0xff]  ;;  %v62_v1 = vld [vmem:[%s3737_s1 + $0x88] sm:$0xff]  ;;  %v63_v11 = vld [vmem:[%s3737_s1 + $0x90] sm:$0xff] }
   0x2   :  { %v45_v2 = vld [vmem:[%s3737_s1] sm:$0xff]  ;;  %v1961_v3 = vpack.c.bf16 %v62_v1, %v61_v0  ;;  %v46_v4 = vld [vmem:[%s3737_s1 + $0x8] sm:$0xff]  ;;  %v64_v13 = vld [vmem:[%s3737_s1 + $0x98] sm:$0xff] }
   0x3   :  { %v93_v5 = vld [vmem:[%s3737_s1 + $0x180] sm:$0xff]  ;;  %v94_v6 = vld [vmem:[%s3737_s1 + $0x188] sm:$0xff]  ;;  %v1963_v7 = vpack.c.bf16 %v46_v4, %v45_v2  ;;  %v47_v14 = vld [vmem:[%s3737_s1 + $0x10] sm:$0xff]  ;;  %v1965_v16 = vpack.c.bf16 %v64_v13, %v63_v11 }
   0x4   :  { %v1993_v8 = vpack.c.bf16 %v94_v6, %v93_v5  ;;  %v77_v9 = vld [vmem:[%s3737_s1 + $0x100] sm:$0xff]  ;;  %v78_v10 = vld [vmem:[%s3737_s1 + $0x108] sm:$0xff]  ;;  %1962 = vmatprep.subr.bf16.mxu0 %v1961_v3  ;;  %v48_v15 = vld [vmem:[%s3737_s1 + $0x18] sm:$0xff] }
   0x5   :  { %v1995_v12 = vpack.c.bf16 %v78_v10, %v77_v9  ;;  %1964 = vmatpush3.bf16.msra.mxu0 %v1963_v7  ;;  %v1967_v17 = vpack.c.bf16 %v48_v15, %v47_v14  ;;  %v95_v18 = vld [vmem:[%s3737_s1 + $0x190] sm:$0xff]  ;;  %v96_v19 = vld [vmem:[%s3737_s1 + $0x198] sm:$0xff]  ;;  %v65_v23 = vld [vmem:[%s3737_s1 + $0xa0] sm:$0xff] }
   0x6   :  { %1994 = vmatprep.subr.bf16.mxu1 %v1993_v8  ;;  %v79_v20 = vld [vmem:[%s3737_s1 + $0x110] sm:$0xff]  ;;  %v1997_v21 = vpack.c.bf16 %v96_v19, %v95_v18  ;;  %v80_v22 = vld [vmem:[%s3737_s1 + $0x118] sm:$0xff]  ;;  %v66_v24 = vld [vmem:[%s3737_s1 + $0xa8] sm:$0xff]  ;;  %1966 = vmatprep.subr.bf16.mxu0 %v1965_v16 }
   0x7   :  { %1996 = vmatpush3.bf16.msra.mxu1 %v1995_v12  ;;  %v1999_v25 = vpack.c.bf16 %v80_v22, %v79_v20  ;;  %v1969_v26 = vpack.c.bf16 %v66_v24, %v65_v23  ;;  %v49_v27 = vld [vmem:[%s3737_s1 + $0x20] sm:$0xff]  ;;  %v50_v28 = vld [vmem:[%s3737_s1 + $0x28] sm:$0xff]  ;;  %v67_v35 = vld [vmem:[%s3737_s1 + $0xb0] sm:$0xff] }
   0x8   :  { %v97_v29 = vld [vmem:[%s3737_s1 + $0x1a0] sm:$0xff]  ;;  %1998 = vmatprep.subr.bf16.mxu1 %v1997_v21  ;;  %v98_v30 = vld [vmem:[%s3737_s1 + $0x1a8] sm:$0xff]  ;;  %v1971_v33 = vpack.c.bf16 %v50_v28, %v49_v27  ;;  %v68_v36 = vld [vmem:[%s3737_s1 + $0xb8] sm:$0xff] }
   0x9   :  { %v81_v31 = vld [vmem:[%s3737_s1 + $0x120] sm:$0xff]  ;;  %v82_v32 = vld [vmem:[%s3737_s1 + $0x128] sm:$0xff]  ;;  %1968 = vmatpush3.bf16.msra.mxu0 %v1967_v17  ;;  %v2001_v34 = vpack.c.bf16 %v98_v30, %v97_v29  ;;  %v51_v37 = vld [vmem:[%s3737_s1 + $0x30] sm:$0xff]  ;;  %v1973_v39 = vpack.c.bf16 %v68_v36, %v67_v35 }
   0xa   :  { %1970 = vmatprep.subr.bf16.mxu0 %v1969_v26  ;;  %v2003_v38 = vpack.c.bf16 %v82_v32, %v81_v31  ;;  %v52_v40 = vld [vmem:[%s3737_s1 + $0x38] sm:$0xff]  ;;  %v99_v41 = vld [vmem:[%s3737_s1 + $0x1b0] sm:$0xff]  ;;  %v69_v46 = vld [vmem:[%s3737_s1 + $0xc0] sm:$0xff] }
   0xb   :  { %2000 = vmatpush3.bf16.msra.mxu1 %v1999_v25  ;;  %v100_v42 = vld [vmem:[%s3737_s1 + $0x1b8] sm:$0xff]  ;;  %v83_v44 = vld [vmem:[%s3737_s1 + $0x130] sm:$0xff]  ;;  %v70_v47 = vld [vmem:[%s3737_s1 + $0xc8] sm:$0xff]  ;;  %v1975_v48 = vpack.c.bf16 %v52_v40, %v51_v37 }
   0xc   :  { %2002 = vmatprep.subr.bf16.mxu1 %v2001_v34  ;;  %v2005_v43 = vpack.c.bf16 %v100_v42, %v99_v41  ;;  %v84_v45 = vld [vmem:[%s3737_s1 + $0x138] sm:$0xff]  ;;  %v101_v49 = vld [vmem:[%s3737_s1 + $0x1c0] sm:$0xff]  ;;  %v102_v50 = vld [vmem:[%s3737_s1 + $0x1c8] sm:$0xff]  ;;  %v1977_v52 = vpack.c.bf16 %v70_v47, %v69_v46 }
   0xd   :  { %1972 = vmatpush3.bf16.msra.mxu0 %v1971_v33  ;;  %v2007_v51 = vpack.c.bf16 %v84_v45, %v83_v44  ;;  %v53_v53 = vld [vmem:[%s3737_s1 + $0x40] sm:$0xff]  ;;  %v54_v54 = vld [vmem:[%s3737_s1 + $0x48] sm:$0xff]  ;;  %v2009_v56 = vpack.c.bf16 %v102_v50, %v101_v49  ;;  %v71_v58 = vld [vmem:[%s3737_s1 + $0xd0] sm:$0xff] }
   0xe   :  { %1974 = vmatprep.subr.bf16.mxu0 %v1973_v39  ;;  %v85_v55 = vld [vmem:[%s3737_s1 + $0x140] sm:$0xff]  ;;  %v86_v57 = vld [vmem:[%s3737_s1 + $0x148] sm:$0xff]  ;;  %v72_v59 = vld [vmem:[%s3737_s1 + $0xd8] sm:$0xff]  ;;  %v1979_v62 = vpack.c.bf16 %v54_v54, %v53_v53 }
   0xf   :  { %2004 = vmatpush3.bf16.msra.mxu1 %v2003_v38  ;;  %v103_v60 = vld [vmem:[%s3737_s1 + $0x1d0] sm:$0xff]  ;;  %v104_v61 = vld [vmem:[%s3737_s1 + $0x1d8] sm:$0xff]  ;;  %v2011_v63 = vpack.c.bf16 %v86_v57, %v85_v55  ;;  %v1981_v0 = vpack.c.bf16 %v72_v59, %v71_v58  ;;  %v73_v6 = vld [vmem:[%s3737_s1 + $0xe0] sm:$0xff] }
  0x10   :  { %2006 = vmatprep.subr.bf16.mxu1 %v2005_v43  ;;  %v55_v1 = vld [vmem:[%s3737_s1 + $0x50] sm:$0xff]  ;;  %v56_v2 = vld [vmem:[%s3737_s1 + $0x58] sm:$0xff]  ;;  %v2013_v4 = vpack.c.bf16 %v104_v61, %v103_v60  ;;  %v74_v7 = vld [vmem:[%s3737_s1 + $0xe8] sm:$0xff] }
  0x11   :  { %1976 = vmatpush3.bf16.msra.mxu0 %v1975_v48  ;;  %v87_v3 = vld [vmem:[%s3737_s1 + $0x150] sm:$0xff]  ;;  %v88_v5 = vld [vmem:[%s3737_s1 + $0x158] sm:$0xff]  ;;  %v105_v8 = vld [vmem:[%s3737_s1 + $0x1e0] sm:$0xff]  ;;  %v1983_v10 = vpack.c.bf16 %v56_v2, %v55_v1  ;;  %v1985_v14 = vpack.c.bf16 %v74_v7, %v73_v6 }
  0x12   :  { %1978 = vmatprep.subr.bf16.mxu0 %v1977_v52  ;;  %v106_v9 = vld [vmem:[%s3737_s1 + $0x1e8] sm:$0xff]  ;;  %v57_v11 = vld [vmem:[%s3737_s1 + $0x60] sm:$0xff]  ;;  %v2015_v13 = vpack.c.bf16 %v88_v5, %v87_v3  ;;  %v75_v19 = vld [vmem:[%s3737_s1 + $0xf0] sm:$0xff] }
  0x13   :  { %2008 = vmatpush3.bf16.msra.mxu1 %v2007_v51  ;;  %v21_v12 = vld [vmem:[%s3738_s0 + $0x8] sm:$0xff]  ;;  %v89_v16 = vld [vmem:[%s3737_s1 + $0x160] sm:$0xff]  ;;  %v2017_v18 = vpack.c.bf16 %v106_v9, %v105_v8  ;;  %v76_v20 = vld [vmem:[%s3737_s1 + $0xf8] sm:$0xff] }
  0x14   :  { %2010 = vmatprep.subr.bf16.mxu1 %v2009_v56  ;;  %v58_v15 = vld [vmem:[%s3737_s1 + $0x68] sm:$0xff]  ;;  %512 = vmatprep.mubr.f32.mxu0 %v21_v12  ;;  %v23_v21 = vld [vmem:[%s3738_s0 + $0x18] sm:$0xff]  ;;  %v107_v22 = vld [vmem:[%s3737_s1 + $0x1f0] sm:$0xff]  ;;  %v1989_v26 = vpack.c.bf16 %v76_v20, %v75_v19 }
  0x15   :  { %1980 = vmatpush3.bf16.msra.mxu0 %v1979_v62  ;;  %v90_v17 = vld [vmem:[%s3737_s1 + $0x168] sm:$0xff]  ;;  %v108_v23 = vld [vmem:[%s3737_s1 + $0x1f8] sm:$0xff]  ;;  %582 = vmatprep.mubr.f32.mxu1 %v23_v21  ;;  %v1987_v24 = vpack.c.bf16 %v58_v15, %v57_v11  ;;  %v59_v27 = vld [vmem:[%s3737_s1 + $0x70] sm:$0xff] }
  0x16   :  { %1982 = vmatprep.subr.bf16.mxu0 %v1981_v0  ;;  %v2019_v25 = vpack.c.bf16 %v90_v17, %v89_v16  ;;  %v60_v28 = vld [vmem:[%s3737_s1 + $0x78] sm:$0xff]  ;;  %v91_v29 = vld [vmem:[%s3737_s1 + $0x170] sm:$0xff]  ;;  %v2021_v30 = vpack.c.bf16 %v108_v23, %v107_v22  ;;  %v125_v32 = vld [vmem:[%s3737_s1 + $0x280] sm:$0xff] }
  0x17   :  { %2012 = vmatpush3.bf16.msra.mxu1 %v2011_v63  ;;  %v92_v31 = vld [vmem:[%s3737_s1 + $0x178] sm:$0xff]  ;;  %v126_v33 = vld [vmem:[%s3737_s1 + $0x288] sm:$0xff]  ;;  %v157_v34 = vld [vmem:[%s3737_s1 + $0x380] sm:$0xff]  ;;  %v1991_v36 = vpack.c.bf16 %v60_v28, %v59_v27 }
  0x18   :  { %2014 = vmatprep.subr.bf16.mxu1 %v2013_v4  ;;  %v158_v35 = vld [vmem:[%s3737_s1 + $0x388] sm:$0xff]  ;;  %v2023_v37 = vpack.c.bf16 %v92_v31, %v91_v29  ;;  %v2025_v38 = vpack.c.bf16 %v126_v33, %v125_v32  ;;  %v109_v39 = vld [vmem:[%s3737_s1 + $0x200] sm:$0xff]  ;;  %v127_v44 = vld [vmem:[%s3737_s1 + $0x290] sm:$0xff] }
  0x19   :  { %1984 = vmatpush3.bf16.msra.mxu0 %v1983_v10  ;;  %v110_v40 = vld [vmem:[%s3737_s1 + $0x208] sm:$0xff]  ;;  %v141_v41 = vld [vmem:[%s3737_s1 + $0x300] sm:$0xff]  ;;  %v2057_v42 = vpack.c.bf16 %v158_v35, %v157_v34  ;;  %v128_v45 = vld [vmem:[%s3737_s1 + $0x298] sm:$0xff] }
  0x1a   :  { %1986 = vmatprep.subr.bf16.mxu0 %v1985_v14  ;;  %v142_v43 = vld [vmem:[%s3737_s1 + $0x308] sm:$0xff]  ;;  %v159_v46 = vld [vmem:[%s3737_s1 + $0x390] sm:$0xff]  ;;  %v160_v47 = vld [vmem:[%s3737_s1 + $0x398] sm:$0xff]  ;;  %v2027_v49 = vpack.c.bf16 %v110_v40, %v109_v39  ;;  %v2029_v52 = vpack.c.bf16 %v128_v45, %v127_v44 }
  0x1b   :  { %2016 = vmatpush3.bf16.msra.mxu1 %v2015_v13  ;;  %v20_v48 = vld [vmem:[%s3738_s0] sm:$0xff]  ;;  %v22_v50 = vld [vmem:[%s3738_s0 + $0x10] sm:$0xff]  ;;  %v2059_v51 = vpack.c.bf16 %v142_v43, %v141_v41  ;;  %v112_v54 = vld [vmem:[%s3737_s1 + $0x218] sm:$0xff]  ;;  %v2061_v56 = vpack.c.bf16 %v160_v47, %v159_v46 }
  0x1c   :  { %2018 = vmatprep.subr.bf16.mxu1 %v2017_v18  ;;  %v111_v53 = vld [vmem:[%s3737_s1 + $0x210] sm:$0xff]  ;;  %v144_v57 = vld [vmem:[%s3737_s1 + $0x318] sm:$0xff]  ;;  %v129_v58 = vld [vmem:[%s3737_s1 + $0x2a0] sm:$0xff] }
  0x1d   :  { %1988 = vmatpush3.bf16.msra.mxu0 %v1987_v24  ;;  %v143_v55 = vld [vmem:[%s3737_s1 + $0x310] sm:$0xff]  ;;  %v130_v59 = vld [vmem:[%s3737_s1 + $0x2a8] sm:$0xff]  ;;  %v161_v60 = vld [vmem:[%s3737_s1 + $0x3a0] sm:$0xff]  ;;  %v2031_v62 = vpack.c.bf16 %v112_v54, %v111_v53 }
  0x1e   :  { %1990 = vmatprep.subr.bf16.mxu0 %v1989_v26  ;;  %v162_v61 = vld [vmem:[%s3737_s1 + $0x3a8] sm:$0xff]  ;;  %v2063_v63 = vpack.c.bf16 %v144_v57, %v143_v55  ;;  %v2033_v0 = vpack.c.bf16 %v130_v59, %v129_v58  ;;  %v113_v1 = vld [vmem:[%s3737_s1 + $0x220] sm:$0xff]  ;;  %v131_v6 = vld [vmem:[%s3737_s1 + $0x2b0] sm:$0xff] }
  0x1f   :  { %2020 = vmatpush3.bf16.msra.mxu1 %v2019_v25  ;;  %v114_v2 = vld [vmem:[%s3737_s1 + $0x228] sm:$0xff]  ;;  %v145_v3 = vld [vmem:[%s3737_s1 + $0x320] sm:$0xff]  ;;  %v2065_v4 = vpack.c.bf16 %v162_v61, %v161_v60  ;;  %v132_v7 = vld [vmem:[%s3737_s1 + $0x2b8] sm:$0xff] }
  0x20   :  { %2022 = vmatprep.subr.bf16.mxu1 %v2021_v30  ;;  %v146_v5 = vld [vmem:[%s3737_s1 + $0x328] sm:$0xff]  ;;  %v163_v8 = vld [vmem:[%s3737_s1 + $0x3b0] sm:$0xff]  ;;  %v164_v9 = vld [vmem:[%s3737_s1 + $0x3b8] sm:$0xff]  ;;  %v2035_v10 = vpack.c.bf16 %v114_v2, %v113_v1  ;;  %v2037_v12 = vpack.c.bf16 %v132_v7, %v131_v6 }
  0x21   :  { %1992 = vmatpush3.bf16.msra.mxu0 %v1991_v36  ;;  %v2067_v11 = vpack.c.bf16 %v146_v5, %v145_v3  ;;  %v115_v13 = vld [vmem:[%s3737_s1 + $0x230] sm:$0xff]  ;;  %v116_v14 = vld [vmem:[%s3737_s1 + $0x238] sm:$0xff]  ;;  %v2069_v16 = vpack.c.bf16 %v164_v9, %v163_v8  ;;  %v133_v18 = vld [vmem:[%s3737_s1 + $0x2c0] sm:$0xff] }
  0x22   :  { %2026 = vmatprep.subr.bf16.mxu0 %v2025_v38  ;;  %v147_v15 = vld [vmem:[%s3737_s1 + $0x330] sm:$0xff]  ;;  %v148_v17 = vld [vmem:[%s3737_s1 + $0x338] sm:$0xff]  ;;  %v134_v19 = vld [vmem:[%s3737_s1 + $0x2c8] sm:$0xff]  ;;  %v2039_v23 = vpack.c.bf16 %v116_v14, %v115_v13 }
  0x23   :  { %2024 = vmatpush3.bf16.msra.mxu1 %v2023_v37  ;;  %v165_v20 = vld [vmem:[%s3737_s1 + $0x3c0] sm:$0xff]  ;;  %v166_v21 = vld [vmem:[%s3737_s1 + $0x3c8] sm:$0xff]  ;;  %v2071_v25 = vpack.c.bf16 %v148_v17, %v147_v15  ;;  %v2041_v26 = vpack.c.bf16 %v134_v19, %v133_v18  ;;  %v27_v29 = vld [vmem:[%s3738_s0 + $0x38] sm:$0xff] }
  0x24   :  { %2058 = vmatprep.subr.bf16.mxu1 %v2057_v42  ;;  %513 = vmatmul.mubr.f32.vlgmr.msra.gmra.mrb[0].mxu0 %v20_v48  ;;  %v25_v22 = vld [vmem:[%s3738_s0 + $0x28] sm:$0xff]  ;;  %v117_v24 = vld [vmem:[%s3737_s1 + $0x240] sm:$0xff]  ;;  %v2073_v30 = vpack.c.bf16 %v166_v21, %v165_v20  ;;  %v135_v32 = vld [vmem:[%s3737_s1 + $0x2d0] sm:$0xff] }
  0x25   :  { %2028 = vmatpush3.bf16.msra.mxu0 %v2027_v49  ;;  %652 = vmatprep.mubr.f32.mxu0 %v25_v22  ;;  %v118_v27 = vld [vmem:[%s3737_s1 + $0x248] sm:$0xff]  ;;  %v149_v28 = vld [vmem:[%s3737_s1 + $0x340] sm:$0xff]  ;;  %v136_v33 = vld [vmem:[%s3737_s1 + $0x2d8] sm:$0xff] }
  0x26   :  { %583 = vmatmul.mubr.f32.vlgmr.msra.gmra.mrb[0].mxu1 %v22_v50  ;;  %2030 = vmatprep.subr.bf16.mxu0 %v2029_v52  ;;  %v150_v31 = vld [vmem:[%s3737_s1 + $0x348] sm:$0xff]  ;;  %v167_v34 = vld [vmem:[%s3737_s1 + $0x3d0] sm:$0xff]  ;;  %v168_v35 = vld [vmem:[%s3737_s1 + $0x3d8] sm:$0xff]  ;;  %v2043_v36 = vpack.c.bf16 %v118_v27, %v117_v24  ;;  %v2045_v38 = vpack.c.bf16 %v136_v33, %v135_v32 }
  0x27   :  { %2060 = vmatpush3.bf16.msra.mxu1 %v2059_v51  ;;  %722 = vmatprep.mubr.f32.mxu1 %v27_v29  ;;  %v2075_v37 = vpack.c.bf16 %v150_v31, %v149_v28  ;;  %v119_v39 = vld [vmem:[%s3737_s1 + $0x250] sm:$0xff]  ;;  %v120_v40 = vld [vmem:[%s3737_s1 + $0x258] sm:$0xff]  ;;  %v2077_v42 = vpack.c.bf16 %v168_v35, %v167_v34  ;;  %v137_v44 = vld [vmem:[%s3737_s1 + $0x2e0] sm:$0xff] }
  0x28   :  { %2062 = vmatprep.subr.bf16.mxu1 %v2061_v56  ;;  %v151_v41 = vld [vmem:[%s3737_s1 + $0x350] sm:$0xff]  ;;  %v152_v43 = vld [vmem:[%s3737_s1 + $0x358] sm:$0xff]  ;;  %v138_v45 = vld [vmem:[%s3737_s1 + $0x2e8] sm:$0xff]  ;;  %v2047_v48 = vpack.c.bf16 %v120_v40, %v119_v39 }
  0x29   :  { %2032 = vmatpush3.bf16.msra.mxu0 %v2031_v62  ;;  %v169_v46 = vld [vmem:[%s3737_s1 + $0x3e0] sm:$0xff]  ;;  %v170_v47 = vld [vmem:[%s3737_s1 + $0x3e8] sm:$0xff]  ;;  %v2079_v49 = vpack.c.bf16 %v152_v43, %v151_v41  ;;  %v2049_v50 = vpack.c.bf16 %v138_v45, %v137_v44  ;;  %v139_v56 = vld [vmem:[%s3737_s1 + $0x2f0] sm:$0xff] }
  0x2a   :  { %2034 = vmatprep.subr.bf16.mxu0 %v2033_v0  ;;  %v121_v51 = vld [vmem:[%s3737_s1 + $0x260] sm:$0xff]  ;;  %v122_v52 = vld [vmem:[%s3737_s1 + $0x268] sm:$0xff]  ;;  %v2081_v54 = vpack.c.bf16 %v170_v47, %v169_v46  ;;  %v140_v57 = vld [vmem:[%s3737_s1 + $0x2f8] sm:$0xff] }
  0x2b   :  { %2064 = vmatpush3.bf16.msra.mxu1 %v2063_v63  ;;  %v153_v53 = vld [vmem:[%s3737_s1 + $0x360] sm:$0xff]  ;;  %v154_v55 = vld [vmem:[%s3737_s1 + $0x368] sm:$0xff]  ;;  %v171_v58 = vld [vmem:[%s3737_s1 + $0x3f0] sm:$0xff]  ;;  %v2051_v60 = vpack.c.bf16 %v122_v52, %v121_v51  ;;  %v2053_v62 = vpack.c.bf16 %v140_v57, %v139_v56 }
  0x2c   :  { %2066 = vmatprep.subr.bf16.mxu1 %v2065_v4  ;;  %v172_v59 = vld [vmem:[%s3737_s1 + $0x3f8] sm:$0xff]  ;;  %v2083_v61 = vpack.c.bf16 %v154_v55, %v153_v53  ;;  %v123_v63 = vld [vmem:[%s3737_s1 + $0x270] sm:$0xff]  ;;  %v189_v4 = vld [vmem:[%s3737_s1 + $0x480] sm:$0xff] }
  0x2d   :  { %2036 = vmatpush3.bf16.msra.mxu0 %v2035_v10  ;;  %v124_v0 = vld [vmem:[%s3737_s1 + $0x278] sm:$0xff]  ;;  %v155_v1 = vld [vmem:[%s3737_s1 + $0x370] sm:$0xff]  ;;  %v2085_v2 = vpack.c.bf16 %v172_v59, %v171_v58  ;;  %v190_v5 = vld [vmem:[%s3737_s1 + $0x488] sm:$0xff] }
  0x2e   :  { %2038 = vmatprep.subr.bf16.mxu0 %v2037_v12  ;;  %v156_v3 = vld [vmem:[%s3737_s1 + $0x378] sm:$0xff]  ;;  %v221_v6 = vld [vmem:[%s3737_s1 + $0x580] sm:$0xff]  ;;  %v222_v7 = vld [vmem:[%s3737_s1 + $0x588] sm:$0xff]  ;;  %v2055_v8 = vpack.c.bf16 %v124_v0, %v123_v63  ;;  %v2089_v10 = vpack.c.bf16 %v190_v5, %v189_v4 }
  0x2f   :  { %2068 = vmatpush3.bf16.msra.mxu1 %v2067_v11  ;;  %v2087_v9 = vpack.c.bf16 %v156_v3, %v155_v1  ;;  %v173_v11 = vld [vmem:[%s3737_s1 + $0x400] sm:$0xff]  ;;  %v174_v12 = vld [vmem:[%s3737_s1 + $0x408] sm:$0xff]  ;;  %v2121_v14 = vpack.c.bf16 %v222_v7, %v221_v6  ;;  %v192_v17 = vld [vmem:[%s3737_s1 + $0x498] sm:$0xff] }
  0x30   :  { %2070 = vmatprep.subr.bf16.mxu1 %v2069_v16  ;;  %v205_v13 = vld [vmem:[%s3737_s1 + $0x500] sm:$0xff]  ;;  %v206_v15 = vld [vmem:[%s3737_s1 + $0x508] sm:$0xff]  ;;  %v191_v16 = vld [vmem:[%s3737_s1 + $0x490] sm:$0xff]  ;;  %v2091_v21 = vpack.c.bf16 %v174_v12, %v173_v11 }
  0x31   :  { %2040 = vmatpush3.bf16.msra.mxu0 %v2039_v23  ;;  %v223_v18 = vld [vmem:[%s3737_s1 + $0x590] sm:$0xff]  ;;  %v224_v19 = vld [vmem:[%s3737_s1 + $0x598] sm:$0xff]  ;;  %v24_v20 = vld [vmem:[%s3738_s0 + $0x20] sm:$0xff]  ;;  %v2123_v23 = vpack.c.bf16 %v206_v15, %v205_v13  ;;  %v2093_v24 = vpack.c.bf16 %v192_v17, %v191_v16 }
  0x32   :  { %2042 = vmatprep.subr.bf16.mxu0 %v2041_v26  ;;  %v26_v22 = vld [vmem:[%s3738_s0 + $0x30] sm:$0xff]  ;;  %v176_v26 = vld [vmem:[%s3737_s1 + $0x418] sm:$0xff]  ;;  %v2125_v28 = vpack.c.bf16 %v224_v19, %v223_v18  ;;  %v194_v31 = vld [vmem:[%s3737_s1 + $0x4a8] sm:$0xff] }
  0x33   :  { %2072 = vmatpush3.bf16.msra.mxu1 %v2071_v25  ;;  %v175_v25 = vld [vmem:[%s3737_s1 + $0x410] sm:$0xff]  ;;  %v208_v29 = vld [vmem:[%s3737_s1 + $0x518] sm:$0xff]  ;;  %v225_v32 = vld [vmem:[%s3737_s1 + $0x5a0] sm:$0xff] }
  0x34   :  { %2074 = vmatprep.subr.bf16.mxu1 %v2073_v30  ;;  %v207_v27 = vld [vmem:[%s3737_s1 + $0x510] sm:$0xff]  ;;  %v193_v30 = vld [vmem:[%s3737_s1 + $0x4a0] sm:$0xff]  ;;  %v226_v33 = vld [vmem:[%s3737_s1 + $0x5a8] sm:$0xff]  ;;  %v2095_v35 = vpack.c.bf16 %v176_v26, %v175_v25 }
  0x35   :  { %2044 = vmatpush3.bf16.msra.mxu0 %v2043_v36  ;;  %v29_v34 = vld [vmem:[%s3738_s0 + $0x48] sm:$0xff]  ;;  %v31_v36 = vld [vmem:[%s3738_s0 + $0x58] sm:$0xff]  ;;  %v177_v39 = vld [vmem:[%s3737_s1 + $0x420] sm:$0xff] }
  0x36   :  { %2046 = vmatprep.subr.bf16.mxu0 %v2045_v38  ;;  %v2097_v38 = vpack.c.bf16 %v194_v31, %v193_v30  ;;  %v178_v40 = vld [vmem:[%s3737_s1 + $0x428] sm:$0xff]  ;;  %v209_v41 = vld [vmem:[%s3737_s1 + $0x520] sm:$0xff]  ;;  %v195_v44 = vld [vmem:[%s3737_s1 + $0x4b0] sm:$0xff] }
  0x37   :  { %2076 = vmatpush3.bf16.msra.mxu1 %v2075_v37  ;;  %v2127_v37 = vpack.c.bf16 %v208_v29, %v207_v27  ;;  %v210_v43 = vld [vmem:[%s3737_s1 + $0x528] sm:$0xff]  ;;  %v196_v45 = vld [vmem:[%s3737_s1 + $0x4b8] sm:$0xff]  ;;  %v227_v46 = vld [vmem:[%s3737_s1 + $0x5b0] sm:$0xff] }
  0x38   :  { %2078 = vmatprep.subr.bf16.mxu1 %v2077_v42  ;;  %v2129_v42 = vpack.c.bf16 %v226_v33, %v225_v32  ;;  %v228_v47 = vld [vmem:[%s3737_s1 + $0x5b8] sm:$0xff]  ;;  %v179_v51 = vld [vmem:[%s3737_s1 + $0x430] sm:$0xff]  ;;  %v197_v56 = vld [vmem:[%s3737_s1 + $0x4c0] sm:$0xff] }
  0x39   :  { %2048 = vmatpush3.bf16.msra.mxu0 %v2047_v48  ;;  %v2099_v48 = vpack.c.bf16 %v178_v40, %v177_v39  ;;  %v180_v52 = vld [vmem:[%s3737_s1 + $0x438] sm:$0xff]  ;;  %v211_v53 = vld [vmem:[%s3737_s1 + $0x530] sm:$0xff]  ;;  %v198_v57 = vld [vmem:[%s3737_s1 + $0x4c8] sm:$0xff] }
  0x3a   :  { %2050 = vmatprep.subr.bf16.mxu0 %v2049_v50  ;;  %v2101_v50 = vpack.c.bf16 %v196_v45, %v195_v44  ;;  %v212_v55 = vld [vmem:[%s3737_s1 + $0x538] sm:$0xff]  ;;  %v229_v58 = vld [vmem:[%s3737_s1 + $0x5c0] sm:$0xff]  ;;  %v230_v59 = vld [vmem:[%s3737_s1 + $0x5c8] sm:$0xff] }
  0x3b   :  { %2080 = vmatpush3.bf16.msra.mxu1 %v2079_v49  ;;  %v2131_v49 = vpack.c.bf16 %v210_v43, %v209_v41  ;;  %v181_v63 = vld [vmem:[%s3737_s1 + $0x440] sm:$0xff]  ;;  %v182_v0 = vld [vmem:[%s3737_s1 + $0x448] sm:$0xff]  ;;  %v199_v4 = vld [vmem:[%s3737_s1 + $0x4d0] sm:$0xff] }
  0x3c   :  { %2082 = vmatprep.subr.bf16.mxu1 %v2081_v54  ;;  %v2133_v54 = vpack.c.bf16 %v228_v47, %v227_v46  ;;  %v213_v1 = vld [vmem:[%s3737_s1 + $0x540] sm:$0xff]  ;;  %v214_v3 = vld [vmem:[%s3737_s1 + $0x548] sm:$0xff]  ;;  %v200_v5 = vld [vmem:[%s3737_s1 + $0x4d8] sm:$0xff] }
  0x3d   :  { %2052 = vmatpush3.bf16.msra.mxu0 %v2051_v60  ;;  %v2103_v60 = vpack.c.bf16 %v180_v52, %v179_v51  ;;  %v231_v6 = vld [vmem:[%s3737_s1 + $0x5d0] sm:$0xff]  ;;  %v232_v7 = vld [vmem:[%s3737_s1 + $0x5d8] sm:$0xff]  ;;  %v201_v16 = vld [vmem:[%s3737_s1 + $0x4e0] sm:$0xff] }
  0x3e   :  { %2054 = vmatprep.subr.bf16.mxu0 %v2053_v62  ;;  %v2105_v62 = vpack.c.bf16 %v198_v57, %v197_v56  ;;  %v183_v11 = vld [vmem:[%s3737_s1 + $0x450] sm:$0xff]  ;;  %v184_v12 = vld [vmem:[%s3737_s1 + $0x458] sm:$0xff]  ;;  %v202_v17 = vld [vmem:[%s3737_s1 + $0x4e8] sm:$0xff] }
  0x3f   :  { %2084 = vmatpush3.bf16.msra.mxu1 %v2083_v61  ;;  %v2135_v61 = vpack.c.bf16 %v212_v55, %v211_v53  ;;  %v215_v13 = vld [vmem:[%s3737_s1 + $0x550] sm:$0xff]  ;;  %v216_v15 = vld [vmem:[%s3737_s1 + $0x558] sm:$0xff]  ;;  %v233_v18 = vld [vmem:[%s3737_s1 + $0x5e0] sm:$0xff] }
  0x40   :  { %2086 = vmatprep.subr.bf16.mxu1 %v2085_v2  ;;  %v2137_v2 = vpack.c.bf16 %v230_v59, %v229_v58  ;;  %v234_v19 = vld [vmem:[%s3737_s1 + $0x5e8] sm:$0xff]  ;;  %v217_v25 = vld [vmem:[%s3737_s1 + $0x560] sm:$0xff]  ;;  %v204_v29 = vld [vmem:[%s3737_s1 + $0x4f8] sm:$0xff] }
  0x41   :  { %2056 = vmatpush3.bf16.msra.mxu0 %v2055_v8  ;;  %v2107_v8 = vpack.c.bf16 %v182_v0, %v181_v63  ;;  %v2145_v26 = vpack.c.bf16 %v234_v19, %v233_v18  ;;  %v218_v27 = vld [vmem:[%s3737_s1 + $0x568] sm:$0xff]  ;;  %v235_v30 = vld [vmem:[%s3737_s1 + $0x5f0] sm:$0xff]  ;;  %v236_v31 = vld [vmem:[%s3737_s1 + $0x5f8] sm:$0xff] }
  0x42   :  { %2090 = vmatprep.subr.bf16.mxu0 %v2089_v10  ;;  %v2109_v10 = vpack.c.bf16 %v200_v5, %v199_v4  ;;  %v2147_v33 = vpack.c.bf16 %v218_v27, %v217_v25  ;;  %v220_v39 = vld [vmem:[%s3737_s1 + $0x578] sm:$0xff]  ;;  %v253_v40 = vld [vmem:[%s3737_s1 + $0x680] sm:$0xff]  ;;  %v254_v41 = vld [vmem:[%s3737_s1 + $0x688] sm:$0xff] }
  0x43   :  { %2088 = vmatpush3.bf16.msra.mxu1 %v2087_v9  ;;  %v2139_v9 = vpack.c.bf16 %v214_v3, %v213_v1  ;;  %v286_v43 = vld [vmem:[%s3737_s1 + $0x788] sm:$0xff]  ;;  %v2153_v46 = vpack.c.bf16 %v254_v41, %v253_v40  ;;  %v237_v47 = vld [vmem:[%s3737_s1 + $0x600] sm:$0xff]  ;;  %v255_v52 = vld [vmem:[%s3737_s1 + $0x690] sm:$0xff] }
  0x44   :  { %2122 = vmatprep.subr.bf16.mxu1 %v2121_v14  ;;  %653 = vmatmul.mubr.f32.vlgmr.msra.gmra.mrb[2].mxu0 %v24_v20  ;;  %v2141_v14 = vpack.c.bf16 %v232_v7, %v231_v6  ;;  %v2111_v20 = vpack.c.bf16 %v184_v12, %v183_v11  ;;  %v270_v51 = vld [vmem:[%s3737_s1 + $0x708] sm:$0xff]  ;;  %v256_v53 = vld [vmem:[%s3737_s1 + $0x698] sm:$0xff]  ;;  %v28_v56 = vld [vmem:[%s3738_s0 + $0x40] sm:$0xff] }
  0x45   :  { %2092 = vmatpush3.bf16.msra.mxu0 %v2091_v21  ;;  %792 = vmatprep.mubr.f32.mxu0 %v29_v34  ;;  %v2143_v21 = vpack.c.bf16 %v216_v15, %v215_v13  ;;  %v288_v55 = vld [vmem:[%s3737_s1 + $0x798] sm:$0xff]  ;;  %v30_v58 = vld [vmem:[%s3738_s0 + $0x50] sm:$0xff]  ;;  %v258_v3 = vld [vmem:[%s3737_s1 + $0x6a8] sm:$0xff] }
  0x46   :  { %723 = vmatmul.mubr.f32.vlgmr.msra.gmra.mrb[2].mxu1 %v26_v22  ;;  %2094 = vmatprep.subr.bf16.mxu0 %v2093_v24  ;;  %v2113_v22 = vpack.c.bf16 %v202_v17, %v201_v16  ;;  %v186_v24 = vld [vmem:[%s3737_s1 + $0x468] sm:$0xff]  ;;  %v271_v63 = vld [vmem:[%s3737_s1 + $0x710] sm:$0xff]  ;;  %v272_v1 = vld [vmem:[%s3737_s1 + $0x718] sm:$0xff] }
  0x47   :  { %2124 = vmatpush3.bf16.msra.mxu1 %v2123_v23  ;;  %862 = vmatprep.mubr.f32.mxu1 %v31_v36  ;;  %v185_v23 = vld [vmem:[%s3737_s1 + $0x460] sm:$0xff]  ;;  %v188_v36 = vld [vmem:[%s3737_s1 + $0x478] sm:$0xff]  ;;  %v290_v5 = vld [vmem:[%s3737_s1 + $0x7a8] sm:$0xff] }
  0x48   :  { %2126 = vmatprep.subr.bf16.mxu1 %v2125_v28  ;;  %v203_v28 = vld [vmem:[%s3737_s1 + $0x4f0] sm:$0xff]  ;;  %v2115_v32 = vpack.c.bf16 %v186_v24, %v185_v23  ;;  %v289_v4 = vld [vmem:[%s3737_s1 + $0x7a0] sm:$0xff]  ;;  %v33_v6 = vld [vmem:[%s3738_s0 + $0x68] sm:$0xff] }
  0x49   :  { %2096 = vmatpush3.bf16.msra.mxu0 %v2095_v35  ;;  %v2117_v34 = vpack.c.bf16 %v204_v29, %v203_v28  ;;  %v187_v35 = vld [vmem:[%s3737_s1 + $0x470] sm:$0xff]  ;;  %v241_v11 = vld [vmem:[%s3737_s1 + $0x620] sm:$0xff]  ;;  %v242_v12 = vld [vmem:[%s3737_s1 + $0x628] sm:$0xff] }
  0x4a   :  { %2098 = vmatprep.subr.bf16.mxu0 %v2097_v38  ;;  %v2149_v38 = vpack.c.bf16 %v236_v31, %v235_v30  ;;  %v2119_v44 = vpack.c.bf16 %v188_v36, %v187_v35  ;;  %v273_v13 = vld [vmem:[%s3737_s1 + $0x720] sm:$0xff]  ;;  %v274_v15 = vld [vmem:[%s3737_s1 + $0x728] sm:$0xff]  ;;  %v259_v16 = vld [vmem:[%s3737_s1 + $0x6b0] sm:$0xff] }
  0x4b   :  { %2128 = vmatpush3.bf16.msra.mxu1 %v2127_v37  ;;  %v219_v37 = vld [vmem:[%s3737_s1 + $0x570] sm:$0xff]  ;;  %v260_v17 = vld [vmem:[%s3737_s1 + $0x6b8] sm:$0xff]  ;;  %v261_v28 = vld [vmem:[%s3737_s1 + $0x6c0] sm:$0xff] }
  0x4c   :  { %2130 = vmatprep.subr.bf16.mxu1 %v2129_v42  ;;  %v285_v42 = vld [vmem:[%s3737_s1 + $0x780] sm:$0xff]  ;;  %v2151_v45 = vpack.c.bf16 %v220_v39, %v219_v37  ;;  %v291_v18 = vld [vmem:[%s3737_s1 + $0x7b0] sm:$0xff]  ;;  %v292_v19 = vld [vmem:[%s3737_s1 + $0x7b8] sm:$0xff] }
  0x4d   :  { %2100 = vmatpush3.bf16.msra.mxu0 %v2099_v48  ;;  %v238_v48 = vld [vmem:[%s3737_s1 + $0x608] sm:$0xff]  ;;  %v243_v23 = vld [vmem:[%s3737_s1 + $0x630] sm:$0xff]  ;;  %v244_v24 = vld [vmem:[%s3737_s1 + $0x638] sm:$0xff] }
  0x4e   :  { %2102 = vmatprep.subr.bf16.mxu0 %v2101_v50  ;;  %v2185_v50 = vpack.c.bf16 %v286_v43, %v285_v42  ;;  %v2155_v57 = vpack.c.bf16 %v238_v48, %v237_v47  ;;  %v275_v25 = vld [vmem:[%s3737_s1 + $0x730] sm:$0xff]  ;;  %v276_v27 = vld [vmem:[%s3737_s1 + $0x738] sm:$0xff]  ;;  %v262_v29 = vld [vmem:[%s3737_s1 + $0x6c8] sm:$0xff] }
  0x4f   :  { %2132 = vmatpush3.bf16.msra.mxu1 %v2131_v49  ;;  %v269_v49 = vld [vmem:[%s3737_s1 + $0x700] sm:$0xff]  ;;  %v294_v31 = vld [vmem:[%s3737_s1 + $0x7c8] sm:$0xff]  ;;  %v263_v40 = vld [vmem:[%s3737_s1 + $0x6d0] sm:$0xff] }
  0x50   :  { %2134 = vmatprep.subr.bf16.mxu1 %v2133_v54  ;;  %v287_v54 = vld [vmem:[%s3737_s1 + $0x790] sm:$0xff]  ;;  %v2187_v59 = vpack.c.bf16 %v270_v51, %v269_v49  ;;  %v293_v30 = vld [vmem:[%s3737_s1 + $0x7c0] sm:$0xff]  ;;  %v246_v36 = vld [vmem:[%s3737_s1 + $0x648] sm:$0xff] }
  0x51   :  { %2104 = vmatpush3.bf16.msra.mxu0 %v2103_v60  ;;  %v2157_v60 = vpack.c.bf16 %v256_v53, %v255_v52  ;;  %v2189_v0 = vpack.c.bf16 %v288_v55, %v287_v54  ;;  %v245_v35 = vld [vmem:[%s3737_s1 + $0x640] sm:$0xff]  ;;  %v278_v39 = vld [vmem:[%s3737_s1 + $0x748] sm:$0xff]  ;;  %v264_v41 = vld [vmem:[%s3737_s1 + $0x6d8] sm:$0xff] }
  0x52   :  { %2106 = vmatprep.subr.bf16.mxu0 %v2105_v62  ;;  %v240_v62 = vld [vmem:[%s3737_s1 + $0x618] sm:$0xff]  ;;  %v277_v37 = vld [vmem:[%s3737_s1 + $0x740] sm:$0xff]  ;;  %v295_v42 = vld [vmem:[%s3737_s1 + $0x7d0] sm:$0xff] }
  0x53   :  { %2136 = vmatpush3.bf16.msra.mxu1 %v2135_v61  ;;  %v239_v61 = vld [vmem:[%s3737_s1 + $0x610] sm:$0xff]  ;;  %v296_v43 = vld [vmem:[%s3737_s1 + $0x7d8] sm:$0xff]  ;;  %v265_v52 = vld [vmem:[%s3737_s1 + $0x6e0] sm:$0xff] }
  0x54   :  { %2138 = vmatprep.subr.bf16.mxu1 %v2137_v2  ;;  %v257_v2 = vld [vmem:[%s3737_s1 + $0x6a0] sm:$0xff]  ;;  %v2159_v7 = vpack.c.bf16 %v240_v62, %v239_v61  ;;  %v247_v47 = vld [vmem:[%s3737_s1 + $0x650] sm:$0xff]  ;;  %v248_v48 = vld [vmem:[%s3737_s1 + $0x658] sm:$0xff] }
  0x55   :  { %2108 = vmatpush3.bf16.msra.mxu0 %v2107_v8  ;;  %v35_v8 = vld [vmem:[%s3738_s0 + $0x78] sm:$0xff]  ;;  %v279_v49 = vld [vmem:[%s3737_s1 + $0x750] sm:$0xff]  ;;  %v266_v53 = vld [vmem:[%s3737_s1 + $0x6e8] sm:$0xff] }
  0x56   :  { %2110 = vmatprep.subr.bf16.mxu0 %v2109_v10  ;;  %v2161_v10 = vpack.c.bf16 %v258_v3, %v257_v2  ;;  %v280_v51 = vld [vmem:[%s3737_s1 + $0x758] sm:$0xff]  ;;  %v297_v54 = vld [vmem:[%s3737_s1 + $0x7e0] sm:$0xff]  ;;  %v298_v55 = vld [vmem:[%s3737_s1 + $0x7e8] sm:$0xff] }
  0x57   :  { %2140 = vmatpush3.bf16.msra.mxu1 %v2139_v9  ;;  %v2191_v9 = vpack.c.bf16 %v272_v1, %v271_v63  ;;  %v281_v61 = vld [vmem:[%s3737_s1 + $0x760] sm:$0xff]  ;;  %v2209_v62 = vpack.c.bf16 %v298_v55, %v297_v54  ;;  %v282_v63 = vld [vmem:[%s3737_s1 + $0x768] sm:$0xff]  ;;  %v268_v1 = vld [vmem:[%s3737_s1 + $0x6f8] sm:$0xff] }
  0x58   :  { %2142 = vmatprep.subr.bf16.mxu1 %v2141_v14  ;;  %v2193_v14 = vpack.c.bf16 %v290_v5, %v289_v4  ;;  %v299_v2 = vld [vmem:[%s3737_s1 + $0x7f0] sm:$0xff]  ;;  %v300_v3 = vld [vmem:[%s3737_s1 + $0x7f8] sm:$0xff]  ;;  %v2211_v5 = vpack.c.bf16 %v282_v63, %v281_v61 }
  0x59   :  { %2112 = vmatpush3.bf16.msra.mxu0 %v2111_v20  ;;  %v2163_v20 = vpack.c.bf16 %v242_v12, %v241_v11  ;;  %v284_v11 = vld [vmem:[%s3737_s1 + $0x778] sm:$0xff]  ;;  %v317_v12 = vld [vmem:[%s3737_s1 + $0x880] sm:$0xff]  ;;  %v355_v54 = vld [vmem:[%s3737_s1 + $0x9b0] sm:$0xff] }
  0x5a   :  { %2114 = vmatprep.subr.bf16.mxu0 %v2113_v22  ;;  %v2165_v22 = vpack.c.bf16 %v260_v17, %v259_v16  ;;  %v356_v55 = vld [vmem:[%s3737_s1 + $0x9b8] sm:$0xff]  ;;  %v339_v61 = vld [vmem:[%s3737_s1 + $0x930] sm:$0xff] }
  0x5b   :  { %2144 = vmatpush3.bf16.msra.mxu1 %v2143_v21  ;;  %v2195_v21 = vpack.c.bf16 %v274_v15, %v273_v13  ;;  %v318_v13 = vld [vmem:[%s3737_s1 + $0x888] sm:$0xff]  ;;  %v340_v63 = vld [vmem:[%s3737_s1 + $0x938] sm:$0xff] }
  0x5c   :  { %2146 = vmatprep.subr.bf16.mxu1 %v2145_v26  ;;  %v2197_v26 = vpack.c.bf16 %v292_v19, %v291_v18  ;;  %v350_v15 = vld [vmem:[%s3737_s1 + $0x988] sm:$0xff]  ;;  %v2217_v18 = vpack.c.bf16 %v318_v13, %v317_v12  ;;  %v301_v19 = vld [vmem:[%s3737_s1 + $0x800] sm:$0xff]  ;;  %v327_v12 = vld [vmem:[%s3737_s1 + $0x8d0] sm:$0xff] }
  0x5d   :  { %2116 = vmatpush3.bf16.msra.mxu0 %v2115_v32  ;;  %v2167_v32 = vpack.c.bf16 %v244_v24, %v243_v23  ;;  %v334_v23 = vld [vmem:[%s3737_s1 + $0x908] sm:$0xff]  ;;  %v319_v24 = vld [vmem:[%s3737_s1 + $0x890] sm:$0xff]  ;;  %v328_v13 = vld [vmem:[%s3737_s1 + $0x8d8] sm:$0xff] }
  0x5e   :  { %2118 = vmatprep.subr.bf16.mxu0 %v2117_v34  ;;  %v2169_v34 = vpack.c.bf16 %v262_v29, %v261_v28  ;;  %v32_v28 = vld [vmem:[%s3738_s0 + $0x60] sm:$0xff] }
  0x5f   :  { %2148 = vmatpush3.bf16.msra.mxu1 %v2147_v33  ;;  %v2199_v33 = vpack.c.bf16 %v276_v27, %v275_v25  ;;  %v320_v25 = vld [vmem:[%s3737_s1 + $0x898] sm:$0xff] }
  0x60   :  { %2150 = vmatprep.subr.bf16.mxu1 %v2149_v38  ;;  %v2201_v38 = vpack.c.bf16 %v294_v31, %v293_v30  ;;  %v352_v27 = vld [vmem:[%s3737_s1 + $0x998] sm:$0xff]  ;;  %v34_v30 = vld [vmem:[%s3738_s0 + $0x70] sm:$0xff] }
  0x61   :  { %2120 = vmatpush3.bf16.msra.mxu0 %v2119_v44  ;;  %v2171_v44 = vpack.c.bf16 %v246_v36, %v245_v35  ;;  %v335_v35 = vld [vmem:[%s3737_s1 + $0x910] sm:$0xff] }
  0x62   :  { %2154 = vmatprep.subr.bf16.mxu0 %v2153_v46  ;;  %v2173_v46 = vpack.c.bf16 %v264_v41, %v263_v40  ;;  %v353_v40 = vld [vmem:[%s3737_s1 + $0x9a0] sm:$0xff]  ;;  %v354_v41 = vld [vmem:[%s3737_s1 + $0x9a8] sm:$0xff] }
  0x63   :  { %2152 = vmatpush3.bf16.msra.mxu1 %v2151_v45  ;;  %v2203_v45 = vpack.c.bf16 %v278_v39, %v277_v37  ;;  %v336_v37 = vld [vmem:[%s3737_s1 + $0x918] sm:$0xff]  ;;  %v322_v39 = vld [vmem:[%s3737_s1 + $0x8a8] sm:$0xff] }
  0x64   :  { %2186 = vmatprep.subr.bf16.mxu1 %v2185_v50  ;;  %793 = vmatmul.mubr.f32.vlgmr.msra.gmra.mrb[4].mxu0 %v28_v56  ;;  %v2205_v50 = vpack.c.bf16 %v296_v43, %v295_v42  ;;  %v2175_v56 = vpack.c.bf16 %v248_v48, %v247_v47  ;;  %v37_v42 = vld [vmem:[%s3738_s0 + $0x88] sm:$0xff]  ;;  %v305_v47 = vld [vmem:[%s3737_s1 + $0x820] sm:$0xff] }
  0x65   :  { %2156 = vmatpush3.bf16.msra.mxu0 %v2155_v57  ;;  %932 = vmatprep.mubr.f32.mxu0 %v33_v6  ;;  %v2207_v57 = vpack.c.bf16 %v280_v51, %v279_v49  ;;  %v306_v48 = vld [vmem:[%s3737_s1 + $0x828] sm:$0xff]  ;;  %v337_v49 = vld [vmem:[%s3737_s1 + $0x920] sm:$0xff] }
  0x66   :  { %863 = vmatmul.mubr.f32.vlgmr.msra.gmra.mrb[4].mxu1 %v30_v58  ;;  %2158 = vmatprep.subr.bf16.mxu0 %v2157_v60  ;;  %v2177_v58 = vpack.c.bf16 %v266_v53, %v265_v52  ;;  %v250_v60 = vld [vmem:[%s3737_s1 + $0x668] sm:$0xff]  ;;  %v323_v52 = vld [vmem:[%s3737_s1 + $0x8b0] sm:$0xff]  ;;  %v324_v53 = vld [vmem:[%s3737_s1 + $0x8b8] sm:$0xff] }
  0x67   :  { %2188 = vmatpush3.bf16.msra.mxu1 %v2187_v59  ;;  %1002 = vmatprep.mubr.f32.mxu1 %v35_v8  ;;  %v249_v59 = vld [vmem:[%s3737_s1 + $0x660] sm:$0xff]  ;;  %v252_v8 = vld [vmem:[%s3737_s1 + $0x678] sm:$0xff]  ;;  %v338_v51 = vld [vmem:[%s3737_s1 + $0x928] sm:$0xff] }
  0x68   :  { %2190 = vmatprep.subr.bf16.mxu1 %v2189_v0  ;;  %v267_v0 = vld [vmem:[%s3737_s1 + $0x6f0] sm:$0xff]  ;;  %v2179_v4 = vpack.c.bf16 %v250_v60, %v249_v59  ;;  %v308_v60 = vld [vmem:[%s3737_s1 + $0x838] sm:$0xff] }
  0x69   :  { %2160 = vmatpush3.bf16.msra.mxu0 %v2159_v7  ;;  %v2181_v6 = vpack.c.bf16 %v268_v1, %v267_v0  ;;  %v251_v7 = vld [vmem:[%s3737_s1 + $0x670] sm:$0xff]  ;;  %v325_v0 = vld [vmem:[%s3737_s1 + $0x8c0] sm:$0xff]  ;;  %v326_v1 = vld [vmem:[%s3737_s1 + $0x8c8] sm:$0xff] }
  0x6a   :  { %2162 = vmatprep.subr.bf16.mxu0 %v2161_v10  ;;  %v2213_v10 = vpack.c.bf16 %v300_v3, %v299_v2  ;;  %v2183_v16 = vpack.c.bf16 %v252_v8, %v251_v7  ;;  %v307_v59 = vld [vmem:[%s3737_s1 + $0x830] sm:$0xff]  ;;  %v357_v2 = vld [vmem:[%s3737_s1 + $0x9c0] sm:$0xff]  ;;  %v358_v3 = vld [vmem:[%s3737_s1 + $0x9c8] sm:$0xff] }
  0x6b   :  { %2192 = vmatpush3.bf16.msra.mxu1 %v2191_v9  ;;  %v283_v9 = vld [vmem:[%s3737_s1 + $0x770] sm:$0xff]  ;;  %v309_v7 = vld [vmem:[%s3737_s1 + $0x840] sm:$0xff]  ;;  %v310_v8 = vld [vmem:[%s3737_s1 + $0x848] sm:$0xff] }
  0x6c   :  { %2194 = vmatprep.subr.bf16.mxu1 %v2193_v14  ;;  %v349_v14 = vld [vmem:[%s3737_s1 + $0x980] sm:$0xff]  ;;  %v2215_v17 = vpack.c.bf16 %v284_v11, %v283_v9  ;;  %v342_v11 = vld [vmem:[%s3737_s1 + $0x948] sm:$0xff] }
  0x6d   :  { %2164 = vmatpush3.bf16.msra.mxu0 %v2163_v20  ;;  %v302_v20 = vld [vmem:[%s3737_s1 + $0x808] sm:$0xff]  ;;  %v341_v9 = vld [vmem:[%s3737_s1 + $0x940] sm:$0xff] }
  0x6e   :  { %2166 = vmatprep.subr.bf16.mxu0 %v2165_v22  ;;  %v2249_v22 = vpack.c.bf16 %v350_v15, %v349_v14  ;;  %v2219_v29 = vpack.c.bf16 %v302_v20, %v301_v19  ;;  %v359_v14 = vld [vmem:[%s3737_s1 + $0x9d0] sm:$0xff]  ;;  %v360_v15 = vld [vmem:[%s3737_s1 + $0x9d8] sm:$0xff] }
  0x6f   :  { %2196 = vmatpush3.bf16.msra.mxu1 %v2195_v21  ;;  %v333_v21 = vld [vmem:[%s3737_s1 + $0x900] sm:$0xff]  ;;  %v311_v19 = vld [vmem:[%s3737_s1 + $0x850] sm:$0xff]  ;;  %v312_v20 = vld [vmem:[%s3737_s1 + $0x858] sm:$0xff] }
  0x70   :  { %2198 = vmatprep.subr.bf16.mxu1 %v2197_v26  ;;  %v351_v26 = vld [vmem:[%s3737_s1 + $0x990] sm:$0xff]  ;;  %v2251_v31 = vpack.c.bf16 %v334_v23, %v333_v21  ;;  %v344_v23 = vld [vmem:[%s3737_s1 + $0x958] sm:$0xff] }
  0x71   :  { %2168 = vmatpush3.bf16.msra.mxu0 %v2167_v32  ;;  %v2221_v32 = vpack.c.bf16 %v320_v25, %v319_v24  ;;  %v2253_v36 = vpack.c.bf16 %v352_v27, %v351_v26  ;;  %v343_v21 = vld [vmem:[%s3737_s1 + $0x950] sm:$0xff]  ;;  %v329_v24 = vld [vmem:[%s3737_s1 + $0x8e0] sm:$0xff]  ;;  %v330_v25 = vld [vmem:[%s3737_s1 + $0x8e8] sm:$0xff] }
  0x72   :  { %2170 = vmatprep.subr.bf16.mxu0 %v2169_v34  ;;  %v304_v34 = vld [vmem:[%s3737_s1 + $0x818] sm:$0xff]  ;;  %v361_v26 = vld [vmem:[%s3737_s1 + $0x9e0] sm:$0xff]  ;;  %v362_v27 = vld [vmem:[%s3737_s1 + $0x9e8] sm:$0xff] }
  0x73   :  { %2200 = vmatpush3.bf16.msra.mxu1 %v2199_v33  ;;  %v303_v33 = vld [vmem:[%s3737_s1 + $0x810] sm:$0xff] }
  0x74   :  { %2202 = vmatprep.subr.bf16.mxu1 %v2201_v38  ;;  %v321_v38 = vld [vmem:[%s3737_s1 + $0x8a0] sm:$0xff]  ;;  %v2223_v43 = vpack.c.bf16 %v304_v34, %v303_v33  ;;  %v2273_v34 = vpack.c.bf16 %v362_v27, %v361_v26  ;;  %v419_v26 = vld [vmem:[%s3737_s1 + $0xbb0] sm:$0xff]  ;;  %v420_v27 = vld [vmem:[%s3737_s1 + $0xbb8] sm:$0xff] }
  0x75   :  { %2172 = vmatpush3.bf16.msra.mxu0 %v2171_v44  ;;  %v39_v44 = vld [vmem:[%s3738_s0 + $0x98] sm:$0xff]  ;;  %v345_v33 = vld [vmem:[%s3737_s1 + $0x960] sm:$0xff] }
  0x76   :  { %2174 = vmatprep.subr.bf16.mxu0 %v2173_v46  ;;  %v2225_v46 = vpack.c.bf16 %v322_v39, %v321_v38  ;;  %v363_v38 = vld [vmem:[%s3737_s1 + $0x9f0] sm:$0xff]  ;;  %v364_v39 = vld [vmem:[%s3737_s1 + $0x9f8] sm:$0xff] }
  0x77   :  { %2204 = vmatpush3.bf16.msra.mxu1 %v2203_v45  ;;  %v2255_v45 = vpack.c.bf16 %v336_v37, %v335_v35  ;;  %v346_v35 = vld [vmem:[%s3737_s1 + $0x968] sm:$0xff]  ;;  %v332_v37 = vld [vmem:[%s3737_s1 + $0x8f8] sm:$0xff] }
  0x78   :  { %2206 = vmatprep.subr.bf16.mxu1 %v2205_v50  ;;  %v2257_v50 = vpack.c.bf16 %v354_v41, %v353_v40  ;;  %v2275_v41 = vpack.c.bf16 %v346_v35, %v345_v33  ;;  %v403_v33 = vld [vmem:[%s3737_s1 + $0xb30] sm:$0xff]  ;;  %v404_v35 = vld [vmem:[%s3737_s1 + $0xb38] sm:$0xff] }
  0x79   :  { %2176 = vmatpush3.bf16.msra.mxu0 %v2175_v56  ;;  %v2227_v56 = vpack.c.bf16 %v306_v48, %v305_v47  ;;  %v348_v47 = vld [vmem:[%s3737_s1 + $0x978] sm:$0xff]  ;;  %v381_v48 = vld [vmem:[%s3737_s1 + $0xa80] sm:$0xff] }
  0x7a   :  { %2178 = vmatprep.subr.bf16.mxu0 %v2177_v58  ;;  %v2229_v58 = vpack.c.bf16 %v324_v53, %v323_v52 }
  0x7b   :  { %2208 = vmatpush3.bf16.msra.mxu1 %v2207_v57  ;;  %v2259_v57 = vpack.c.bf16 %v338_v51, %v337_v49  ;;  %v382_v49 = vld [vmem:[%s3737_s1 + $0xa88] sm:$0xff] }
  0x7c   :  { %2210 = vmatprep.subr.bf16.mxu1 %v2209_v62  ;;  %v2261_v62 = vpack.c.bf16 %v356_v55, %v355_v54  ;;  %v414_v51 = vld [vmem:[%s3737_s1 + $0xb88] sm:$0xff]  ;;  %v2281_v54 = vpack.c.bf16 %v382_v49, %v381_v48  ;;  %v365_v55 = vld [vmem:[%s3737_s1 + $0xa00] sm:$0xff]  ;;  %v391_v48 = vld [vmem:[%s3737_s1 + $0xad0] sm:$0xff] }
  0x7d   :  { %2180 = vmatpush3.bf16.msra.mxu0 %v2179_v4  ;;  %v2231_v4 = vpack.c.bf16 %v308_v60, %v307_v59  ;;  %v398_v59 = vld [vmem:[%s3737_s1 + $0xb08] sm:$0xff]  ;;  %v383_v60 = vld [vmem:[%s3737_s1 + $0xa90] sm:$0xff]  ;;  %v392_v49 = vld [vmem:[%s3737_s1 + $0xad8] sm:$0xff] }
  0x7e   :  { %2182 = vmatprep.subr.bf16.mxu0 %v2181_v6  ;;  %v2233_v6 = vpack.c.bf16 %v326_v1, %v325_v0  ;;  %v36_v0 = vld [vmem:[%s3738_s0 + $0x80] sm:$0xff] }
  0x7f   :  { %2212 = vmatpush3.bf16.msra.mxu1 %v2211_v5  ;;  %v2263_v5 = vpack.c.bf16 %v340_v63, %v339_v61  ;;  %v384_v61 = vld [vmem:[%s3737_s1 + $0xa98] sm:$0xff] }
  0x80   :  { %2214 = vmatprep.subr.bf16.mxu1 %v2213_v10  ;;  %v2265_v10 = vpack.c.bf16 %v358_v3, %v357_v2  ;;  %v416_v63 = vld [vmem:[%s3737_s1 + $0xb98] sm:$0xff]  ;;  %v38_v2 = vld [vmem:[%s3738_s0 + $0x90] sm:$0xff] }
  0x81   :  { %2184 = vmatpush3.bf16.msra.mxu0 %v2183_v16  ;;  %v2235_v16 = vpack.c.bf16 %v310_v8, %v309_v7  ;;  %v399_v7 = vld [vmem:[%s3737_s1 + $0xb10] sm:$0xff] }
  0x82   :  { %2218 = vmatprep.subr.bf16.mxu0 %v2217_v18  ;;  %v2237_v18 = vpack.c.bf16 %v328_v13, %v327_v12  ;;  %v417_v12 = vld [vmem:[%s3737_s1 + $0xba0] sm:$0xff]  ;;  %v418_v13 = vld [vmem:[%s3737_s1 + $0xba8] sm:$0xff] }
  0x83   :  { %2216 = vmatpush3.bf16.msra.mxu1 %v2215_v17  ;;  %v2267_v17 = vpack.c.bf16 %v342_v11, %v341_v9  ;;  %v400_v9 = vld [vmem:[%s3737_s1 + $0xb18] sm:$0xff]  ;;  %v386_v11 = vld [vmem:[%s3737_s1 + $0xaa8] sm:$0xff] }
  0x84   :  { %2250 = vmatprep.subr.bf16.mxu1 %v2249_v22  ;;  %933 = vmatmul.mubr.f32.vlgmr.msra.gmra.mrb[6].mxu0 %v32_v28  ;;  %v2269_v22 = vpack.c.bf16 %v360_v15, %v359_v14  ;;  %v2239_v28 = vpack.c.bf16 %v312_v20, %v311_v19  ;;  %v41_v14 = vld [vmem:[%s3738_s0 + $0xa8] sm:$0xff]  ;;  %v369_v19 = vld [vmem:[%s3737_s1 + $0xa20] sm:$0xff] }
  0x85   :  { %2220 = vmatpush3.bf16.msra.mxu0 %v2219_v29  ;;  %1072 = vmatprep.mubr.f32.mxu0 %v37_v42  ;;  %v2271_v29 = vpack.c.bf16 %v344_v23, %v343_v21  ;;  %v370_v20 = vld [vmem:[%s3737_s1 + $0xa28] sm:$0xff]  ;;  %v401_v21 = vld [vmem:[%s3737_s1 + $0xb20] sm:$0xff] }
  0x86   :  { %1003 = vmatmul.mubr.f32.vlgmr.msra.gmra.mrb[6].mxu1 %v34_v30  ;;  %2222 = vmatprep.subr.bf16.mxu0 %v2221_v32  ;;  %v2241_v30 = vpack.c.bf16 %v330_v25, %v329_v24  ;;  %v314_v32 = vld [vmem:[%s3737_s1 + $0x868] sm:$0xff]  ;;  %v387_v24 = vld [vmem:[%s3737_s1 + $0xab0] sm:$0xff]  ;;  %v388_v25 = vld [vmem:[%s3737_s1 + $0xab8] sm:$0xff] }
  0x87   :  { %2252 = vmatpush3.bf16.msra.mxu1 %v2251_v31  ;;  %1142 = vmatprep.mubr.f32.mxu1 %v39_v44  ;;  %v313_v31 = vld [vmem:[%s3737_s1 + $0x860] sm:$0xff]  ;;  %v316_v44 = vld [vmem:[%s3737_s1 + $0x878] sm:$0xff]  ;;  %v402_v23 = vld [vmem:[%s3737_s1 + $0xb28] sm:$0xff] }
  0x88   :  { %2254 = vmatprep.subr.bf16.mxu1 %v2253_v36  ;;  %v331_v36 = vld [vmem:[%s3737_s1 + $0x8f0] sm:$0xff]  ;;  %v2243_v40 = vpack.c.bf16 %v314_v32, %v313_v31  ;;  %v372_v32 = vld [vmem:[%s3737_s1 + $0xa38] sm:$0xff] }
  0x89   :  { %2224 = vmatpush3.bf16.msra.mxu0 %v2223_v43  ;;  %v2245_v42 = vpack.c.bf16 %v332_v37, %v331_v36  ;;  %v315_v43 = vld [vmem:[%s3737_s1 + $0x870] sm:$0xff]  ;;  %v389_v36 = vld [vmem:[%s3737_s1 + $0xac0] sm:$0xff]  ;;  %v390_v37 = vld [vmem:[%s3737_s1 + $0xac8] sm:$0xff] }
  0x8a   :  { %2226 = vmatprep.subr.bf16.mxu0 %v2225_v46  ;;  %v2277_v46 = vpack.c.bf16 %v364_v39, %v363_v38  ;;  %v2247_v52 = vpack.c.bf16 %v316_v44, %v315_v43  ;;  %v371_v31 = vld [vmem:[%s3737_s1 + $0xa30] sm:$0xff]  ;;  %v421_v38 = vld [vmem:[%s3737_s1 + $0xbc0] sm:$0xff]  ;;  %v422_v39 = vld [vmem:[%s3737_s1 + $0xbc8] sm:$0xff] }
  0x8b   :  { %2256 = vmatpush3.bf16.msra.mxu1 %v2255_v45  ;;  %v347_v45 = vld [vmem:[%s3737_s1 + $0x970] sm:$0xff]  ;;  %v373_v43 = vld [vmem:[%s3737_s1 + $0xa40] sm:$0xff]  ;;  %v374_v44 = vld [vmem:[%s3737_s1 + $0xa48] sm:$0xff] }
  0x8c   :  { %2258 = vmatprep.subr.bf16.mxu1 %v2257_v50  ;;  %v413_v50 = vld [vmem:[%s3737_s1 + $0xb80] sm:$0xff]  ;;  %v2279_v53 = vpack.c.bf16 %v348_v47, %v347_v45  ;;  %v406_v47 = vld [vmem:[%s3737_s1 + $0xb48] sm:$0xff] }
  0x8d   :  { %2228 = vmatpush3.bf16.msra.mxu0 %v2227_v56  ;;  %v366_v56 = vld [vmem:[%s3737_s1 + $0xa08] sm:$0xff]  ;;  %v405_v45 = vld [vmem:[%s3737_s1 + $0xb40] sm:$0xff] }
  0x8e   :  { %2230 = vmatprep.subr.bf16.mxu0 %v2229_v58  ;;  %v2313_v58 = vpack.c.bf16 %v414_v51, %v413_v50  ;;  %v2283_v1 = vpack.c.bf16 %v366_v56, %v365_v55  ;;  %v423_v50 = vld [vmem:[%s3737_s1 + $0xbd0] sm:$0xff]  ;;  %v424_v51 = vld [vmem:[%s3737_s1 + $0xbd8] sm:$0xff] }
  0x8f   :  { %2260 = vmatpush3.bf16.msra.mxu1 %v2259_v57  ;;  %v397_v57 = vld [vmem:[%s3737_s1 + $0xb00] sm:$0xff]  ;;  %v375_v55 = vld [vmem:[%s3737_s1 + $0xa50] sm:$0xff]  ;;  %v376_v56 = vld [vmem:[%s3737_s1 + $0xa58] sm:$0xff] }
  0x90   :  { %2262 = vmatprep.subr.bf16.mxu1 %v2261_v62  ;;  %v415_v62 = vld [vmem:[%s3737_s1 + $0xb90] sm:$0xff]  ;;  %v2315_v3 = vpack.c.bf16 %v398_v59, %v397_v57  ;;  %v408_v59 = vld [vmem:[%s3737_s1 + $0xb58] sm:$0xff] }
  0x91   :  { %2232 = vmatpush3.bf16.msra.mxu0 %v2231_v4  ;;  %v2285_v4 = vpack.c.bf16 %v384_v61, %v383_v60  ;;  %v2317_v8 = vpack.c.bf16 %v416_v63, %v415_v62  ;;  %v407_v57 = vld [vmem:[%s3737_s1 + $0xb50] sm:$0xff]  ;;  %v393_v60 = vld [vmem:[%s3737_s1 + $0xae0] sm:$0xff]  ;;  %v394_v61 = vld [vmem:[%s3737_s1 + $0xae8] sm:$0xff] }
  0x92   :  { %2234 = vmatprep.subr.bf16.mxu0 %v2233_v6  ;;  %v368_v6 = vld [vmem:[%s3737_s1 + $0xa18] sm:$0xff]  ;;  %v425_v62 = vld [vmem:[%s3737_s1 + $0xbe0] sm:$0xff]  ;;  %v426_v63 = vld [vmem:[%s3737_s1 + $0xbe8] sm:$0xff] }
  0x93   :  { %2264 = vmatpush3.bf16.msra.mxu1 %v2263_v5  ;;  %v367_v5 = vld [vmem:[%s3737_s1 + $0xa10] sm:$0xff] }
  0x94   :  { %2266 = vmatprep.subr.bf16.mxu1 %v2265_v10  ;;  %v385_v10 = vld [vmem:[%s3737_s1 + $0xaa0] sm:$0xff]  ;;  %v2287_v15 = vpack.c.bf16 %v368_v6, %v367_v5  ;;  %v2337_v6 = vpack.c.bf16 %v426_v63, %v425_v62 }
  0x95   :  { %2236 = vmatpush3.bf16.msra.mxu0 %v2235_v16  ;;  %v43_v16 = vld [vmem:[%s3738_s0 + $0xb8] sm:$0xff]  ;;  %v409_v5 = vld [vmem:[%s3737_s1 + $0xb60] sm:$0xff] }
  0x96   :  { %2238 = vmatprep.subr.bf16.mxu0 %v2237_v18  ;;  %v2289_v18 = vpack.c.bf16 %v386_v11, %v385_v10  ;;  %v427_v10 = vld [vmem:[%s3737_s1 + $0xbf0] sm:$0xff]  ;;  %v428_v11 = vld [vmem:[%s3737_s1 + $0xbf8] sm:$0xff] }
  0x97   :  { %2268 = vmatpush3.bf16.msra.mxu1 %v2267_v17  ;;  %v2319_v17 = vpack.c.bf16 %v400_v9, %v399_v7  ;;  %v410_v7 = vld [vmem:[%s3737_s1 + $0xb68] sm:$0xff]  ;;  %v396_v9 = vld [vmem:[%s3737_s1 + $0xaf8] sm:$0xff] }
  0x98   :  { %2270 = vmatprep.subr.bf16.mxu1 %v2269_v22  ;;  %v2321_v22 = vpack.c.bf16 %v418_v13, %v417_v12  ;;  %v2339_v13 = vpack.c.bf16 %v410_v7, %v409_v5  ;;  %v1370_v7 = vld [vmem:[%s3740_s3 + $0x58] sm:$0xff] }
  0x99   :  { %2240 = vmatpush3.bf16.msra.mxu0 %v2239_v28  ;;  %v2291_v28 = vpack.c.bf16 %v370_v20, %v369_v19  ;;  %v412_v19 = vld [vmem:[%s3737_s1 + $0xb78] sm:$0xff] }
  0x9a   :  { %2242 = vmatprep.subr.bf16.mxu0 %v2241_v30  ;;  %v2293_v30 = vpack.c.bf16 %v388_v25, %v387_v24  ;;  %v40_v24 = vld [vmem:[%s3738_s0 + $0xa0] sm:$0xff] }
  0x9b   :  { %2272 = vmatpush3.bf16.msra.mxu1 %v2271_v29  ;;  %v2323_v29 = vpack.c.bf16 %v402_v23, %v401_v21  ;;  %v430_v23 = vld [vmem:[%s3737_s1 + $0xc08] sm:$0xff] }
  0x9c   :  { %2274 = vmatprep.subr.bf16.mxu1 %v2273_v34  ;;  %v2325_v34 = vpack.c.bf16 %v420_v27, %v419_v26  ;;  %v2384_v26 = vmov 0.0|0.0   ;;  %v42_v27 = vld [vmem:[%s3738_s0 + $0xb0] sm:$0xff] }
  0x9d   :  { %2244 = vmatpush3.bf16.msra.mxu0 %v2243_v40  ;;  %v2295_v40 = vpack.c.bf16 %v372_v32, %v371_v31  ;;  %v433_v31 = vld [vmem:[%s3737_s1 + $0xc20] sm:$0xff]  ;;  %v434_v32 = vld [vmem:[%s3737_s1 + $0xc28] sm:$0xff] }
  0x9e   :  { %2246 = vmatprep.subr.bf16.mxu0 %v2245_v42  ;;  %v2297_v42 = vpack.c.bf16 %v390_v37, %v389_v36  ;;  %v436_v36 = vld [vmem:[%s3737_s1 + $0xc38] sm:$0xff] }
  0x9f   :  { %2276 = vmatpush3.bf16.msra.mxu1 %v2275_v41  ;;  %v2327_v41 = vpack.c.bf16 %v404_v35, %v403_v33  ;;  %v2386_v33 = vmov 0.0   ;;  %v435_v35 = vld [vmem:[%s3737_s1 + $0xc30] sm:$0xff] }
  0xa0   :  { %2278 = vmatprep.subr.bf16.mxu1 %v2277_v46  ;;  %v2329_v46 = vpack.c.bf16 %v422_v39, %v421_v38  ;;  %v2355_v37 = vpack.c.bf16 %v436_v36, %v435_v35  ;;  %v44_v38 = vld [vmem:[%s3738_s0 + $0xc0] sm:$0xff] }
  0xa1   :  { %2248 = vmatpush3.bf16.msra.mxu0 %v2247_v52  ;;  %v2299_v52 = vpack.c.bf16 %v374_v44, %v373_v43 }
  0xa2   :  { %2282 = vmatprep.subr.bf16.mxu0 %v2281_v54  ;;  %v2301_v54 = vpack.c.bf16 %v392_v49, %v391_v48  ;;  %v1359_v48 = vld [vmem:[%s3740_s3] sm:$0xff]  ;;  %v1360_v49 = vld [vmem:[%s3740_s3 + $0x8] sm:$0xff] }
  0xa3   :  { %2280 = vmatpush3.bf16.msra.mxu1 %v2279_v53  ;;  %v2331_v53 = vpack.c.bf16 %v406_v47, %v405_v45 }
  0xa4   :  { %2314 = vmatprep.subr.bf16.mxu1 %v2313_v58  ;;  %1073 = vmatmul.mubr.f32.vlgmr.msra.gmra.mrb[8].mxu0 %v36_v0  ;;  %v2333_v58 = vpack.c.bf16 %v424_v51, %v423_v50  ;;  %v2303_v0 = vpack.c.bf16 %v376_v56, %v375_v55  ;;  %v1361_v50 = vld [vmem:[%s3740_s3 + $0x10] sm:$0xff]  ;;  %v2358_v51 = vpack.c.bf16 %v1360_v49, %v1359_v48  ;;  %v1364_v55 = vld [vmem:[%s3740_s3 + $0x28] sm:$0xff] }
  0xa5   :  { %2284 = vmatpush3.bf16.msra.mxu0 %v2283_v1  ;;  %1212 = vmatprep.mubr.f32.mxu0 %v41_v14  ;;  %v2335_v1 = vpack.c.bf16 %v408_v59, %v407_v57  ;;  %v1365_v57 = vld [vmem:[%s3740_s3 + $0x30] sm:$0xff] }
  0xa6   :  { %1143 = vmatmul.mubr.f32.vlgmr.msra.gmra.mrb[8].mxu1 %v38_v2  ;;  %2286 = vmatprep.subr.bf16.mxu0 %v2285_v4  ;;  %v2305_v2 = vpack.c.bf16 %v394_v61, %v393_v60  ;;  %v378_v4 = vld [vmem:[%s3737_s1 + $0xa68] sm:$0xff] }
  0xa7   :  { %2316 = vmatpush3.bf16.msra.mxu1 %v2315_v3  ;;  %1282 = vmatprep.mubr.f32.mxu1 %v43_v16  ;;  %v377_v3 = vld [vmem:[%s3737_s1 + $0xa60] sm:$0xff]  ;;  %v380_v16 = vld [vmem:[%s3737_s1 + $0xa78] sm:$0xff] }
  0xa8   :  { %2318 = vmatprep.subr.bf16.mxu1 %v2317_v8  ;;  %v395_v8 = vld [vmem:[%s3737_s1 + $0xaf0] sm:$0xff]  ;;  %v2307_v12 = vpack.c.bf16 %v378_v4, %v377_v3  ;;  %v1368_v3 = vld [vmem:[%s3740_s3 + $0x48] sm:$0xff] }
  0xa9   :  { %2288 = vmatpush3.bf16.msra.mxu0 %v2287_v15  ;;  %v2309_v14 = vpack.c.bf16 %v396_v9, %v395_v8  ;;  %v379_v15 = vld [vmem:[%s3737_s1 + $0xa70] sm:$0xff] }
  0xaa   :  { %2290 = vmatprep.subr.bf16.mxu0 %v2289_v18  ;;  %v411_v18 = vld [vmem:[%s3737_s1 + $0xb70] sm:$0xff]  ;;  %v2311_v20 = vpack.c.bf16 %v380_v16, %v379_v15 }
  0xab   :  { %2320 = vmatpush3.bf16.msra.mxu1 %v2319_v17  ;;  %v2341_v17 = vpack.c.bf16 %v428_v11, %v427_v10  ;;  %v2343_v21 = vpack.c.bf16 %v412_v19, %v411_v18  ;;  %v1371_v10 = vld [vmem:[%s3740_s3 + $0x60] sm:$0xff]  ;;  %v1372_v11 = vld [vmem:[%s3740_s3 + $0x68] sm:$0xff] }
  0xac   :  { %2322 = vmatprep.subr.bf16.mxu1 %v2321_v22  ;;  %v429_v22 = vld [vmem:[%s3737_s1 + $0xc00] sm:$0xff] }
  0xad   :  { %2292 = vmatpush3.bf16.msra.mxu0 %v2291_v28  ;;  %v2346_v25 = vpack.c.bf16 %v430_v23, %v429_v22  ;;  %v431_v28 = vld [vmem:[%s3737_s1 + $0xc10] sm:$0xff] }
  0xae   :  { %2294 = vmatprep.subr.bf16.mxu0 %v2293_v30 }
  0xaf   :  { %2324 = vmatpush3.bf16.msra.mxu1 %v2323_v29  ;;  %v432_v29 = vld [vmem:[%s3737_s1 + $0xc18] sm:$0xff] }
  0xb0   :  { %2326 = vmatprep.subr.bf16.mxu1 %v2325_v34  ;;  %v2349_v30 = vpack.c.bf16 %v432_v29, %v431_v28  ;;  %v2352_v34 = vpack.c.bf16 %v434_v32, %v433_v31 }
  0xb1   :  { %2296 = vmatpush3.bf16.msra.mxu0 %v2295_v40  ;;  %v1458_v40 = vld [vmem:[%s3739_s2] ss:$0 sm:$0xff] }
  0xb2   :  { %2298 = vmatprep.subr.bf16.mxu0 %v2297_v42 }
  0xb3   :  { %2328 = vmatpush3.bf16.msra.mxu1 %v2327_v41 }
  0xb4   :  { %2330 = vmatprep.subr.bf16.mxu1 %v2329_v46 }
  0xb5   :  { %2300 = vmatpush3.bf16.msra.mxu0 %v2299_v52  ;;  %v1362_v52 = vld [vmem:[%s3740_s3 + $0x18] sm:$0xff] }
  0xb6   :  { %2302 = vmatprep.subr.bf16.mxu0 %v2301_v54  ;;  %v1363_v54 = vld [vmem:[%s3740_s3 + $0x20] sm:$0xff] }
  0xb7   :  { %2332 = vmatpush3.bf16.msra.mxu1 %v2331_v53  ;;  %v2361_v53 = vpack.c.bf16 %v1362_v52, %v1361_v50  ;;  %v2364_v56 = vpack.c.bf16 %v1364_v55, %v1363_v54  ;;  %v1460_v52 = vld [vmem:[%s3741_s4] ss:$0 sm:$0xff] }
  0xb8   :  { %2334 = vmatprep.subr.bf16.mxu1 %v2333_v58  ;;  %v1366_v58 = vld [vmem:[%s3740_s3 + $0x38] sm:$0xff] }
  0xb9   :  { %2304 = vmatpush3.bf16.msra.mxu0 %v2303_v0  ;;  %v2367_v60 = vpack.c.bf16 %v1366_v58, %v1365_v57 }
  0xba   :  { %2306 = vmatprep.subr.bf16.mxu0 %v2305_v2  ;;  %v1367_v2 = vld [vmem:[%s3740_s3 + $0x40] sm:$0xff] }
  0xbb   :  { %2336 = vmatpush3.bf16.msra.mxu1 %v2335_v1  ;;  %v2370_v5 = vpack.c.bf16 %v1368_v3, %v1367_v2 }
  0xbc   :  { %2338 = vmatprep.subr.bf16.mxu1 %v2337_v6  ;;  %v1369_v6 = vld [vmem:[%s3740_s3 + $0x50] sm:$0xff] }
  0xbd   :  { %2308 = vmatpush3.bf16.msra.mxu0 %v2307_v12  ;;  %v2373_v9 = vpack.c.bf16 %v1370_v7, %v1369_v6  ;;  %v2376_v12 = vpack.c.bf16 %v1372_v11, %v1371_v10 }
  0xbe   :  { %2310 = vmatprep.subr.bf16.mxu0 %v2309_v14  ;;  %v1374_v14 = vld [vmem:[%s3740_s3 + $0x78] sm:$0xff] }
  0xbf   :  { %2340 = vmatpush3.bf16.msra.mxu1 %v2339_v13  ;;  %v1373_v13 = vld [vmem:[%s3740_s3 + $0x70] sm:$0xff] }
  0xc0   :  { %2342 = vmatprep.subr.bf16.mxu1 %v2341_v17  ;;  %v2379_v15 = vpack.c.bf16 %v1374_v14, %v1373_v13 }
  0xc1   :  { %2312 = vmatpush3.bf16.msra.mxu0 %v2311_v20 }
  0xc2   :  { %2345 = vmatprep.subr.bf16.mxu0 %v2384_v26 }
  0xc3   :  { %2344 = vmatpush3.bf16.msra.mxu1 %v2343_v21 }
  0xc4   :  { %2357 = vmatprep.subr.bf16.mxu1 %v2384_v26  ;;  %1213 = vmatmul.mubr.f32.vlgmr.msra.gmra.mrb[10].mxu0 %v40_v24 }
  0xc5   :  { %2347 = vmatpush3.bf16.msra.mxu0 %v2346_v25  ;;  %1923 = vmatprep.mubr.msk.f32.mxu0 %vm2385_vm0, %v2386_v33 }
  0xc6   :  { %1283 = vmatmul.mubr.f32.vlgmr.msra.gmra.mrb[10].mxu1 %v42_v27  ;;  %2348 = vmatprep.subr.bf16.mxu0 %v2384_v26 }
  0xc7   :  { %1958 = vmatprep.mubr.msk.f32.mxu1 %vm2385_vm0, %v2386_v33  ;;  %2359 = vmatpush3.bf16.msra.mxu1 %v2358_v51 }
  0xc8   :  { %2360 = vmatprep.subr.bf16.mxu1 %v2384_v26 }
  0xc9   :  { %2350 = vmatpush3.bf16.msra.mxu0 %v2349_v30 }
  0xca   :  { %2351 = vmatprep.subr.bf16.mxu0 %v2384_v26 }
  0xcb   :  { %2362 = vmatpush3.bf16.msra.mxu1 %v2361_v53 }
  0xcc   :  { %2363 = vmatprep.subr.bf16.mxu1 %v2384_v26 }
  0xcd   :  { %2353 = vmatpush3.bf16.msra.mxu0 %v2352_v34 }
  0xce   :  { %2354 = vmatprep.subr.bf16.mxu0 %v2384_v26 }
  0xcf   :  { %2365 = vmatpush3.bf16.msra.mxu1 %v2364_v56 }
  0xd0   :  { %2366 = vmatprep.subr.bf16.mxu1 %v2384_v26 }
  0xd1   :  { %2356 = vmatpush3.bf16.msra.mxu0 %v2355_v37 }
  0xd3   :  { %2368 = vmatpush3.bf16.msra.mxu1 %v2367_v60 }
  0xd4   :  { %1924 = vmatmul.mubr.msk.f32.vlgmr.msra.gmra.mrb[12].mxu0 %vm444_vm1, %v44_v38  ;;  %2369 = vmatprep.subr.bf16.mxu1 %v2384_v26 }
  0xd7   :  { %2371 = vmatpush3.bf16.msra.mxu1 %v2370_v5 }
  0xd8   :  { %2372 = vmatprep.subr.bf16.mxu1 %v2384_v26 }
  0xdb   :  { %2374 = vmatpush3.bf16.msra.mxu1 %v2373_v9 }
  0xdc   :  { %2375 = vmatprep.subr.bf16.mxu1 %v2384_v26 }
  0xdf   :  { %2377 = vmatpush3.bf16.msra.mxu1 %v2376_v12 }
  0xe0   :  { %2378 = vmatprep.subr.bf16.mxu1 %v2384_v26 }
  0xe3   :  { %2380 = vmatpush3.bf16.msra.mxu1 %v2379_v15 }
  0xf7   :  { %v1493_v39 = vpop.f32.mrb[0].mxu0 }
  0xf8   :  { %v1494_v41 = vpop.f32.mrb[1].mxu0 }
  0xf9   :  { %v1528_v42 = vpop.f32.mrb[0].mxu1  ;;  %v1495_v43 = vadd.f32 %v1494_v41, %v1493_v39 }
  0xfa   :  { %v1529_v44 = vpop.f32.mrb[1].mxu1 }
  0xfb   :  { %v1530_v45 = vadd.f32 %v1529_v44, %v1528_v42  ;;  %v515_v46 = vadd.f32 %v1495_v43, %v1458_v40 }
  0xfd   :  { %v585_v47 = vadd.f32 %v1530_v45, %v515_v46 }
 0x117   :  { %v1563_v59 = vpop.f32.mrb[2].mxu0 }
 0x118   :  { %v1564_v61 = vpop.f32.mrb[3].mxu0 }
 0x119   :  { %v1598_v62 = vpop.f32.mrb[2].mxu1  ;;  %v1565_v63 = vadd.f32 %v1564_v61, %v1563_v59 }
 0x11a   :  { %v1599_v0 = vpop.f32.mrb[3].mxu1 }
 0x11b   :  { %v1600_v1 = vadd.f32 %v1599_v0, %v1598_v62  ;;  %v655_v4 = vadd.f32 %v1565_v63, %v585_v47 }
 0x11d   :  { %v725_v8 = vadd.f32 %v1600_v1, %v655_v4 }
 0x137   :  { %v1633_v16 = vpop.f32.mrb[4].mxu0 }
 0x138   :  { %v1634_v17 = vpop.f32.mrb[5].mxu0 }
 0x139   :  { %v1668_v18 = vpop.f32.mrb[4].mxu1  ;;  %v1635_v19 = vadd.f32 %v1634_v17, %v1633_v16 }
 0x13a   :  { %v1669_v20 = vpop.f32.mrb[5].mxu1 }
 0x13b   :  { %v1670_v21 = vadd.f32 %v1669_v20, %v1668_v18  ;;  %v795_v22 = vadd.f32 %v1635_v19, %v725_v8 }
 0x13d   :  { %v865_v23 = vadd.f32 %v1670_v21, %v795_v22 }
 0x157   :  { %v1703_v24 = vpop.f32.mrb[6].mxu0 }
 0x158   :  { %v1704_v25 = vpop.f32.mrb[7].mxu0 }
 0x159   :  { %v1738_v26 = vpop.f32.mrb[6].mxu1  ;;  %v1705_v27 = vadd.f32 %v1704_v25, %v1703_v24 }
 0x15a   :  { %v1739_v28 = vpop.f32.mrb[7].mxu1 }
 0x15b   :  { %v1740_v29 = vadd.f32 %v1739_v28, %v1738_v26  ;;  %v935_v30 = vadd.f32 %v1705_v27, %v865_v23 }
 0x15d   :  { %v1005_v31 = vadd.f32 %v1740_v29, %v935_v30 }
 0x177   :  { %v1773_v32 = vpop.f32.mrb[8].mxu0 }
 0x178   :  { %v1774_v33 = vpop.f32.mrb[9].mxu0 }
 0x179   :  { %v1808_v34 = vpop.f32.mrb[8].mxu1  ;;  %v1775_v35 = vadd.f32 %v1774_v33, %v1773_v32 }
 0x17a   :  { %v1809_v36 = vpop.f32.mrb[9].mxu1 }
 0x17b   :  { %v1810_v37 = vadd.f32 %v1809_v36, %v1808_v34  ;;  %v1075_v38 = vadd.f32 %v1775_v35, %v1005_v31 }
 0x17d   :  { %v1145_v39 = vadd.f32 %v1810_v37, %v1075_v38 }
 0x197   :  { %v1843_v40 = vpop.f32.mrb[10].mxu0 }
 0x198   :  { %v1844_v41 = vpop.f32.mrb[11].mxu0 }
 0x199   :  { %v1878_v42 = vpop.f32.mrb[10].mxu1  ;;  %v1845_v43 = vadd.f32 %v1844_v41, %v1843_v40 }
 0x19a   :  { %v1879_v44 = vpop.f32.mrb[11].mxu1 }
 0x19b   :  { %v1880_v45 = vadd.f32 %v1879_v44, %v1878_v42  ;;  %v1215_v46 = vadd.f32 %v1845_v43, %v1145_v39 }
 0x19d   :  { %v1285_v47 = vadd.f32 %v1880_v45, %v1215_v46 }
 0x1a7   :  { %v1354_v48 = vpop.f32.mrb[12].mxu0 }
 0x1a8   :  { %v1355_v49 = vadd.f32 %v1354_v48, %v1285_v47  ;;  %v1925_v50 = vpop.f32.mrb[13].mxu0 }
 0x1aa   :  { %v1358_v51 = vmax.f32 %v1355_v49, 0.0 }
 0x1ac   :  { %1959 = vmatmul.mubr.f32.vlgmr.msra.gmra.mrb[12].mxu1 %v1358_v51 }
 0x27f   :  { %v1448_v53 = vpop.f32.mrb[12].mxu1 }
 0x280   :  { %v1449_v54 = vadd.f32 %v1460_v52, %v1448_v53  ;;  %v1960_v55 = vpop.f32.mrb[13].mxu1 }
 0x282   :  { %1453 = vst.msk [vmem:[%s3742_s5] sm:$0xff] %vm1452_vm2, %v1449_v54 }

</bundles_post_ra>
